<compile_context>
chip_gen: v6e
topology: v6e:2x2x1
jax: 0.10.0
libtpu: 0.0.40
codegen_flags: <defaults>
</compile_context>

<pallas_src>
from functools import partial

import jax
import jax.numpy as jnp
from jax.experimental import pallas as pl
from jax.experimental.pallas import tpu as pltpu

# Scoped-VMEM request for the tiled matmul kernels: comfortably below v7x's
# 64 MiB physical VMEM while allowing large double-buffered row tiles on
# v5e/v6e (128 MiB physical).
_VMEM_LIMIT_BYTES = 48 * 1024 * 1024
_DEFAULT_BLOCK_M = 512  # rows per grid step (review: ~512 v7x, 1024+ v5e/v6e)


def _row_tile(M, block_m):
    """Row-tile size: a multiple of 8 (sublane) or the full extent."""
    block_m = max(8, (block_m // 8) * 8)
    return M if M <= block_m else block_m


def _linear_compiler_params():
    return pltpu.CompilerParams(dimension_semantics=("parallel",),
                                vmem_limit_bytes=_VMEM_LIMIT_BYTES)


# ----------------------- activation helpers (usable inside kernels) -----------------------
def _apply_act(y, act):
    if act == "none":
        return y
    if act == "silu":
        return y * jax.nn.sigmoid(y)
    if act == "gelu":  # exact (erf-based) GELU, matches torch.nn.GELU default
        return 0.5 * y * (1.0 + jax.lax.erf(y * 0.7071067811865476))
    if act == "elu1":  # ELU(x) + 1  (alpha=1)
        return jnp.where(y > 0, y + 1.0, jnp.exp(y))
    raise ValueError(act)


def _layernorm_tile(x, g, b):
    mean = jnp.mean(x, axis=-1, keepdims=True)
    xc = x - mean
    var = jnp.mean(xc * xc, axis=-1, keepdims=True)
    return xc * jax.lax.rsqrt(var + 1e-5) * g + b


# ----------------------------------- Pallas kernels ---------------------------------------
def _linear_kernel(x_ref, w_ref, b_ref, o_ref, *, act, mm_dtype):
    y = jnp.dot(x_ref[...].astype(mm_dtype), w_ref[...].astype(mm_dtype),
                preferred_element_type=jnp.float32) + b_ref[...]
    o_ref[...] = _apply_act(y, act)


def linear_pallas(x, w, b, act="none", *, mm_dtype=jnp.float32, block_m=_DEFAULT_BLOCK_M):
    """x: (M, Cin), w: (Cin, Cout), b: (Cout,)."""
    M, Cin = x.shape
    Cout = w.shape[1]
    tm = _row_tile(M, block_m)
    return pl.pallas_call(
        partial(_linear_kernel, act=act, mm_dtype=mm_dtype),
        out_shape=jax.ShapeDtypeStruct((M, Cout), jnp.float32),
        grid=(pl.cdiv(M, tm),),
        in_specs=[
            pl.BlockSpec((tm, Cin), lambda i: (i, 0)),
            pl.BlockSpec((Cin, Cout), lambda i: (0, 0)),
            pl.BlockSpec((1, Cout), lambda i: (0, 0)),
        ],
        out_specs=pl.BlockSpec((tm, Cout), lambda i: (i, 0)),
        compiler_params=_linear_compiler_params(),
    )(x, w, b.reshape(1, Cout))


def _ln_dual_linear_kernel(x_ref, g_ref, bn_ref, w1_ref, b1_ref, w2_ref, b2_ref,
                           y1_ref, y2_ref, *, act1, act2, mm_dtype):
    # LayerNorm computed on the resident tile; normalized tensor never hits HBM.
    xn = _layernorm_tile(x_ref[...], g_ref[...], bn_ref[...])
    xnm = xn.astype(mm_dtype)
    y1 = jnp.dot(xnm, w1_ref[...].astype(mm_dtype),
                 preferred_element_type=jnp.float32) + b1_ref[...]
    y1_ref[...] = _apply_act(y1, act1)
    y2 = jnp.dot(xnm, w2_ref[...].astype(mm_dtype),
                 preferred_element_type=jnp.float32) + b2_ref[...]
    y2_ref[...] = _apply_act(y2, act2)


def ln_dual_linear_pallas(x, g, bn, w1, b1, act1, w2, b2, act2, *,
                          mm_dtype=jnp.float32, block_m=_DEFAULT_BLOCK_M):
    """LayerNorm(x) fused with two consumer linears: returns (act1(xn@w1+b1), act2(xn@w2+b2))."""
    M, C = x.shape
    C1, C2 = w1.shape[1], w2.shape[1]
    tm = _row_tile(M, block_m)
    return pl.pallas_call(
        partial(_ln_dual_linear_kernel, act1=act1, act2=act2, mm_dtype=mm_dtype),
        out_shape=(jax.ShapeDtypeStruct((M, C1), jnp.float32),
                   jax.ShapeDtypeStruct((M, C2), jnp.float32)),
        grid=(pl.cdiv(M, tm),),
        in_specs=[
            pl.BlockSpec((tm, C), lambda i: (i, 0)),
            pl.BlockSpec((1, C), lambda i: (0, 0)),
            pl.BlockSpec((1, C), lambda i: (0, 0)),
            pl.BlockSpec((C, C1), lambda i: (0, 0)),
            pl.BlockSpec((1, C1), lambda i: (0, 0)),
            pl.BlockSpec((C, C2), lambda i: (0, 0)),
            pl.BlockSpec((1, C2), lambda i: (0, 0)),
        ],
        out_specs=(pl.BlockSpec((tm, C1), lambda i: (i, 0)),
                   pl.BlockSpec((tm, C2), lambda i: (i, 0))),
        compiler_params=_linear_compiler_params(),
    )(x, g.reshape(1, C), bn.reshape(1, C), w1, b1.reshape(1, C1), w2, b2.reshape(1, C2))


def _ln_linear_kernel(x_ref, g_ref, bn_ref, w_ref, b_ref, y_ref, xn_ref, *, act, mm_dtype):
    xn = _layernorm_tile(x_ref[...], g_ref[...], bn_ref[...])
    xn_ref[...] = xn                     # normalized tensor also needed downstream (residual)
    y = jnp.dot(xn.astype(mm_dtype), w_ref[...].astype(mm_dtype),
                preferred_element_type=jnp.float32) + b_ref[...]
    y_ref[...] = _apply_act(y, act)


def ln_linear_pallas(x, g, bn, w, b, act="none", *,
                     mm_dtype=jnp.float32, block_m=_DEFAULT_BLOCK_M):
    """LayerNorm(x) fused with a consumer linear; also emits the normalized tensor."""
    M, C = x.shape
    Cout = w.shape[1]
    tm = _row_tile(M, block_m)
    return pl.pallas_call(
        partial(_ln_linear_kernel, act=act, mm_dtype=mm_dtype),
        out_shape=(jax.ShapeDtypeStruct((M, Cout), jnp.float32),
                   jax.ShapeDtypeStruct((M, C), jnp.float32)),
        grid=(pl.cdiv(M, tm),),
        in_specs=[
            pl.BlockSpec((tm, C), lambda i: (i, 0)),
            pl.BlockSpec((1, C), lambda i: (0, 0)),
            pl.BlockSpec((1, C), lambda i: (0, 0)),
            pl.BlockSpec((C, Cout), lambda i: (0, 0)),
            pl.BlockSpec((1, Cout), lambda i: (0, 0)),
        ],
        out_specs=(pl.BlockSpec((tm, Cout), lambda i: (i, 0)),
                   pl.BlockSpec((tm, C), lambda i: (i, 0))),
        compiler_params=_linear_compiler_params(),
    )(x, g.reshape(1, C), bn.reshape(1, C), w, b.reshape(1, Cout))


def _gated_out_proj_kernel(a_ref, l_ref, g_ref, r_ref, w_ref, b_ref, o_ref, *, mm_dtype):
    # (attn + lepe) * act_res, matmul, + bias, + shortcut residual — all fused.
    t = (a_ref[...] + l_ref[...]) * g_ref[...]
    y = jnp.dot(t.astype(mm_dtype), w_ref[...].astype(mm_dtype),
                preferred_element_type=jnp.float32) + b_ref[...]
    o_ref[...] = r_ref[...] + y


def gated_out_proj_pallas(attn, lepe, gate, shortcut, w, b, *,
                          mm_dtype=jnp.float32, block_m=_DEFAULT_BLOCK_M):
    M, C = attn.shape
    Cout = w.shape[1]
    tm = _row_tile(M, block_m)
    row = pl.BlockSpec((tm, C), lambda i: (i, 0))
    return pl.pallas_call(
        partial(_gated_out_proj_kernel, mm_dtype=mm_dtype),
        out_shape=jax.ShapeDtypeStruct((M, Cout), jnp.float32),
        grid=(pl.cdiv(M, tm),),
        in_specs=[row, row, row, row,
                  pl.BlockSpec((C, Cout), lambda i: (0, 0)),
                  pl.BlockSpec((1, Cout), lambda i: (0, 0))],
        out_specs=pl.BlockSpec((tm, Cout), lambda i: (i, 0)),
        compiler_params=_linear_compiler_params(),
    )(attn, lepe, gate, shortcut, w, b.reshape(1, Cout))


def _linear_res2_kernel(h_ref, r1_ref, r2_ref, w_ref, b_ref, o_ref, *, mm_dtype):
    y = jnp.dot(h_ref[...].astype(mm_dtype), w_ref[...].astype(mm_dtype),
                preferred_element_type=jnp.float32) + b_ref[...]
    o_ref[...] = r1_ref[...] + r2_ref[...] + y


def linear_res2_pallas(h, r1, r2, w, b, *, mm_dtype=jnp.float32, block_m=_DEFAULT_BLOCK_M):
    """fc2 with both MixFFN residuals fused: r1 + r2 + h @ w + b."""
    M, F = h.shape
    Cout = w.shape[1]
    tm = _row_tile(M, block_m)
    return pl.pallas_call(
        partial(_linear_res2_kernel, mm_dtype=mm_dtype),
        out_shape=jax.ShapeDtypeStruct((M, Cout), jnp.float32),
        grid=(pl.cdiv(M, tm),),
        in_specs=[
            pl.BlockSpec((tm, F), lambda i: (i, 0)),
            pl.BlockSpec((tm, Cout), lambda i: (i, 0)),
            pl.BlockSpec((tm, Cout), lambda i: (i, 0)),
            pl.BlockSpec((F, Cout), lambda i: (0, 0)),
            pl.BlockSpec((1, Cout), lambda i: (0, 0)),
        ],
        out_specs=pl.BlockSpec((tm, Cout), lambda i: (i, 0)),
        compiler_params=_linear_compiler_params(),
    )(h, r1, r2, w, b.reshape(1, Cout))


def _dwconv3x3_kernel(x_ref, w_ref, b_ref, o_ref, pad_ref, *, H, W, act, residual):
    C = w_ref.shape[1]
    xin = x_ref[0]                                   # (H, W, C)
    # Build the zero halo in VMEM scratch (no HBM jnp.pad copy).
    pad_ref[...] = jnp.zeros_like(pad_ref)
    pad_ref[pl.ds(1, H), pl.ds(1, W), :] = xin
    acc = jnp.zeros((H, W, C), jnp.float32)
    for di in range(3):
        for dj in range(3):
            win = pad_ref[pl.ds(di, H), pl.ds(dj, W), :]               # (H, W, C)
            tap = w_ref[pl.ds(di * 3 + dj, 1), :].reshape(1, 1, C)     # (1, 1, C)
            acc = acc + win * tap
    out = _apply_act(acc + b_ref[...].reshape(1, 1, C), act)
    if residual:                                     # fused "x + conv(x)" (cpe / cpe2)
        out = out + xin
    o_ref[0] = out


def dwconv3x3_pallas(x_img, w, b, act="none", residual=False):
    """Depthwise 3x3 conv, padding=1. x_img: (B,H,W,C) NHWC; w: (9,C); b: (C,)."""
    B, H, W, C = x_img.shape
    # TODO(synk): for production H*W (e.g. 16K tokens, F=4C) tile rows with a halo
    # (grid=(B, H-tiles)) so the per-step block stays under the v7x 64 MiB VMEM.
    return pl.pallas_call(
        partial(_dwconv3x3_kernel, H=H, W=W, act=act, residual=residual),
        out_shape=jax.ShapeDtypeStruct((B, H, W, C), jnp.float32),
        grid=(B,),
        in_specs=[
            pl.BlockSpec((1, H, W, C), lambda i: (i, 0, 0, 0)),
            pl.BlockSpec((9, C), lambda i: (0, 0)),
            pl.BlockSpec((1, C), lambda i: (0, 0)),
        ],
        out_specs=pl.BlockSpec((1, H, W, C), lambda i: (i, 0, 0, 0)),
        scratch_shapes=[pltpu.VMEM((H + 2, W + 2, C), jnp.float32)],
        compiler_params=pltpu.CompilerParams(dimension_semantics=("parallel",)),
    )(x_img, w, b.reshape(1, C))


def _linear_attn_kernel(q_ref, k_ref, v_ref, qr_ref, kr_ref, o_ref, *, n):
    q = q_ref[0, 0]                                   # (N, d)
    k = k_ref[0, 0]
    v = v_ref[0, 0]
    qr = qr_ref[0, 0]
    kr = kr_ref[0, 0]
    k_mean = jnp.mean(k, axis=0, keepdims=True)       # (1, d)
    # denominator as a VPU multiply + lane reduce (no 1-column MXU pass); EUP reciprocal.
    denom = jnp.sum(q * k_mean, axis=-1, keepdims=True)              # (N, 1)
    z = pl.reciprocal(denom + 1e-6, approx=True)
    # kv = kr^T @ v scaled once by 1/n (folds the two n^-0.5 scalings).
    kv = jax.lax.dot_general(kr, v, (((0,), (0,)), ((), ())),
                             preferred_element_type=jnp.float32) * (1.0 / n)   # (d, d)
    o_ref[0, 0] = jnp.dot(qr, kv, preferred_element_type=jnp.float32) * z


def attention_core_pallas(q, k, v, q_rope, k_rope):
    """All inputs (B, heads, N, d) float32 -> output (B, heads, N, d)."""
    B, Hh, N, D = q.shape
    # TODO(synk): for real head dims (d>=64) pack heads so kv / qr@kv present
    # >=128-wide K/N to the MXU instead of per-head d x d matmuls.
    spec = pl.BlockSpec((1, 1, N, D), lambda b, h: (b, h, 0, 0))
    return pl.pallas_call(
        partial(_linear_attn_kernel, n=N),
        out_shape=jax.ShapeDtypeStruct((B, Hh, N, D), jnp.float32),
        grid=(B, Hh),
        in_specs=[spec] * 5,
        out_specs=spec,
        compiler_params=pltpu.CompilerParams(
            dimension_semantics=("parallel", "parallel")),
    )(q, k, v, q_rope, k_rope)


# --------------------------------------- RoPE glue ----------------------------------------
# TODO(synk): RoPE pair rotation + head split/merge are cheap elementwise/layout glue;
# kept in JAX rather than fused into the attention kernel.
def make_rope_tables(H, W, C, base=10000.0):
    k_max = C // 4  # feature_dim // (2 * len(channel_dims)) with channel_dims=(H, W)
    theta = 1.0 / (base ** (jnp.arange(k_max, dtype=jnp.float32) / k_max))
    hh, ww = jnp.meshgrid(jnp.arange(H, dtype=jnp.float32),
                          jnp.arange(W, dtype=jnp.float32), indexing="ij")
    angles = jnp.concatenate([hh[..., None] * theta, ww[..., None] * theta], axis=-1)
    return jnp.cos(angles), jnp.sin(angles)          # (H, W, C//2) each


def apply_rope(x_img, cos, sin):
    B, H, W, C = x_img.shape
    xr = x_img.reshape(B, H, W, C // 2, 2)
    re, im = xr[..., 0], xr[..., 1]
    out_re = cos * re - sin * im
    out_im = sin * re + cos * im
    return jnp.stack([out_re, out_im], axis=-1).reshape(B, H, W, C)


# --------------------------------- MLLA forward (Pallas) ----------------------------------
def mlla_forward_pallas(x, p, *, H, W, num_heads,
                        mm_dtype=jnp.float32, block_m=_DEFAULT_BLOCK_M):
    B, L, C = x.shape
    assert L == H * W, "input feature has wrong size"
    M = B * L
    d = C // num_heads

    # cpe: x = x + dwconv(x)  (residual fused into the conv kernel)
    x = dwconv3x3_pallas(x.reshape(B, H, W, C), p["cpe_w"], p["cpe_b"],
                         residual=True).reshape(B, L, C)
    shortcut2d = x.reshape(M, C)

    # norm1 fused with both consumers: act_proj (SiLU gate) and in_proj.
    act_res, t = ln_dual_linear_pallas(
        shortcut2d, p["norm1_g"], p["norm1_b"],
        p["act_proj_w"], p["act_proj_b"], "silu",
        p["in_proj_w"], p["in_proj_b"], "none",
        mm_dtype=mm_dtype, block_m=block_m)

    # dwc + SiLU
    t_img = dwconv3x3_pallas(t.reshape(B, H, W, C), p["dwc_w"], p["dwc_b"], act="silu")
    t_tok = t_img.reshape(B, L, C)

    # LinearAttention: qk linear with fused ELU+1
    qk = linear_pallas(t_tok.reshape(M, C), p["qk_w"], p["qk_b"], act="elu1",
                       mm_dtype=mm_dtype, block_m=block_m).reshape(B, L, 2 * C)
    q, k = qk[..., :C], qk[..., C:]
    v = t_tok
    q_rope = apply_rope(q.reshape(B, H, W, C), p["rope_cos"], p["rope_sin"]).reshape(B, L, C)
    k_rope = apply_rope(k.reshape(B, H, W, C), p["rope_cos"], p["rope_sin"]).reshape(B, L, C)

    def to_heads(u):
        return u.reshape(B, L, num_heads, d).transpose(0, 2, 1, 3)

    attn = attention_core_pallas(to_heads(q), to_heads(k), to_heads(v),
                                 to_heads(q_rope), to_heads(k_rope))
    attn = attn.transpose(0, 2, 1, 3).reshape(M, C)
    lepe = dwconv3x3_pallas(v.reshape(B, H, W, C), p["lepe_w"], p["lepe_b"]).reshape(M, C)

    # out_proj fused with (+lepe), (*act_res), (+shortcut)   (drop_path = Identity)
    x = gated_out_proj_pallas(attn, lepe, act_res, shortcut2d,
                              p["out_proj_w"], p["out_proj_b"],
                              mm_dtype=mm_dtype, block_m=block_m)

    # cpe2: x = x + dwconv(x)
    x = dwconv3x3_pallas(x.reshape(B, H, W, C), p["cpe2_w"], p["cpe2_b"], residual=True)
    x2d = x.reshape(M, C)

    # MixFFN (classes=False): norm2 fused with fc1 (also emits xn2 for the identity residual)
    Fh = p["fc1_w"].shape[1]
    h1, xn2 = ln_linear_pallas(x2d, p["norm2_g"], p["norm2_b"],
                               p["fc1_w"], p["fc1_b"], act="none",
                               mm_dtype=mm_dtype, block_m=block_m)
    h1 = dwconv3x3_pallas(h1.reshape(B, H, W, Fh), p["pe_w"], p["pe_b"],
                          act="gelu").reshape(M, Fh)
    # fc2 fused with both residual adds: out = x + (xn2 + fc2(h1))   (matches PyTorch:
    # x + mix_ffn(norm2(x)) where mix_ffn identity defaults to its input norm2(x)).
    out = linear_res2_pallas(h1, x2d, xn2, p["fc2_w"], p["fc2_b"],
                             mm_dtype=mm_dtype, block_m=block_m)
    return out.reshape(B, L, C)


# --------------------------- pure-JAX reference forward (for checking) --------------------
def mlla_forward_ref(x, p, *, H, W, num_heads):
    B, L, C = x.shape
    d = C // num_heads

    def dw(t_img, w, b):
        xp = jnp.pad(t_img, ((0, 0), (1, 1), (1, 1), (0, 0)))
        acc = jnp.zeros_like(t_img)
        for di in range(3):
            for dj in range(3):
                acc = acc + xp[:, di:di + H, dj:dj + W, :] * w[di * 3 + dj]
        return acc + b

    def ln(t, g, b):
        m = t.mean(-1, keepdims=True)
        tc = t - m
        v = (tc * tc).mean(-1, keepdims=True)
        return tc / jnp.sqrt(v + 1e-5) * g + b

    silu = lambda t: t * jax.nn.sigmoid(t)
    gelu = lambda t: 0.5 * t * (1.0 + jax.lax.erf(t * 0.7071067811865476))
    elu1 = lambda t: jnp.where(t > 0, t + 1.0, jnp.exp(t))

    x = x + dw(x.reshape(B, H, W, C), p["cpe_w"], p["cpe_b"]).reshape(B, L, C)
    shortcut = x
    xn = ln(x, p["norm1_g"], p["norm1_b"])
    act_res = silu(xn @ p["act_proj_w"] + p["act_proj_b"])
    t = (xn @ p["in_proj_w"] + p["in_proj_b"]).reshape(B, H, W, C)
    t = silu(dw(t, p["dwc_w"], p["dwc_b"])).reshape(B, L, C)

    qk = elu1(t @ p["qk_w"] + p["qk_b"])
    q, k = qk[..., :C], qk[..., C:]
    v = t
    qr = apply_rope(q.reshape(B, H, W, C), p["rope_cos"], p["rope_sin"]).reshape(B, L, C)
    kr = apply_rope(k.reshape(B, H, W, C), p["rope_cos"], p["rope_sin"]).reshape(B, L, C)
    heads = lambda u: u.reshape(B, L, num_heads, d).transpose(0, 2, 1, 3)
    qh, kh, vh, qrh, krh = map(heads, (q, k, v, qr, kr))
    k_mean = kh.mean(axis=2, keepdims=True)
    z = 1.0 / (jnp.einsum("bhnd,bhmd->bhnm", qh, k_mean) + 1e-6)
    scale = L ** (-0.5)
    kv = jnp.einsum("bhnd,bhne->bhde", krh * scale, vh * scale)
    attn = (jnp.einsum("bhnd,bhde->bhne", qrh, kv) * z).transpose(0, 2, 1, 3).reshape(B, L, C)
    lepe = dw(v.reshape(B, H, W, C), p["lepe_w"], p["lepe_b"]).reshape(B, L, C)
    attn = attn + lepe

    x = shortcut + ((attn * act_res) @ p["out_proj_w"] + p["out_proj_b"])
    x = x + dw(x.reshape(B, H, W, C), p["cpe2_w"], p["cpe2_b"]).reshape(B, L, C)
    xn2 = ln(x, p["norm2_g"], p["norm2_b"])
    h1 = (xn2 @ p["fc1_w"] + p["fc1_b"]).reshape(B, H, W, -1)
    h1 = gelu(dw(h1, p["pe_w"], p["pe_b"])).reshape(B, L, -1)
    y = h1 @ p["fc2_w"] + p["fc2_b"]
    return x + (xn2 + y)


# ------------------------------------ parameter init --------------------------------------
def init_params(key, C, H, W):
    ks = list(jax.random.split(key, 32))
    it = iter(ks)

    def nrm(shape, s=0.05):
        return s * jax.random.normal(next(it), shape, jnp.float32)

    F = 4 * C
    p = {}
    p["cpe_w"], p["cpe_b"] = nrm((9, C)), nrm((C,))
    p["norm1_g"], p["norm1_b"] = jnp.ones((C,), jnp.float32) + nrm((C,)), nrm((C,))
    p["norm2_g"], p["norm2_b"] = jnp.ones((C,), jnp.float32) + nrm((C,)), nrm((C,))
    p["in_proj_w"], p["in_proj_b"] = nrm((C, C)), nrm((C,))
    p["act_proj_w"], p["act_proj_b"] = nrm((C, C)), nrm((C,))
    p["dwc_w"], p["dwc_b"] = nrm((9, C)), nrm((C,))
    p["qk_w"], p["qk_b"] = nrm((C, 2 * C)), nrm((2 * C,))
    p["lepe_w"], p["lepe_b"] = nrm((9, C)), nrm((C,))
    p["out_proj_w"], p["out_proj_b"] = nrm((C, C)), nrm((C,))
    p["cpe2_w"], p["cpe2_b"] = nrm((9, C)), nrm((C,))
    p["fc1_w"], p["fc1_b"] = nrm((C, F)), nrm((F,))
    p["pe_w"], p["pe_b"] = nrm((9, F)), nrm((F,))
    p["fc2_w"], p["fc2_b"] = nrm((F, C)), nrm((C,))
    p["rope_cos"], p["rope_sin"] = make_rope_tables(H, W, C)
    return p


# ------------------------------------------ main ------------------------------------------
if __name__ == "__main__":
    B, H, W, C, num_heads = 2, 8, 8, 16, 4   # dim=16 (div by 4 for RoPE), L=64, head_dim=4
    L = H * W
    key = jax.random.PRNGKey(0)
    kx, kp = jax.random.split(key)
    x = jax.random.normal(kx, (B, L, C), jnp.float32)
    params = init_params(kp, C, H, W)

    fwd = jax.jit(mlla_forward_pallas,
                  static_argnames=("H", "W", "num_heads", "mm_dtype", "block_m"))
    ref_fwd = jax.jit(mlla_forward_ref, static_argnames=("H", "W", "num_heads"))

    # f32 matmul path (strict check; block_m=64 exercises the multi-tile grids at toy M=128).
    out = jax.block_until_ready(fwd(x, params, H=H, W=W, num_heads=num_heads,
                                    mm_dtype=jnp.float32, block_m=64))
    ref = jax.block_until_ready(ref_fwd(x, params, H=H, W=W, num_heads=num_heads))

    assert out.shape == (B, L, C)
    assert bool(jnp.all(jnp.isfinite(out)))
    max_err = float(jnp.max(jnp.abs(out - ref)))
    # 5e-3 tolerance: pl.reciprocal(approx=True) in the attention core adds tiny drift.
    assert max_err < 5e-3, f"f32 mismatch vs pure-JAX reference: {max_err}"

    # bf16 matmul-operand path (v6e/v7x MXU; f32 accumulation) — loose sanity check.
    out_bf16 = jax.block_until_ready(fwd(x, params, H=H, W=W, num_heads=num_heads,
                                         mm_dtype=jnp.bfloat16, block_m=64))
    assert bool(jnp.all(jnp.isfinite(out_bf16)))
    bf16_err = float(jnp.max(jnp.abs(out_bf16 - ref)))
    assert bf16_err < 1e-1, f"bf16 matmul drift too large: {bf16_err}"

    print("KERNEL_OK")
</pallas_src>

<mosaic_0001>
module attributes {stable_mosaic.version = 11 : i64} {
  func.func @_ln_dual_linear_kernel(%arg0: i32, %arg1: memref<64x16xf32, #tpu.memory_space<vmem>>, %arg2: memref<1x16xf32, #tpu.memory_space<vmem>>, %arg3: memref<1x16xf32, #tpu.memory_space<vmem>>, %arg4: memref<16x16xf32, #tpu.memory_space<vmem>>, %arg5: memref<1x16xf32, #tpu.memory_space<vmem>>, %arg6: memref<16x16xf32, #tpu.memory_space<vmem>>, %arg7: memref<1x16xf32, #tpu.memory_space<vmem>>, %arg8: memref<64x16xf32, #tpu.memory_space<vmem>>, %arg9: memref<64x16xf32, #tpu.memory_space<vmem>>) attributes {dimension_semantics = [#tpu.dimension_semantics<parallel>], iteration_bounds = array<i64: 2>, scalar_prefetch = 0 : i64, scratch_operands = 0 : i64, tpu.core_type = #tpu.core_type<tc>, window_params = [{transform_indices = @transform_0, window_bounds = array<i64: 64, 16>}, {pipeline_mode = #tpu.pipeline_mode<synchronous>, transform_indices = @transform_1, window_bounds = array<i64: 1, 16>}, {pipeline_mode = #tpu.pipeline_mode<synchronous>, transform_indices = @transform_2, window_bounds = array<i64: 1, 16>}, {pipeline_mode = #tpu.pipeline_mode<synchronous>, transform_indices = @transform_3, window_bounds = array<i64: 16, 16>}, {pipeline_mode = #tpu.pipeline_mode<synchronous>, transform_indices = @transform_4, window_bounds = array<i64: 1, 16>}, {pipeline_mode = #tpu.pipeline_mode<synchronous>, transform_indices = @transform_5, window_bounds = array<i64: 16, 16>}, {pipeline_mode = #tpu.pipeline_mode<synchronous>, transform_indices = @transform_6, window_bounds = array<i64: 1, 16>}, {transform_indices = @transform_7, window_bounds = array<i64: 64, 16>}, {transform_indices = @transform_8, window_bounds = array<i64: 64, 16>}]} {
    %c0 = arith.constant 0 : index
    %c0_0 = arith.constant 0 : index
    %0 = vector.load %arg1[%c0, %c0_0] : memref<64x16xf32, #tpu.memory_space<vmem>>, vector<64x16xf32>
    %c0_1 = arith.constant 0 : index
    %c0_2 = arith.constant 0 : index
    %1 = vector.load %arg2[%c0_1, %c0_2] : memref<1x16xf32, #tpu.memory_space<vmem>>, vector<1x16xf32>
    %c0_3 = arith.constant 0 : index
    %c0_4 = arith.constant 0 : index
    %2 = vector.load %arg3[%c0_3, %c0_4] : memref<1x16xf32, #tpu.memory_space<vmem>>, vector<1x16xf32>
    %cst = arith.constant dense<0.000000e+00> : vector<64xf32>
    %3 = vector.multi_reduction <add>, %0, %cst [1] : vector<64x16xf32> to vector<64xf32>
    %4 = vector.shape_cast %3 : vector<64xf32> to vector<64x1xf32>
    %cst_5 = arith.constant 1.600000e+01 : f32
    %5 = vector.broadcast %cst_5 : f32 to vector<64x1xf32>
    %6 = arith.divf %4, %5 : vector<64x1xf32>
    %7 = vector.broadcast %6 : vector<64x1xf32> to vector<64x16xf32>
    %8 = arith.subf %0, %7 : vector<64x16xf32>
    %9 = arith.mulf %8, %8 : vector<64x16xf32>
    %cst_6 = arith.constant dense<0.000000e+00> : vector<64xf32>
    %10 = vector.multi_reduction <add>, %9, %cst_6 [1] : vector<64x16xf32> to vector<64xf32>
    %11 = vector.shape_cast %10 : vector<64xf32> to vector<64x1xf32>
    %cst_7 = arith.constant 1.600000e+01 : f32
    %12 = vector.broadcast %cst_7 : f32 to vector<64x1xf32>
    %13 = arith.divf %11, %12 : vector<64x1xf32>
    %cst_8 = arith.constant 9.99999974E-6 : f32
    %14 = vector.broadcast %cst_8 : f32 to vector<64x1xf32>
    %15 = arith.addf %13, %14 : vector<64x1xf32>
    %16 = math.rsqrt %15 : vector<64x1xf32>
    %17 = vector.broadcast %16 : vector<64x1xf32> to vector<64x16xf32>
    %18 = arith.mulf %8, %17 : vector<64x16xf32>
    %19 = vector.broadcast %1 : vector<1x16xf32> to vector<64x16xf32>
    %20 = arith.mulf %18, %19 : vector<64x16xf32>
    %21 = vector.broadcast %2 : vector<1x16xf32> to vector<64x16xf32>
    %22 = arith.addf %20, %21 : vector<64x16xf32>
    %c0_9 = arith.constant 0 : index
    %c0_10 = arith.constant 0 : index
    %23 = vector.load %arg4[%c0_9, %c0_10] : memref<16x16xf32, #tpu.memory_space<vmem>>, vector<16x16xf32>
    %cst_11 = arith.constant dense<0.000000e+00> : vector<64x16xf32>
    %24 = tpu.matmul %22, %23, %cst_11 {dimension_numbers = #tpu.dot_dimension_numbers<[1], [0], [0], [1], [0, 0, 1, 1], [], []>} : vector<64x16xf32>, vector<16x16xf32>, vector<64x16xf32> -> vector<64x16xf32>
    %c0_12 = arith.constant 0 : index
    %c0_13 = arith.constant 0 : index
    %25 = vector.load %arg5[%c0_12, %c0_13] : memref<1x16xf32, #tpu.memory_space<vmem>>, vector<1x16xf32>
    %26 = vector.broadcast %25 : vector<1x16xf32> to vector<64x16xf32>
    %27 = arith.addf %24, %26 : vector<64x16xf32>
    %28 = arith.negf %27 : vector<64x16xf32>
    %29 = math.exp %28 : vector<64x16xf32>
    %cst_14 = arith.constant 1.000000e+00 : f32
    %30 = vector.broadcast %cst_14 : f32 to vector<64x16xf32>
    %31 = arith.addf %30, %29 : vector<64x16xf32>
    %32 = arith.divf %30, %31 : vector<64x16xf32>
    %33 = arith.mulf %27, %32 : vector<64x16xf32>
    %c0_15 = arith.constant 0 : index
    %c0_16 = arith.constant 0 : index
    %34 = vector.load %arg8[%c0_15, %c0_16] : memref<64x16xf32, #tpu.memory_space<vmem>>, vector<64x16xf32>
    tpu.vector_store %arg8[%c0_15, %c0_16], %33 {strides = array<i32>} : memref<64x16xf32, #tpu.memory_space<vmem>>, vector<64x16xf32>,
    %c0_17 = arith.constant 0 : index
    %c0_18 = arith.constant 0 : index
    %35 = vector.load %arg6[%c0_17, %c0_18] : memref<16x16xf32, #tpu.memory_space<vmem>>, vector<16x16xf32>
    %cst_19 = arith.constant dense<0.000000e+00> : vector<64x16xf32>
    %36 = tpu.matmul %22, %35, %cst_19 {dimension_numbers = #tpu.dot_dimension_numbers<[1], [0], [0], [1], [0, 0, 1, 1], [], []>} : vector<64x16xf32>, vector<16x16xf32>, vector<64x16xf32> -> vector<64x16xf32>
    %c0_20 = arith.constant 0 : index
    %c0_21 = arith.constant 0 : index
    %37 = vector.load %arg7[%c0_20, %c0_21] : memref<1x16xf32, #tpu.memory_space<vmem>>, vector<1x16xf32>
    %38 = vector.broadcast %37 : vector<1x16xf32> to vector<64x16xf32>
    %39 = arith.addf %36, %38 : vector<64x16xf32>
    %c0_22 = arith.constant 0 : index
    %c0_23 = arith.constant 0 : index
    %40 = vector.load %arg9[%c0_22, %c0_23] : memref<64x16xf32, #tpu.memory_space<vmem>>, vector<64x16xf32>
    tpu.vector_store %arg9[%c0_22, %c0_23], %39 {strides = array<i32>} : memref<64x16xf32, #tpu.memory_space<vmem>>, vector<64x16xf32>,
    return
  }
  func.func @transform_0(%arg0: i32) -> (i32, i32) {
    %c0_i32 = arith.constant 0 : i32
    %c0_i32_0 = arith.constant 0 : i32
    return %arg0, %c0_i32 : i32, i32
  }
  func.func @transform_1(%arg0: i32) -> (i32, i32) {
    %c0_i32 = arith.constant 0 : i32
    %c0_i32_0 = arith.constant 0 : i32
    %c0_i32_1 = arith.constant 0 : i32
    return %c0_i32, %c0_i32_0 : i32, i32
  }
  func.func @transform_2(%arg0: i32) -> (i32, i32) {
    %c0_i32 = arith.constant 0 : i32
    %c0_i32_0 = arith.constant 0 : i32
    %c0_i32_1 = arith.constant 0 : i32
    return %c0_i32, %c0_i32_0 : i32, i32
  }
  func.func @transform_3(%arg0: i32) -> (i32, i32) {
    %c0_i32 = arith.constant 0 : i32
    %c0_i32_0 = arith.constant 0 : i32
    %c0_i32_1 = arith.constant 0 : i32
    return %c0_i32, %c0_i32_0 : i32, i32
  }
  func.func @transform_4(%arg0: i32) -> (i32, i32) {
    %c0_i32 = arith.constant 0 : i32
    %c0_i32_0 = arith.constant 0 : i32
    %c0_i32_1 = arith.constant 0 : i32
    return %c0_i32, %c0_i32_0 : i32, i32
  }
  func.func @transform_5(%arg0: i32) -> (i32, i32) {
    %c0_i32 = arith.constant 0 : i32
    %c0_i32_0 = arith.constant 0 : i32
    %c0_i32_1 = arith.constant 0 : i32
    return %c0_i32, %c0_i32_0 : i32, i32
  }
  func.func @transform_6(%arg0: i32) -> (i32, i32) {
    %c0_i32 = arith.constant 0 : i32
    %c0_i32_0 = arith.constant 0 : i32
    %c0_i32_1 = arith.constant 0 : i32
    return %c0_i32, %c0_i32_0 : i32, i32
  }
  func.func @transform_7(%arg0: i32) -> (i32, i32) {
    %c0_i32 = arith.constant 0 : i32
    %c0_i32_0 = arith.constant 0 : i32
    return %arg0, %c0_i32 : i32, i32
  }
  func.func @transform_8(%arg0: i32) -> (i32, i32) {
    %c0_i32 = arith.constant 0 : i32
    %c0_i32_0 = arith.constant 0 : i32
    return %arg0, %c0_i32 : i32, i32
  }
}

module attributes {stable_mosaic.version = 11 : i64} {
  func.func @_dwconv3x3_kernel(%arg0: i32, %arg1: memref<1x8x8x16xf32, #tpu.memory_space<vmem>>, %arg2: memref<9x16xf32, #tpu.memory_space<vmem>>, %arg3: memref<1x16xf32, #tpu.memory_space<vmem>>, %arg4: memref<1x8x8x16xf32, #tpu.memory_space<vmem>>, %arg5: memref<10x10x16xf32, #tpu.memory_space<vmem>>) attributes {dimension_semantics = [#tpu.dimension_semantics<parallel>], iteration_bounds = array<i64: 2>, scalar_prefetch = 0 : i64, scratch_operands = 1 : i64, tpu.core_type = #tpu.core_type<tc>, window_params = [{transform_indices = @transform_0, window_bounds = array<i64: 1, 8, 8, 16>}, {pipeline_mode = #tpu.pipeline_mode<synchronous>, transform_indices = @transform_1, window_bounds = array<i64: 9, 16>}, {pipeline_mode = #tpu.pipeline_mode<synchronous>, transform_indices = @transform_2, window_bounds = array<i64: 1, 16>}, {transform_indices = @transform_3, window_bounds = array<i64: 1, 8, 8, 16>}]} {
    %c0 = arith.constant 0 : index
    %c0_0 = arith.constant 0 : index
    %c0_1 = arith.constant 0 : index
    %c0_2 = arith.constant 0 : index
    %0 = vector.load %arg1[%c0, %c0_0, %c0_1, %c0_2] : memref<1x8x8x16xf32, #tpu.memory_space<vmem>>, vector<1x8x8x16xf32>
    %1 = vector.shape_cast %0 : vector<1x8x8x16xf32> to vector<8x8x16xf32>
    %cst = arith.constant 0.000000e+00 : f32
    %2 = vector.broadcast %cst : f32 to vector<10x10x16xf32>
    %c0_3 = arith.constant 0 : index
    %c0_4 = arith.constant 0 : index
    %c0_5 = arith.constant 0 : index
    %3 = vector.load %arg5[%c0_3, %c0_4, %c0_5] : memref<10x10x16xf32, #tpu.memory_space<vmem>>, vector<10x10x16xf32>
    tpu.vector_store %arg5[%c0_3, %c0_4, %c0_5], %2 {strides = array<i32>} : memref<10x10x16xf32, #tpu.memory_space<vmem>>, vector<10x10x16xf32>,
    %c1 = arith.constant 1 : index
    %c1_6 = arith.constant 1 : index
    %c0_7 = arith.constant 0 : index
    %4 = vector.load %arg5[%c1, %c1_6, %c0_7] : memref<10x10x16xf32, #tpu.memory_space<vmem>>, vector<8x8x16xf32>
    tpu.vector_store %arg5[%c1, %c1_6, %c0_7], %1 {strides = array<i32>} : memref<10x10x16xf32, #tpu.memory_space<vmem>>, vector<8x8x16xf32>,
    %cst_8 = arith.constant 0.000000e+00 : f32
    %5 = vector.broadcast %cst_8 : f32 to vector<8x8x16xf32>
    %c0_9 = arith.constant 0 : index
    %c0_10 = arith.constant 0 : index
    %c0_11 = arith.constant 0 : index
    %6 = vector.load %arg5[%c0_9, %c0_10, %c0_11] : memref<10x10x16xf32, #tpu.memory_space<vmem>>, vector<8x8x16xf32>
    %c0_12 = arith.constant 0 : index
    %c0_13 = arith.constant 0 : index
    %7 = vector.load %arg2[%c0_12, %c0_13] : memref<9x16xf32, #tpu.memory_space<vmem>>, vector<1x16xf32>
    %8 = vector.shape_cast %7 : vector<1x16xf32> to vector<1x1x16xf32>
    %9 = vector.broadcast %8 : vector<1x1x16xf32> to vector<8x8x16xf32>
    %10 = arith.mulf %6, %9 : vector<8x8x16xf32>
    %11 = arith.addf %5, %10 : vector<8x8x16xf32>
    %c0_14 = arith.constant 0 : index
    %c1_15 = arith.constant 1 : index
    %c0_16 = arith.constant 0 : index
    %12 = vector.load %arg5[%c0_14, %c1_15, %c0_16] : memref<10x10x16xf32, #tpu.memory_space<vmem>>, vector<8x8x16xf32>
    %c1_17 = arith.constant 1 : index
    %c0_18 = arith.constant 0 : index
    %13 = vector.load %arg2[%c1_17, %c0_18] : memref<9x16xf32, #tpu.memory_space<vmem>>, vector<1x16xf32>
    %14 = vector.shape_cast %13 : vector<1x16xf32> to vector<1x1x16xf32>
    %15 = vector.broadcast %14 : vector<1x1x16xf32> to vector<8x8x16xf32>
    %16 = arith.mulf %12, %15 : vector<8x8x16xf32>
    %17 = arith.addf %11, %16 : vector<8x8x16xf32>
    %c0_19 = arith.constant 0 : index
    %c2 = arith.constant 2 : index
    %c0_20 = arith.constant 0 : index
    %18 = vector.load %arg5[%c0_19, %c2, %c0_20] : memref<10x10x16xf32, #tpu.memory_space<vmem>>, vector<8x8x16xf32>
    %c2_21 = arith.constant 2 : index
    %c0_22 = arith.constant 0 : index
    %19 = vector.load %arg2[%c2_21, %c0_22] : memref<9x16xf32, #tpu.memory_space<vmem>>, vector<1x16xf32>
    %20 = vector.shape_cast %19 : vector<1x16xf32> to vector<1x1x16xf32>
    %21 = vector.broadcast %20 : vector<1x1x16xf32> to vector<8x8x16xf32>
    %22 = arith.mulf %18, %21 : vector<8x8x16xf32>
    %23 = arith.addf %17, %22 : vector<8x8x16xf32>
    %c1_23 = arith.constant 1 : index
    %c0_24 = arith.constant 0 : index
    %c0_25 = arith.constant 0 : index
    %24 = vector.load %arg5[%c1_23, %c0_24, %c0_25] : memref<10x10x16xf32, #tpu.memory_space<vmem>>, vector<8x8x16xf32>
    %c3 = arith.constant 3 : index
    %c0_26 = arith.constant 0 : index
    %25 = vector.load %arg2[%c3, %c0_26] : memref<9x16xf32, #tpu.memory_space<vmem>>, vector<1x16xf32>
    %26 = vector.shape_cast %25 : vector<1x16xf32> to vector<1x1x16xf32>
    %27 = vector.broadcast %26 : vector<1x1x16xf32> to vector<8x8x16xf32>
    %28 = arith.mulf %24, %27 : vector<8x8x16xf32>
    %29 = arith.addf %23, %28 : vector<8x8x16xf32>
    %c1_27 = arith.constant 1 : index
    %c1_28 = arith.constant 1 : index
    %c0_29 = arith.constant 0 : index
    %30 = vector.load %arg5[%c1_27, %c1_28, %c0_29] : memref<10x10x16xf32, #tpu.memory_space<vmem>>, vector<8x8x16xf32>
    %c4 = arith.constant 4 : index
    %c0_30 = arith.constant 0 : index
    %31 = vector.load %arg2[%c4, %c0_30] : memref<9x16xf32, #tpu.memory_space<vmem>>, vector<1x16xf32>
    %32 = vector.shape_cast %31 : vector<1x16xf32> to vector<1x1x16xf32>
    %33 = vector.broadcast %32 : vector<1x1x16xf32> to vector<8x8x16xf32>
    %34 = arith.mulf %30, %33 : vector<8x8x16xf32>
    %35 = arith.addf %29, %34 : vector<8x8x16xf32>
    %c1_31 = arith.constant 1 : index
    %c2_32 = arith.constant 2 : index
    %c0_33 = arith.constant 0 : index
    %36 = vector.load %arg5[%c1_31, %c2_32, %c0_33] : memref<10x10x16xf32, #tpu.memory_space<vmem>>, vector<8x8x16xf32>
    %c5 = arith.constant 5 : index
    %c0_34 = arith.constant 0 : index
    %37 = vector.load %arg2[%c5, %c0_34] : memref<9x16xf32, #tpu.memory_space<vmem>>, vector<1x16xf32>
    %38 = vector.shape_cast %37 : vector<1x16xf32> to vector<1x1x16xf32>
    %39 = vector.broadcast %38 : vector<1x1x16xf32> to vector<8x8x16xf32>
    %40 = arith.mulf %36, %39 : vector<8x8x16xf32>
    %41 = arith.addf %35, %40 : vector<8x8x16xf32>
    %c2_35 = arith.constant 2 : index
    %c0_36 = arith.constant 0 : index
    %c0_37 = arith.constant 0 : index
    %42 = vector.load %arg5[%c2_35, %c0_36, %c0_37] : memref<10x10x16xf32, #tpu.memory_space<vmem>>, vector<8x8x16xf32>
    %c6 = arith.constant 6 : index
    %c0_38 = arith.constant 0 : index
    %43 = vector.load %arg2[%c6, %c0_38] : memref<9x16xf32, #tpu.memory_space<vmem>>, vector<1x16xf32>
    %44 = vector.shape_cast %43 : vector<1x16xf32> to vector<1x1x16xf32>
    %45 = vector.broadcast %44 : vector<1x1x16xf32> to vector<8x8x16xf32>
    %46 = arith.mulf %42, %45 : vector<8x8x16xf32>
    %47 = arith.addf %41, %46 : vector<8x8x16xf32>
    %c2_39 = arith.constant 2 : index
    %c1_40 = arith.constant 1 : index
    %c0_41 = arith.constant 0 : index
    %48 = vector.load %arg5[%c2_39, %c1_40, %c0_41] : memref<10x10x16xf32, #tpu.memory_space<vmem>>, vector<8x8x16xf32>
    %c7 = arith.constant 7 : index
    %c0_42 = arith.constant 0 : index
    %49 = vector.load %arg2[%c7, %c0_42] : memref<9x16xf32, #tpu.memory_space<vmem>>, vector<1x16xf32>
    %50 = vector.shape_cast %49 : vector<1x16xf32> to vector<1x1x16xf32>
    %51 = vector.broadcast %50 : vector<1x1x16xf32> to vector<8x8x16xf32>
    %52 = arith.mulf %48, %51 : vector<8x8x16xf32>
    %53 = arith.addf %47, %52 : vector<8x8x16xf32>
    %c2_43 = arith.constant 2 : index
    %c2_44 = arith.constant 2 : index
    %c0_45 = arith.constant 0 : index
    %54 = vector.load %arg5[%c2_43, %c2_44, %c0_45] : memref<10x10x16xf32, #tpu.memory_space<vmem>>, vector<8x8x16xf32>
    %c8 = arith.constant 8 : index
    %c0_46 = arith.constant 0 : index
    %55 = vector.load %arg2[%c8, %c0_46] : memref<9x16xf32, #tpu.memory_space<vmem>>, vector<1x16xf32>
    %56 = vector.shape_cast %55 : vector<1x16xf32> to vector<1x1x16xf32>
    %57 = vector.broadcast %56 : vector<1x1x16xf32> to vector<8x8x16xf32>
    %58 = arith.mulf %54, %57 : vector<8x8x16xf32>
    %59 = arith.addf %53, %58 : vector<8x8x16xf32>
    %c0_47 = arith.constant 0 : index
    %c0_48 = arith.constant 0 : index
    %60 = vector.load %arg3[%c0_47, %c0_48] : memref<1x16xf32, #tpu.memory_space<vmem>>, vector<1x16xf32>
    %61 = vector.shape_cast %60 : vector<1x16xf32> to vector<1x1x16xf32>
    %62 = vector.broadcast %61 : vector<1x1x16xf32> to vector<8x8x16xf32>
    %63 = arith.addf %59, %62 : vector<8x8x16xf32>
    %64 = arith.addf %63, %1 : vector<8x8x16xf32>
    %c0_49 = arith.constant 0 : index
    %c0_50 = arith.constant 0 : index
    %c0_51 = arith.constant 0 : index
    %c0_52 = arith.constant 0 : index
    %65 = vector.load %arg4[%c0_49, %c0_50, %c0_51, %c0_52] : memref<1x8x8x16xf32, #tpu.memory_space<vmem>>, vector<1x8x8x16xf32>
    %66 = vector.shape_cast %65 : vector<1x8x8x16xf32> to vector<8x8x16xf32>
    %67 = vector.shape_cast %64 : vector<8x8x16xf32> to vector<1x8x8x16xf32>
    tpu.vector_store %arg4[%c0_49, %c0_50, %c0_51, %c0_52], %67 {strides = array<i32>} : memref<1x8x8x16xf32, #tpu.memory_space<vmem>>, vector<1x8x8x16xf32>,
    return
  }
  func.func @transform_0(%arg0: i32) -> (i32, i32, i32, i32) {
    %c0_i32 = arith.constant 0 : i32
    %c0_i32_0 = arith.constant 0 : i32
    %c0_i32_1 = arith.constant 0 : i32
    %c0_i32_2 = arith.constant 0 : i32
    return %arg0, %c0_i32, %c0_i32_0, %c0_i32_1 : i32, i32, i32, i32
  }
  func.func @transform_1(%arg0: i32) -> (i32, i32) {
    %c0_i32 = arith.constant 0 : i32
    %c0_i32_0 = arith.constant 0 : i32
    %c0_i32_1 = arith.constant 0 : i32
    return %c0_i32, %c0_i32_0 : i32, i32
  }
  func.func @transform_2(%arg0: i32) -> (i32, i32) {
    %c0_i32 = arith.constant 0 : i32
    %c0_i32_0 = arith.constant 0 : i32
    %c0_i32_1 = arith.constant 0 : i32
    return %c0_i32, %c0_i32_0 : i32, i32
  }
  func.func @transform_3(%arg0: i32) -> (i32, i32, i32, i32) {
    %c0_i32 = arith.constant 0 : i32
    %c0_i32_0 = arith.constant 0 : i32
    %c0_i32_1 = arith.constant 0 : i32
    %c0_i32_2 = arith.constant 0 : i32
    return %arg0, %c0_i32, %c0_i32_0, %c0_i32_1 : i32, i32, i32, i32
  }
}

module attributes {stable_mosaic.version = 11 : i64} {
  func.func @_dwconv3x3_kernel(%arg0: i32, %arg1: memref<1x8x8x16xf32, #tpu.memory_space<vmem>>, %arg2: memref<9x16xf32, #tpu.memory_space<vmem>>, %arg3: memref<1x16xf32, #tpu.memory_space<vmem>>, %arg4: memref<1x8x8x16xf32, #tpu.memory_space<vmem>>, %arg5: memref<10x10x16xf32, #tpu.memory_space<vmem>>) attributes {dimension_semantics = [#tpu.dimension_semantics<parallel>], iteration_bounds = array<i64: 2>, scalar_prefetch = 0 : i64, scratch_operands = 1 : i64, tpu.core_type = #tpu.core_type<tc>, window_params = [{transform_indices = @transform_0, window_bounds = array<i64: 1, 8, 8, 16>}, {pipeline_mode = #tpu.pipeline_mode<synchronous>, transform_indices = @transform_1, window_bounds = array<i64: 9, 16>}, {pipeline_mode = #tpu.pipeline_mode<synchronous>, transform_indices = @transform_2, window_bounds = array<i64: 1, 16>}, {transform_indices = @transform_3, window_bounds = array<i64: 1, 8, 8, 16>}]} {
    %c0 = arith.constant 0 : index
    %c0_0 = arith.constant 0 : index
    %c0_1 = arith.constant 0 : index
    %c0_2 = arith.constant 0 : index
    %0 = vector.load %arg1[%c0, %c0_0, %c0_1, %c0_2] : memref<1x8x8x16xf32, #tpu.memory_space<vmem>>, vector<1x8x8x16xf32>
    %1 = vector.shape_cast %0 : vector<1x8x8x16xf32> to vector<8x8x16xf32>
    %cst = arith.constant 0.000000e+00 : f32
    %2 = vector.broadcast %cst : f32 to vector<10x10x16xf32>
    %c0_3 = arith.constant 0 : index
    %c0_4 = arith.constant 0 : index
    %c0_5 = arith.constant 0 : index
    %3 = vector.load %arg5[%c0_3, %c0_4, %c0_5] : memref<10x10x16xf32, #tpu.memory_space<vmem>>, vector<10x10x16xf32>
    tpu.vector_store %arg5[%c0_3, %c0_4, %c0_5], %2 {strides = array<i32>} : memref<10x10x16xf32, #tpu.memory_space<vmem>>, vector<10x10x16xf32>,
    %c1 = arith.constant 1 : index
    %c1_6 = arith.constant 1 : index
    %c0_7 = arith.constant 0 : index
    %4 = vector.load %arg5[%c1, %c1_6, %c0_7] : memref<10x10x16xf32, #tpu.memory_space<vmem>>, vector<8x8x16xf32>
    tpu.vector_store %arg5[%c1, %c1_6, %c0_7], %1 {strides = array<i32>} : memref<10x10x16xf32, #tpu.memory_space<vmem>>, vector<8x8x16xf32>,
    %cst_8 = arith.constant 0.000000e+00 : f32
    %5 = vector.broadcast %cst_8 : f32 to vector<8x8x16xf32>
    %c0_9 = arith.constant 0 : index
    %c0_10 = arith.constant 0 : index
    %c0_11 = arith.constant 0 : index
    %6 = vector.load %arg5[%c0_9, %c0_10, %c0_11] : memref<10x10x16xf32, #tpu.memory_space<vmem>>, vector<8x8x16xf32>
    %c0_12 = arith.constant 0 : index
    %c0_13 = arith.constant 0 : index
    %7 = vector.load %arg2[%c0_12, %c0_13] : memref<9x16xf32, #tpu.memory_space<vmem>>, vector<1x16xf32>
    %8 = vector.shape_cast %7 : vector<1x16xf32> to vector<1x1x16xf32>
    %9 = vector.broadcast %8 : vector<1x1x16xf32> to vector<8x8x16xf32>
    %10 = arith.mulf %6, %9 : vector<8x8x16xf32>
    %11 = arith.addf %5, %10 : vector<8x8x16xf32>
    %c0_14 = arith.constant 0 : index
    %c1_15 = arith.constant 1 : index
    %c0_16 = arith.constant 0 : index
    %12 = vector.load %arg5[%c0_14, %c1_15, %c0_16] : memref<10x10x16xf32, #tpu.memory_space<vmem>>, vector<8x8x16xf32>
    %c1_17 = arith.constant 1 : index
    %c0_18 = arith.constant 0 : index
    %13 = vector.load %arg2[%c1_17, %c0_18] : memref<9x16xf32, #tpu.memory_space<vmem>>, vector<1x16xf32>
    %14 = vector.shape_cast %13 : vector<1x16xf32> to vector<1x1x16xf32>
    %15 = vector.broadcast %14 : vector<1x1x16xf32> to vector<8x8x16xf32>
    %16 = arith.mulf %12, %15 : vector<8x8x16xf32>
    %17 = arith.addf %11, %16 : vector<8x8x16xf32>
    %c0_19 = arith.constant 0 : index
    %c2 = arith.constant 2 : index
    %c0_20 = arith.constant 0 : index
    %18 = vector.load %arg5[%c0_19, %c2, %c0_20] : memref<10x10x16xf32, #tpu.memory_space<vmem>>, vector<8x8x16xf32>
    %c2_21 = arith.constant 2 : index
    %c0_22 = arith.constant 0 : index
    %19 = vector.load %arg2[%c2_21, %c0_22] : memref<9x16xf32, #tpu.memory_space<vmem>>, vector<1x16xf32>
    %20 = vector.shape_cast %19 : vector<1x16xf32> to vector<1x1x16xf32>
    %21 = vector.broadcast %20 : vector<1x1x16xf32> to vector<8x8x16xf32>
    %22 = arith.mulf %18, %21 : vector<8x8x16xf32>
    %23 = arith.addf %17, %22 : vector<8x8x16xf32>
    %c1_23 = arith.constant 1 : index
    %c0_24 = arith.constant 0 : index
    %c0_25 = arith.constant 0 : index
    %24 = vector.load %arg5[%c1_23, %c0_24, %c0_25] : memref<10x10x16xf32, #tpu.memory_space<vmem>>, vector<8x8x16xf32>
    %c3 = arith.constant 3 : index
    %c0_26 = arith.constant 0 : index
    %25 = vector.load %arg2[%c3, %c0_26] : memref<9x16xf32, #tpu.memory_space<vmem>>, vector<1x16xf32>
    %26 = vector.shape_cast %25 : vector<1x16xf32> to vector<1x1x16xf32>
    %27 = vector.broadcast %26 : vector<1x1x16xf32> to vector<8x8x16xf32>
    %28 = arith.mulf %24, %27 : vector<8x8x16xf32>
    %29 = arith.addf %23, %28 : vector<8x8x16xf32>
    %c1_27 = arith.constant 1 : index
    %c1_28 = arith.constant 1 : index
    %c0_29 = arith.constant 0 : index
    %30 = vector.load %arg5[%c1_27, %c1_28, %c0_29] : memref<10x10x16xf32, #tpu.memory_space<vmem>>, vector<8x8x16xf32>
    %c4 = arith.constant 4 : index
    %c0_30 = arith.constant 0 : index
    %31 = vector.load %arg2[%c4, %c0_30] : memref<9x16xf32, #tpu.memory_space<vmem>>, vector<1x16xf32>
    %32 = vector.shape_cast %31 : vector<1x16xf32> to vector<1x1x16xf32>
    %33 = vector.broadcast %32 : vector<1x1x16xf32> to vector<8x8x16xf32>
    %34 = arith.mulf %30, %33 : vector<8x8x16xf32>
    %35 = arith.addf %29, %34 : vector<8x8x16xf32>
    %c1_31 = arith.constant 1 : index
    %c2_32 = arith.constant 2 : index
    %c0_33 = arith.constant 0 : index
    %36 = vector.load %arg5[%c1_31, %c2_32, %c0_33] : memref<10x10x16xf32, #tpu.memory_space<vmem>>, vector<8x8x16xf32>
    %c5 = arith.constant 5 : index
    %c0_34 = arith.constant 0 : index
    %37 = vector.load %arg2[%c5, %c0_34] : memref<9x16xf32, #tpu.memory_space<vmem>>, vector<1x16xf32>
    %38 = vector.shape_cast %37 : vector<1x16xf32> to vector<1x1x16xf32>
    %39 = vector.broadcast %38 : vector<1x1x16xf32> to vector<8x8x16xf32>
    %40 = arith.mulf %36, %39 : vector<8x8x16xf32>
    %41 = arith.addf %35, %40 : vector<8x8x16xf32>
    %c2_35 = arith.constant 2 : index
    %c0_36 = arith.constant 0 : index
    %c0_37 = arith.constant 0 : index
    %42 = vector.load %arg5[%c2_35, %c0_36, %c0_37] : memref<10x10x16xf32, #tpu.memory_space<vmem>>, vector<8x8x16xf32>
    %c6 = arith.constant 6 : index
    %c0_38 = arith.constant 0 : index
    %43 = vector.load %arg2[%c6, %c0_38] : memref<9x16xf32, #tpu.memory_space<vmem>>, vector<1x16xf32>
    %44 = vector.shape_cast %43 : vector<1x16xf32> to vector<1x1x16xf32>
    %45 = vector.broadcast %44 : vector<1x1x16xf32> to vector<8x8x16xf32>
    %46 = arith.mulf %42, %45 : vector<8x8x16xf32>
    %47 = arith.addf %41, %46 : vector<8x8x16xf32>
    %c2_39 = arith.constant 2 : index
    %c1_40 = arith.constant 1 : index
    %c0_41 = arith.constant 0 : index
    %48 = vector.load %arg5[%c2_39, %c1_40, %c0_41] : memref<10x10x16xf32, #tpu.memory_space<vmem>>, vector<8x8x16xf32>
    %c7 = arith.constant 7 : index
    %c0_42 = arith.constant 0 : index
    %49 = vector.load %arg2[%c7, %c0_42] : memref<9x16xf32, #tpu.memory_space<vmem>>, vector<1x16xf32>
    %50 = vector.shape_cast %49 : vector<1x16xf32> to vector<1x1x16xf32>
    %51 = vector.broadcast %50 : vector<1x1x16xf32> to vector<8x8x16xf32>
    %52 = arith.mulf %48, %51 : vector<8x8x16xf32>
    %53 = arith.addf %47, %52 : vector<8x8x16xf32>
    %c2_43 = arith.constant 2 : index
    %c2_44 = arith.constant 2 : index
    %c0_45 = arith.constant 0 : index
    %54 = vector.load %arg5[%c2_43, %c2_44, %c0_45] : memref<10x10x16xf32, #tpu.memory_space<vmem>>, vector<8x8x16xf32>
    %c8 = arith.constant 8 : index
    %c0_46 = arith.constant 0 : index
    %55 = vector.load %arg2[%c8, %c0_46] : memref<9x16xf32, #tpu.memory_space<vmem>>, vector<1x16xf32>
    %56 = vector.shape_cast %55 : vector<1x16xf32> to vector<1x1x16xf32>
    %57 = vector.broadcast %56 : vector<1x1x16xf32> to vector<8x8x16xf32>
    %58 = arith.mulf %54, %57 : vector<8x8x16xf32>
    %59 = arith.addf %53, %58 : vector<8x8x16xf32>
    %c0_47 = arith.constant 0 : index
    %c0_48 = arith.constant 0 : index
    %60 = vector.load %arg3[%c0_47, %c0_48] : memref<1x16xf32, #tpu.memory_space<vmem>>, vector<1x16xf32>
    %61 = vector.shape_cast %60 : vector<1x16xf32> to vector<1x1x16xf32>
    %62 = vector.broadcast %61 : vector<1x1x16xf32> to vector<8x8x16xf32>
    %63 = arith.addf %59, %62 : vector<8x8x16xf32>
    %64 = arith.negf %63 : vector<8x8x16xf32>
    %65 = math.exp %64 : vector<8x8x16xf32>
    %cst_49 = arith.constant 1.000000e+00 : f32
    %66 = vector.broadcast %cst_49 : f32 to vector<8x8x16xf32>
    %67 = arith.addf %66, %65 : vector<8x8x16xf32>
    %68 = arith.divf %66, %67 : vector<8x8x16xf32>
    %69 = arith.mulf %63, %68 : vector<8x8x16xf32>
    %c0_50 = arith.constant 0 : index
    %c0_51 = arith.constant 0 : index
    %c0_52 = arith.constant 0 : index
    %c0_53 = arith.constant 0 : index
    %70 = vector.load %arg4[%c0_50, %c0_51, %c0_52, %c0_53] : memref<1x8x8x16xf32, #tpu.memory_space<vmem>>, vector<1x8x8x16xf32>
    %71 = vector.shape_cast %70 : vector<1x8x8x16xf32> to vector<8x8x16xf32>
    %72 = vector.shape_cast %69 : vector<8x8x16xf32> to vector<1x8x8x16xf32>
    tpu.vector_store %arg4[%c0_50, %c0_51, %c0_52, %c0_53], %72 {strides = array<i32>} : memref<1x8x8x16xf32, #tpu.memory_space<vmem>>, vector<1x8x8x16xf32>,
    return
  }
  func.func @transform_0(%arg0: i32) -> (i32, i32, i32, i32) {
    %c0_i32 = arith.constant 0 : i32
    %c0_i32_0 = arith.constant 0 : i32
    %c0_i32_1 = arith.constant 0 : i32
    %c0_i32_2 = arith.constant 0 : i32
    return %arg0, %c0_i32, %c0_i32_0, %c0_i32_1 : i32, i32, i32, i32
  }
  func.func @transform_1(%arg0: i32) -> (i32, i32) {
    %c0_i32 = arith.constant 0 : i32
    %c0_i32_0 = arith.constant 0 : i32
    %c0_i32_1 = arith.constant 0 : i32
    return %c0_i32, %c0_i32_0 : i32, i32
  }
  func.func @transform_2(%arg0: i32) -> (i32, i32) {
    %c0_i32 = arith.constant 0 : i32
    %c0_i32_0 = arith.constant 0 : i32
    %c0_i32_1 = arith.constant 0 : i32
    return %c0_i32, %c0_i32_0 : i32, i32
  }
  func.func @transform_3(%arg0: i32) -> (i32, i32, i32, i32) {
    %c0_i32 = arith.constant 0 : i32
    %c0_i32_0 = arith.constant 0 : i32
    %c0_i32_1 = arith.constant 0 : i32
    %c0_i32_2 = arith.constant 0 : i32
    return %arg0, %c0_i32, %c0_i32_0, %c0_i32_1 : i32, i32, i32, i32
  }
}

module attributes {stable_mosaic.version = 11 : i64} {
  func.func @_linear_kernel(%arg0: i32, %arg1: memref<64x16xf32, #tpu.memory_space<vmem>>, %arg2: memref<16x32xf32, #tpu.memory_space<vmem>>, %arg3: memref<1x32xf32, #tpu.memory_space<vmem>>, %arg4: memref<64x32xf32, #tpu.memory_space<vmem>>) attributes {dimension_semantics = [#tpu.dimension_semantics<parallel>], iteration_bounds = array<i64: 2>, scalar_prefetch = 0 : i64, scratch_operands = 0 : i64, tpu.core_type = #tpu.core_type<tc>, window_params = [{transform_indices = @transform_0, window_bounds = array<i64: 64, 16>}, {pipeline_mode = #tpu.pipeline_mode<synchronous>, transform_indices = @transform_1, window_bounds = array<i64: 16, 32>}, {pipeline_mode = #tpu.pipeline_mode<synchronous>, transform_indices = @transform_2, window_bounds = array<i64: 1, 32>}, {transform_indices = @transform_3, window_bounds = array<i64: 64, 32>}]} {
    %c0 = arith.constant 0 : index
    %c0_0 = arith.constant 0 : index
    %0 = vector.load %arg1[%c0, %c0_0] : memref<64x16xf32, #tpu.memory_space<vmem>>, vector<64x16xf32>
    %c0_1 = arith.constant 0 : index
    %c0_2 = arith.constant 0 : index
    %1 = vector.load %arg2[%c0_1, %c0_2] : memref<16x32xf32, #tpu.memory_space<vmem>>, vector<16x32xf32>
    %cst = arith.constant dense<0.000000e+00> : vector<64x32xf32>
    %2 = tpu.matmul %0, %1, %cst {dimension_numbers = #tpu.dot_dimension_numbers<[1], [0], [0], [1], [0, 0, 1, 1], [], []>} : vector<64x16xf32>, vector<16x32xf32>, vector<64x32xf32> -> vector<64x32xf32>
    %c0_3 = arith.constant 0 : index
    %c0_4 = arith.constant 0 : index
    %3 = vector.load %arg3[%c0_3, %c0_4] : memref<1x32xf32, #tpu.memory_space<vmem>>, vector<1x32xf32>
    %4 = vector.broadcast %3 : vector<1x32xf32> to vector<64x32xf32>
    %5 = arith.addf %2, %4 : vector<64x32xf32>
    %cst_5 = arith.constant 0.000000e+00 : f32
    %6 = vector.broadcast %cst_5 : f32 to vector<64x32xf32>
    %7 = arith.cmpf ogt, %5, %6 : vector<64x32xf32>
    %cst_6 = arith.constant 1.000000e+00 : f32
    %8 = vector.broadcast %cst_6 : f32 to vector<64x32xf32>
    %9 = arith.addf %5, %8 : vector<64x32xf32>
    %10 = math.exp %5 : vector<64x32xf32>
    %11 = arith.select %7, %9, %10 : vector<64x32xi1>, vector<64x32xf32>
    %c0_7 = arith.constant 0 : index
    %c0_8 = arith.constant 0 : index
    %12 = vector.load %arg4[%c0_7, %c0_8] : memref<64x32xf32, #tpu.memory_space<vmem>>, vector<64x32xf32>
    tpu.vector_store %arg4[%c0_7, %c0_8], %11 {strides = array<i32>} : memref<64x32xf32, #tpu.memory_space<vmem>>, vector<64x32xf32>,
    return
  }
  func.func @transform_0(%arg0: i32) -> (i32, i32) {
    %c0_i32 = arith.constant 0 : i32
    %c0_i32_0 = arith.constant 0 : i32
    return %arg0, %c0_i32 : i32, i32
  }
  func.func @transform_1(%arg0: i32) -> (i32, i32) {
    %c0_i32 = arith.constant 0 : i32
    %c0_i32_0 = arith.constant 0 : i32
    %c0_i32_1 = arith.constant 0 : i32
    return %c0_i32, %c0_i32_0 : i32, i32
  }
  func.func @transform_2(%arg0: i32) -> (i32, i32) {
    %c0_i32 = arith.constant 0 : i32
    %c0_i32_0 = arith.constant 0 : i32
    %c0_i32_1 = arith.constant 0 : i32
    return %c0_i32, %c0_i32_0 : i32, i32
  }
  func.func @transform_3(%arg0: i32) -> (i32, i32) {
    %c0_i32 = arith.constant 0 : i32
    %c0_i32_0 = arith.constant 0 : i32
    return %arg0, %c0_i32 : i32, i32
  }
}

module attributes {stable_mosaic.version = 11 : i64} {
  func.func @_linear_attn_kernel(%arg0: i32, %arg1: i32, %arg2: memref<1x1x64x4xf32, #tpu.memory_space<vmem>>, %arg3: memref<1x1x64x4xf32, #tpu.memory_space<vmem>>, %arg4: memref<1x1x64x4xf32, #tpu.memory_space<vmem>>, %arg5: memref<1x1x64x4xf32, #tpu.memory_space<vmem>>, %arg6: memref<1x1x64x4xf32, #tpu.memory_space<vmem>>, %arg7: memref<1x1x64x4xf32, #tpu.memory_space<vmem>>) attributes {dimension_semantics = [#tpu.dimension_semantics<parallel>, #tpu.dimension_semantics<parallel>], iteration_bounds = array<i64: 2, 4>, scalar_prefetch = 0 : i64, scratch_operands = 0 : i64, tpu.core_type = #tpu.core_type<tc>, window_params = [{transform_indices = @transform_0, window_bounds = array<i64: 1, 1, 64, 4>}, {transform_indices = @transform_1, window_bounds = array<i64: 1, 1, 64, 4>}, {transform_indices = @transform_2, window_bounds = array<i64: 1, 1, 64, 4>}, {transform_indices = @transform_3, window_bounds = array<i64: 1, 1, 64, 4>}, {transform_indices = @transform_4, window_bounds = array<i64: 1, 1, 64, 4>}, {transform_indices = @transform_5, window_bounds = array<i64: 1, 1, 64, 4>}]} {
    %c0 = arith.constant 0 : index
    %c0_0 = arith.constant 0 : index
    %c0_1 = arith.constant 0 : index
    %c0_2 = arith.constant 0 : index
    %0 = vector.load %arg2[%c0, %c0_0, %c0_1, %c0_2] : memref<1x1x64x4xf32, #tpu.memory_space<vmem>>, vector<1x1x64x4xf32>
    %1 = vector.shape_cast %0 : vector<1x1x64x4xf32> to vector<64x4xf32>
    %c0_3 = arith.constant 0 : index
    %c0_4 = arith.constant 0 : index
    %c0_5 = arith.constant 0 : index
    %c0_6 = arith.constant 0 : index
    %2 = vector.load %arg3[%c0_3, %c0_4, %c0_5, %c0_6] : memref<1x1x64x4xf32, #tpu.memory_space<vmem>>, vector<1x1x64x4xf32>
    %3 = vector.shape_cast %2 : vector<1x1x64x4xf32> to vector<64x4xf32>
    %c0_7 = arith.constant 0 : index
    %c0_8 = arith.constant 0 : index
    %c0_9 = arith.constant 0 : index
    %c0_10 = arith.constant 0 : index
    %4 = vector.load %arg4[%c0_7, %c0_8, %c0_9, %c0_10] : memref<1x1x64x4xf32, #tpu.memory_space<vmem>>, vector<1x1x64x4xf32>
    %5 = vector.shape_cast %4 : vector<1x1x64x4xf32> to vector<64x4xf32>
    %c0_11 = arith.constant 0 : index
    %c0_12 = arith.constant 0 : index
    %c0_13 = arith.constant 0 : index
    %c0_14 = arith.constant 0 : index
    %6 = vector.load %arg5[%c0_11, %c0_12, %c0_13, %c0_14] : memref<1x1x64x4xf32, #tpu.memory_space<vmem>>, vector<1x1x64x4xf32>
    %7 = vector.shape_cast %6 : vector<1x1x64x4xf32> to vector<64x4xf32>
    %c0_15 = arith.constant 0 : index
    %c0_16 = arith.constant 0 : index
    %c0_17 = arith.constant 0 : index
    %c0_18 = arith.constant 0 : index
    %8 = vector.load %arg6[%c0_15, %c0_16, %c0_17, %c0_18] : memref<1x1x64x4xf32, #tpu.memory_space<vmem>>, vector<1x1x64x4xf32>
    %9 = vector.shape_cast %8 : vector<1x1x64x4xf32> to vector<64x4xf32>
    %cst = arith.constant dense<0.000000e+00> : vector<4xf32>
    %10 = vector.multi_reduction <add>, %3, %cst [0] : vector<64x4xf32> to vector<4xf32>
    %11 = vector.shape_cast %10 : vector<4xf32> to vector<1x4xf32>
    %cst_19 = arith.constant 6.400000e+01 : f32
    %12 = vector.broadcast %cst_19 : f32 to vector<1x4xf32>
    %13 = arith.divf %11, %12 : vector<1x4xf32>
    %14 = vector.broadcast %13 : vector<1x4xf32> to vector<64x4xf32>
    %15 = arith.mulf %1, %14 : vector<64x4xf32>
    %cst_20 = arith.constant dense<0.000000e+00> : vector<64xf32>
    %16 = vector.multi_reduction <add>, %15, %cst_20 [1] : vector<64x4xf32> to vector<64xf32>
    %17 = vector.shape_cast %16 : vector<64xf32> to vector<64x1xf32>
    %cst_21 = arith.constant 9.99999997E-7 : f32
    %18 = vector.broadcast %cst_21 : f32 to vector<64x1xf32>
    %19 = arith.addf %17, %18 : vector<64x1xf32>
    %20 = tpu.reciprocal %19 {approx = true} : vector<64x1xf32> -> vector<64x1xf32>
    %cst_22 = arith.constant dense<0.000000e+00> : vector<4x4xf32>
    %21 = tpu.matmul %9, %5, %cst_22 {dimension_numbers = #tpu.dot_dimension_numbers<[0], [0], [1], [1], [0, 1, 1, 1], [], []>} : vector<64x4xf32>, vector<64x4xf32>, vector<4x4xf32> -> vector<4x4xf32>
    %cst_23 = arith.constant 1.562500e-02 : f32
    %22 = vector.broadcast %cst_23 : f32 to vector<4x4xf32>
    %23 = arith.mulf %21, %22 : vector<4x4xf32>
    %cst_24 = arith.constant dense<0.000000e+00> : vector<64x4xf32>
    %24 = tpu.matmul %7, %23, %cst_24 {dimension_numbers = #tpu.dot_dimension_numbers<[1], [0], [0], [1], [0, 0, 1, 1], [], []>} : vector<64x4xf32>, vector<4x4xf32>, vector<64x4xf32> -> vector<64x4xf32>
    %25 = vector.broadcast %20 : vector<64x1xf32> to vector<64x4xf32>
    %26 = arith.mulf %24, %25 : vector<64x4xf32>
    %c0_25 = arith.constant 0 : index
    %c0_26 = arith.constant 0 : index
    %c0_27 = arith.constant 0 : index
    %c0_28 = arith.constant 0 : index
    %27 = vector.load %arg7[%c0_25, %c0_26, %c0_27, %c0_28] : memref<1x1x64x4xf32, #tpu.memory_space<vmem>>, vector<1x1x64x4xf32>
    %28 = vector.shape_cast %27 : vector<1x1x64x4xf32> to vector<64x4xf32>
    %29 = vector.shape_cast %26 : vector<64x4xf32> to vector<1x1x64x4xf32>
    tpu.vector_store %arg7[%c0_25, %c0_26, %c0_27, %c0_28], %29 {strides = array<i32>} : memref<1x1x64x4xf32, #tpu.memory_space<vmem>>, vector<1x1x64x4xf32>,
    return
  }
  func.func @transform_0(%arg0: i32, %arg1: i32) -> (i32, i32, i32, i32) {
    %c0_i32 = arith.constant 0 : i32
    %c0_i32_0 = arith.constant 0 : i32
    %c0_i32_1 = arith.constant 0 : i32
    return %arg0, %arg1, %c0_i32, %c0_i32_0 : i32, i32, i32, i32
  }
  func.func @transform_1(%arg0: i32, %arg1: i32) -> (i32, i32, i32, i32) {
    %c0_i32 = arith.constant 0 : i32
    %c0_i32_0 = arith.constant 0 : i32
    %c0_i32_1 = arith.constant 0 : i32
    return %arg0, %arg1, %c0_i32, %c0_i32_0 : i32, i32, i32, i32
  }
  func.func @transform_2(%arg0: i32, %arg1: i32) -> (i32, i32, i32, i32) {
    %c0_i32 = arith.constant 0 : i32
    %c0_i32_0 = arith.constant 0 : i32
    %c0_i32_1 = arith.constant 0 : i32
    return %arg0, %arg1, %c0_i32, %c0_i32_0 : i32, i32, i32, i32
  }
  func.func @transform_3(%arg0: i32, %arg1: i32) -> (i32, i32, i32, i32) {
    %c0_i32 = arith.constant 0 : i32
    %c0_i32_0 = arith.constant 0 : i32
    %c0_i32_1 = arith.constant 0 : i32
    return %arg0, %arg1, %c0_i32, %c0_i32_0 : i32, i32, i32, i32
  }
  func.func @transform_4(%arg0: i32, %arg1: i32) -> (i32, i32, i32, i32) {
    %c0_i32 = arith.constant 0 : i32
    %c0_i32_0 = arith.constant 0 : i32
    %c0_i32_1 = arith.constant 0 : i32
    return %arg0, %arg1, %c0_i32, %c0_i32_0 : i32, i32, i32, i32
  }
  func.func @transform_5(%arg0: i32, %arg1: i32) -> (i32, i32, i32, i32) {
    %c0_i32 = arith.constant 0 : i32
    %c0_i32_0 = arith.constant 0 : i32
    %c0_i32_1 = arith.constant 0 : i32
    return %arg0, %arg1, %c0_i32, %c0_i32_0 : i32, i32, i32, i32
  }
}

module attributes {stable_mosaic.version = 11 : i64} {
  func.func @_gated_out_proj_kernel(%arg0: i32, %arg1: memref<64x16xf32, #tpu.memory_space<vmem>>, %arg2: memref<64x16xf32, #tpu.memory_space<vmem>>, %arg3: memref<64x16xf32, #tpu.memory_space<vmem>>, %arg4: memref<64x16xf32, #tpu.memory_space<vmem>>, %arg5: memref<16x16xf32, #tpu.memory_space<vmem>>, %arg6: memref<1x16xf32, #tpu.memory_space<vmem>>, %arg7: memref<64x16xf32, #tpu.memory_space<vmem>>) attributes {dimension_semantics = [#tpu.dimension_semantics<parallel>], iteration_bounds = array<i64: 2>, scalar_prefetch = 0 : i64, scratch_operands = 0 : i64, tpu.core_type = #tpu.core_type<tc>, window_params = [{transform_indices = @transform_0, window_bounds = array<i64: 64, 16>}, {transform_indices = @transform_1, window_bounds = array<i64: 64, 16>}, {transform_indices = @transform_2, window_bounds = array<i64: 64, 16>}, {transform_indices = @transform_3, window_bounds = array<i64: 64, 16>}, {pipeline_mode = #tpu.pipeline_mode<synchronous>, transform_indices = @transform_4, window_bounds = array<i64: 16, 16>}, {pipeline_mode = #tpu.pipeline_mode<synchronous>, transform_indices = @transform_5, window_bounds = array<i64: 1, 16>}, {transform_indices = @transform_6, window_bounds = array<i64: 64, 16>}]} {
    %c0 = arith.constant 0 : index
    %c0_0 = arith.constant 0 : index
    %0 = vector.load %arg1[%c0, %c0_0] : memref<64x16xf32, #tpu.memory_space<vmem>>, vector<64x16xf32>
    %c0_1 = arith.constant 0 : index
    %c0_2 = arith.constant 0 : index
    %1 = vector.load %arg2[%c0_1, %c0_2] : memref<64x16xf32, #tpu.memory_space<vmem>>, vector<64x16xf32>
    %2 = arith.addf %0, %1 : vector<64x16xf32>
    %c0_3 = arith.constant 0 : index
    %c0_4 = arith.constant 0 : index
    %3 = vector.load %arg3[%c0_3, %c0_4] : memref<64x16xf32, #tpu.memory_space<vmem>>, vector<64x16xf32>
    %4 = arith.mulf %2, %3 : vector<64x16xf32>
    %c0_5 = arith.constant 0 : index
    %c0_6 = arith.constant 0 : index
    %5 = vector.load %arg5[%c0_5, %c0_6] : memref<16x16xf32, #tpu.memory_space<vmem>>, vector<16x16xf32>
    %cst = arith.constant dense<0.000000e+00> : vector<64x16xf32>
    %6 = tpu.matmul %4, %5, %cst {dimension_numbers = #tpu.dot_dimension_numbers<[1], [0], [0], [1], [0, 0, 1, 1], [], []>} : vector<64x16xf32>, vector<16x16xf32>, vector<64x16xf32> -> vector<64x16xf32>
    %c0_7 = arith.constant 0 : index
    %c0_8 = arith.constant 0 : index
    %7 = vector.load %arg6[%c0_7, %c0_8] : memref<1x16xf32, #tpu.memory_space<vmem>>, vector<1x16xf32>
    %8 = vector.broadcast %7 : vector<1x16xf32> to vector<64x16xf32>
    %9 = arith.addf %6, %8 : vector<64x16xf32>
    %c0_9 = arith.constant 0 : index
    %c0_10 = arith.constant 0 : index
    %10 = vector.load %arg4[%c0_9, %c0_10] : memref<64x16xf32, #tpu.memory_space<vmem>>, vector<64x16xf32>
    %11 = arith.addf %10, %9 : vector<64x16xf32>
    %c0_11 = arith.constant 0 : index
    %c0_12 = arith.constant 0 : index
    %12 = vector.load %arg7[%c0_11, %c0_12] : memref<64x16xf32, #tpu.memory_space<vmem>>, vector<64x16xf32>
    tpu.vector_store %arg7[%c0_11, %c0_12], %11 {strides = array<i32>} : memref<64x16xf32, #tpu.memory_space<vmem>>, vector<64x16xf32>,
    return
  }
  func.func @transform_0(%arg0: i32) -> (i32, i32) {
    %c0_i32 = arith.constant 0 : i32
    %c0_i32_0 = arith.constant 0 : i32
    return %arg0, %c0_i32 : i32, i32
  }
  func.func @transform_1(%arg0: i32) -> (i32, i32) {
    %c0_i32 = arith.constant 0 : i32
    %c0_i32_0 = arith.constant 0 : i32
    return %arg0, %c0_i32 : i32, i32
  }
  func.func @transform_2(%arg0: i32) -> (i32, i32) {
    %c0_i32 = arith.constant 0 : i32
    %c0_i32_0 = arith.constant 0 : i32
    return %arg0, %c0_i32 : i32, i32
  }
  func.func @transform_3(%arg0: i32) -> (i32, i32) {
    %c0_i32 = arith.constant 0 : i32
    %c0_i32_0 = arith.constant 0 : i32
    return %arg0, %c0_i32 : i32, i32
  }
  func.func @transform_4(%arg0: i32) -> (i32, i32) {
    %c0_i32 = arith.constant 0 : i32
    %c0_i32_0 = arith.constant 0 : i32
    %c0_i32_1 = arith.constant 0 : i32
    return %c0_i32, %c0_i32_0 : i32, i32
  }
  func.func @transform_5(%arg0: i32) -> (i32, i32) {
    %c0_i32 = arith.constant 0 : i32
    %c0_i32_0 = arith.constant 0 : i32
    %c0_i32_1 = arith.constant 0 : i32
    return %c0_i32, %c0_i32_0 : i32, i32
  }
  func.func @transform_6(%arg0: i32) -> (i32, i32) {
    %c0_i32 = arith.constant 0 : i32
    %c0_i32_0 = arith.constant 0 : i32
    return %arg0, %c0_i32 : i32, i32
  }
}

module attributes {stable_mosaic.version = 11 : i64} {
  func.func @_dwconv3x3_kernel(%arg0: i32, %arg1: memref<1x8x8x16xf32, #tpu.memory_space<vmem>>, %arg2: memref<9x16xf32, #tpu.memory_space<vmem>>, %arg3: memref<1x16xf32, #tpu.memory_space<vmem>>, %arg4: memref<1x8x8x16xf32, #tpu.memory_space<vmem>>, %arg5: memref<10x10x16xf32, #tpu.memory_space<vmem>>) attributes {dimension_semantics = [#tpu.dimension_semantics<parallel>], iteration_bounds = array<i64: 2>, scalar_prefetch = 0 : i64, scratch_operands = 1 : i64, tpu.core_type = #tpu.core_type<tc>, window_params = [{transform_indices = @transform_0, window_bounds = array<i64: 1, 8, 8, 16>}, {pipeline_mode = #tpu.pipeline_mode<synchronous>, transform_indices = @transform_1, window_bounds = array<i64: 9, 16>}, {pipeline_mode = #tpu.pipeline_mode<synchronous>, transform_indices = @transform_2, window_bounds = array<i64: 1, 16>}, {transform_indices = @transform_3, window_bounds = array<i64: 1, 8, 8, 16>}]} {
    %c0 = arith.constant 0 : index
    %c0_0 = arith.constant 0 : index
    %c0_1 = arith.constant 0 : index
    %c0_2 = arith.constant 0 : index
    %0 = vector.load %arg1[%c0, %c0_0, %c0_1, %c0_2] : memref<1x8x8x16xf32, #tpu.memory_space<vmem>>, vector<1x8x8x16xf32>
    %1 = vector.shape_cast %0 : vector<1x8x8x16xf32> to vector<8x8x16xf32>
    %cst = arith.constant 0.000000e+00 : f32
    %2 = vector.broadcast %cst : f32 to vector<10x10x16xf32>
    %c0_3 = arith.constant 0 : index
    %c0_4 = arith.constant 0 : index
    %c0_5 = arith.constant 0 : index
    %3 = vector.load %arg5[%c0_3, %c0_4, %c0_5] : memref<10x10x16xf32, #tpu.memory_space<vmem>>, vector<10x10x16xf32>
    tpu.vector_store %arg5[%c0_3, %c0_4, %c0_5], %2 {strides = array<i32>} : memref<10x10x16xf32, #tpu.memory_space<vmem>>, vector<10x10x16xf32>,
    %c1 = arith.constant 1 : index
    %c1_6 = arith.constant 1 : index
    %c0_7 = arith.constant 0 : index
    %4 = vector.load %arg5[%c1, %c1_6, %c0_7] : memref<10x10x16xf32, #tpu.memory_space<vmem>>, vector<8x8x16xf32>
    tpu.vector_store %arg5[%c1, %c1_6, %c0_7], %1 {strides = array<i32>} : memref<10x10x16xf32, #tpu.memory_space<vmem>>, vector<8x8x16xf32>,
    %cst_8 = arith.constant 0.000000e+00 : f32
    %5 = vector.broadcast %cst_8 : f32 to vector<8x8x16xf32>
    %c0_9 = arith.constant 0 : index
    %c0_10 = arith.constant 0 : index
    %c0_11 = arith.constant 0 : index
    %6 = vector.load %arg5[%c0_9, %c0_10, %c0_11] : memref<10x10x16xf32, #tpu.memory_space<vmem>>, vector<8x8x16xf32>
    %c0_12 = arith.constant 0 : index
    %c0_13 = arith.constant 0 : index
    %7 = vector.load %arg2[%c0_12, %c0_13] : memref<9x16xf32, #tpu.memory_space<vmem>>, vector<1x16xf32>
    %8 = vector.shape_cast %7 : vector<1x16xf32> to vector<1x1x16xf32>
    %9 = vector.broadcast %8 : vector<1x1x16xf32> to vector<8x8x16xf32>
    %10 = arith.mulf %6, %9 : vector<8x8x16xf32>
    %11 = arith.addf %5, %10 : vector<8x8x16xf32>
    %c0_14 = arith.constant 0 : index
    %c1_15 = arith.constant 1 : index
    %c0_16 = arith.constant 0 : index
    %12 = vector.load %arg5[%c0_14, %c1_15, %c0_16] : memref<10x10x16xf32, #tpu.memory_space<vmem>>, vector<8x8x16xf32>
    %c1_17 = arith.constant 1 : index
    %c0_18 = arith.constant 0 : index
    %13 = vector.load %arg2[%c1_17, %c0_18] : memref<9x16xf32, #tpu.memory_space<vmem>>, vector<1x16xf32>
    %14 = vector.shape_cast %13 : vector<1x16xf32> to vector<1x1x16xf32>
    %15 = vector.broadcast %14 : vector<1x1x16xf32> to vector<8x8x16xf32>
    %16 = arith.mulf %12, %15 : vector<8x8x16xf32>
    %17 = arith.addf %11, %16 : vector<8x8x16xf32>
    %c0_19 = arith.constant 0 : index
    %c2 = arith.constant 2 : index
    %c0_20 = arith.constant 0 : index
    %18 = vector.load %arg5[%c0_19, %c2, %c0_20] : memref<10x10x16xf32, #tpu.memory_space<vmem>>, vector<8x8x16xf32>
    %c2_21 = arith.constant 2 : index
    %c0_22 = arith.constant 0 : index
    %19 = vector.load %arg2[%c2_21, %c0_22] : memref<9x16xf32, #tpu.memory_space<vmem>>, vector<1x16xf32>
    %20 = vector.shape_cast %19 : vector<1x16xf32> to vector<1x1x16xf32>
    %21 = vector.broadcast %20 : vector<1x1x16xf32> to vector<8x8x16xf32>
    %22 = arith.mulf %18, %21 : vector<8x8x16xf32>
    %23 = arith.addf %17, %22 : vector<8x8x16xf32>
    %c1_23 = arith.constant 1 : index
    %c0_24 = arith.constant 0 : index
    %c0_25 = arith.constant 0 : index
    %24 = vector.load %arg5[%c1_23, %c0_24, %c0_25] : memref<10x10x16xf32, #tpu.memory_space<vmem>>, vector<8x8x16xf32>
    %c3 = arith.constant 3 : index
    %c0_26 = arith.constant 0 : index
    %25 = vector.load %arg2[%c3, %c0_26] : memref<9x16xf32, #tpu.memory_space<vmem>>, vector<1x16xf32>
    %26 = vector.shape_cast %25 : vector<1x16xf32> to vector<1x1x16xf32>
    %27 = vector.broadcast %26 : vector<1x1x16xf32> to vector<8x8x16xf32>
    %28 = arith.mulf %24, %27 : vector<8x8x16xf32>
    %29 = arith.addf %23, %28 : vector<8x8x16xf32>
    %c1_27 = arith.constant 1 : index
    %c1_28 = arith.constant 1 : index
    %c0_29 = arith.constant 0 : index
    %30 = vector.load %arg5[%c1_27, %c1_28, %c0_29] : memref<10x10x16xf32, #tpu.memory_space<vmem>>, vector<8x8x16xf32>
    %c4 = arith.constant 4 : index
    %c0_30 = arith.constant 0 : index
    %31 = vector.load %arg2[%c4, %c0_30] : memref<9x16xf32, #tpu.memory_space<vmem>>, vector<1x16xf32>
    %32 = vector.shape_cast %31 : vector<1x16xf32> to vector<1x1x16xf32>
    %33 = vector.broadcast %32 : vector<1x1x16xf32> to vector<8x8x16xf32>
    %34 = arith.mulf %30, %33 : vector<8x8x16xf32>
    %35 = arith.addf %29, %34 : vector<8x8x16xf32>
    %c1_31 = arith.constant 1 : index
    %c2_32 = arith.constant 2 : index
    %c0_33 = arith.constant 0 : index
    %36 = vector.load %arg5[%c1_31, %c2_32, %c0_33] : memref<10x10x16xf32, #tpu.memory_space<vmem>>, vector<8x8x16xf32>
    %c5 = arith.constant 5 : index
    %c0_34 = arith.constant 0 : index
    %37 = vector.load %arg2[%c5, %c0_34] : memref<9x16xf32, #tpu.memory_space<vmem>>, vector<1x16xf32>
    %38 = vector.shape_cast %37 : vector<1x16xf32> to vector<1x1x16xf32>
    %39 = vector.broadcast %38 : vector<1x1x16xf32> to vector<8x8x16xf32>
    %40 = arith.mulf %36, %39 : vector<8x8x16xf32>
    %41 = arith.addf %35, %40 : vector<8x8x16xf32>
    %c2_35 = arith.constant 2 : index
    %c0_36 = arith.constant 0 : index
    %c0_37 = arith.constant 0 : index
    %42 = vector.load %arg5[%c2_35, %c0_36, %c0_37] : memref<10x10x16xf32, #tpu.memory_space<vmem>>, vector<8x8x16xf32>
    %c6 = arith.constant 6 : index
    %c0_38 = arith.constant 0 : index
    %43 = vector.load %arg2[%c6, %c0_38] : memref<9x16xf32, #tpu.memory_space<vmem>>, vector<1x16xf32>
    %44 = vector.shape_cast %43 : vector<1x16xf32> to vector<1x1x16xf32>
    %45 = vector.broadcast %44 : vector<1x1x16xf32> to vector<8x8x16xf32>
    %46 = arith.mulf %42, %45 : vector<8x8x16xf32>
    %47 = arith.addf %41, %46 : vector<8x8x16xf32>
    %c2_39 = arith.constant 2 : index
    %c1_40 = arith.constant 1 : index
    %c0_41 = arith.constant 0 : index
    %48 = vector.load %arg5[%c2_39, %c1_40, %c0_41] : memref<10x10x16xf32, #tpu.memory_space<vmem>>, vector<8x8x16xf32>
    %c7 = arith.constant 7 : index
    %c0_42 = arith.constant 0 : index
    %49 = vector.load %arg2[%c7, %c0_42] : memref<9x16xf32, #tpu.memory_space<vmem>>, vector<1x16xf32>
    %50 = vector.shape_cast %49 : vector<1x16xf32> to vector<1x1x16xf32>
    %51 = vector.broadcast %50 : vector<1x1x16xf32> to vector<8x8x16xf32>
    %52 = arith.mulf %48, %51 : vector<8x8x16xf32>
    %53 = arith.addf %47, %52 : vector<8x8x16xf32>
    %c2_43 = arith.constant 2 : index
    %c2_44 = arith.constant 2 : index
    %c0_45 = arith.constant 0 : index
    %54 = vector.load %arg5[%c2_43, %c2_44, %c0_45] : memref<10x10x16xf32, #tpu.memory_space<vmem>>, vector<8x8x16xf32>
    %c8 = arith.constant 8 : index
    %c0_46 = arith.constant 0 : index
    %55 = vector.load %arg2[%c8, %c0_46] : memref<9x16xf32, #tpu.memory_space<vmem>>, vector<1x16xf32>
    %56 = vector.shape_cast %55 : vector<1x16xf32> to vector<1x1x16xf32>
    %57 = vector.broadcast %56 : vector<1x1x16xf32> to vector<8x8x16xf32>
    %58 = arith.mulf %54, %57 : vector<8x8x16xf32>
    %59 = arith.addf %53, %58 : vector<8x8x16xf32>
    %c0_47 = arith.constant 0 : index
    %c0_48 = arith.constant 0 : index
    %60 = vector.load %arg3[%c0_47, %c0_48] : memref<1x16xf32, #tpu.memory_space<vmem>>, vector<1x16xf32>
    %61 = vector.shape_cast %60 : vector<1x16xf32> to vector<1x1x16xf32>
    %62 = vector.broadcast %61 : vector<1x1x16xf32> to vector<8x8x16xf32>
    %63 = arith.addf %59, %62 : vector<8x8x16xf32>
    %c0_49 = arith.constant 0 : index
    %c0_50 = arith.constant 0 : index
    %c0_51 = arith.constant 0 : index
    %c0_52 = arith.constant 0 : index
    %64 = vector.load %arg4[%c0_49, %c0_50, %c0_51, %c0_52] : memref<1x8x8x16xf32, #tpu.memory_space<vmem>>, vector<1x8x8x16xf32>
    %65 = vector.shape_cast %64 : vector<1x8x8x16xf32> to vector<8x8x16xf32>
    %66 = vector.shape_cast %63 : vector<8x8x16xf32> to vector<1x8x8x16xf32>
    tpu.vector_store %arg4[%c0_49, %c0_50, %c0_51, %c0_52], %66 {strides = array<i32>} : memref<1x8x8x16xf32, #tpu.memory_space<vmem>>, vector<1x8x8x16xf32>,
    return
  }
  func.func @transform_0(%arg0: i32) -> (i32, i32, i32, i32) {
    %c0_i32 = arith.constant 0 : i32
    %c0_i32_0 = arith.constant 0 : i32
    %c0_i32_1 = arith.constant 0 : i32
    %c0_i32_2 = arith.constant 0 : i32
    return %arg0, %c0_i32, %c0_i32_0, %c0_i32_1 : i32, i32, i32, i32
  }
  func.func @transform_1(%arg0: i32) -> (i32, i32) {
    %c0_i32 = arith.constant 0 : i32
    %c0_i32_0 = arith.constant 0 : i32
    %c0_i32_1 = arith.constant 0 : i32
    return %c0_i32, %c0_i32_0 : i32, i32
  }
  func.func @transform_2(%arg0: i32) -> (i32, i32) {
    %c0_i32 = arith.constant 0 : i32
    %c0_i32_0 = arith.constant 0 : i32
    %c0_i32_1 = arith.constant 0 : i32
    return %c0_i32, %c0_i32_0 : i32, i32
  }
  func.func @transform_3(%arg0: i32) -> (i32, i32, i32, i32) {
    %c0_i32 = arith.constant 0 : i32
    %c0_i32_0 = arith.constant 0 : i32
    %c0_i32_1 = arith.constant 0 : i32
    %c0_i32_2 = arith.constant 0 : i32
    return %arg0, %c0_i32, %c0_i32_0, %c0_i32_1 : i32, i32, i32, i32
  }
}

module attributes {stable_mosaic.version = 11 : i64} {
  func.func @_ln_linear_kernel(%arg0: i32, %arg1: memref<64x16xf32, #tpu.memory_space<vmem>>, %arg2: memref<1x16xf32, #tpu.memory_space<vmem>>, %arg3: memref<1x16xf32, #tpu.memory_space<vmem>>, %arg4: memref<16x64xf32, #tpu.memory_space<vmem>>, %arg5: memref<1x64xf32, #tpu.memory_space<vmem>>, %arg6: memref<64x64xf32, #tpu.memory_space<vmem>>, %arg7: memref<64x16xf32, #tpu.memory_space<vmem>>) attributes {dimension_semantics = [#tpu.dimension_semantics<parallel>], iteration_bounds = array<i64: 2>, scalar_prefetch = 0 : i64, scratch_operands = 0 : i64, tpu.core_type = #tpu.core_type<tc>, window_params = [{transform_indices = @transform_0, window_bounds = array<i64: 64, 16>}, {pipeline_mode = #tpu.pipeline_mode<synchronous>, transform_indices = @transform_1, window_bounds = array<i64: 1, 16>}, {pipeline_mode = #tpu.pipeline_mode<synchronous>, transform_indices = @transform_2, window_bounds = array<i64: 1, 16>}, {pipeline_mode = #tpu.pipeline_mode<synchronous>, transform_indices = @transform_3, window_bounds = array<i64: 16, 64>}, {pipeline_mode = #tpu.pipeline_mode<synchronous>, transform_indices = @transform_4, window_bounds = array<i64: 1, 64>}, {transform_indices = @transform_5, window_bounds = array<i64: 64, 64>}, {transform_indices = @transform_6, window_bounds = array<i64: 64, 16>}]} {
    %c0 = arith.constant 0 : index
    %c0_0 = arith.constant 0 : index
    %0 = vector.load %arg1[%c0, %c0_0] : memref<64x16xf32, #tpu.memory_space<vmem>>, vector<64x16xf32>
    %c0_1 = arith.constant 0 : index
    %c0_2 = arith.constant 0 : index
    %1 = vector.load %arg2[%c0_1, %c0_2] : memref<1x16xf32, #tpu.memory_space<vmem>>, vector<1x16xf32>
    %c0_3 = arith.constant 0 : index
    %c0_4 = arith.constant 0 : index
    %2 = vector.load %arg3[%c0_3, %c0_4] : memref<1x16xf32, #tpu.memory_space<vmem>>, vector<1x16xf32>
    %cst = arith.constant dense<0.000000e+00> : vector<64xf32>
    %3 = vector.multi_reduction <add>, %0, %cst [1] : vector<64x16xf32> to vector<64xf32>
    %4 = vector.shape_cast %3 : vector<64xf32> to vector<64x1xf32>
    %cst_5 = arith.constant 1.600000e+01 : f32
    %5 = vector.broadcast %cst_5 : f32 to vector<64x1xf32>
    %6 = arith.divf %4, %5 : vector<64x1xf32>
    %7 = vector.broadcast %6 : vector<64x1xf32> to vector<64x16xf32>
    %8 = arith.subf %0, %7 : vector<64x16xf32>
    %9 = arith.mulf %8, %8 : vector<64x16xf32>
    %cst_6 = arith.constant dense<0.000000e+00> : vector<64xf32>
    %10 = vector.multi_reduction <add>, %9, %cst_6 [1] : vector<64x16xf32> to vector<64xf32>
    %11 = vector.shape_cast %10 : vector<64xf32> to vector<64x1xf32>
    %cst_7 = arith.constant 1.600000e+01 : f32
    %12 = vector.broadcast %cst_7 : f32 to vector<64x1xf32>
    %13 = arith.divf %11, %12 : vector<64x1xf32>
    %cst_8 = arith.constant 9.99999974E-6 : f32
    %14 = vector.broadcast %cst_8 : f32 to vector<64x1xf32>
    %15 = arith.addf %13, %14 : vector<64x1xf32>
    %16 = math.rsqrt %15 : vector<64x1xf32>
    %17 = vector.broadcast %16 : vector<64x1xf32> to vector<64x16xf32>
    %18 = arith.mulf %8, %17 : vector<64x16xf32>
    %19 = vector.broadcast %1 : vector<1x16xf32> to vector<64x16xf32>
    %20 = arith.mulf %18, %19 : vector<64x16xf32>
    %21 = vector.broadcast %2 : vector<1x16xf32> to vector<64x16xf32>
    %22 = arith.addf %20, %21 : vector<64x16xf32>
    %c0_9 = arith.constant 0 : index
    %c0_10 = arith.constant 0 : index
    %23 = vector.load %arg7[%c0_9, %c0_10] : memref<64x16xf32, #tpu.memory_space<vmem>>, vector<64x16xf32>
    tpu.vector_store %arg7[%c0_9, %c0_10], %22 {strides = array<i32>} : memref<64x16xf32, #tpu.memory_space<vmem>>, vector<64x16xf32>,
    %c0_11 = arith.constant 0 : index
    %c0_12 = arith.constant 0 : index
    %24 = vector.load %arg4[%c0_11, %c0_12] : memref<16x64xf32, #tpu.memory_space<vmem>>, vector<16x64xf32>
    %cst_13 = arith.constant dense<0.000000e+00> : vector<64x64xf32>
    %25 = tpu.matmul %22, %24, %cst_13 {dimension_numbers = #tpu.dot_dimension_numbers<[1], [0], [0], [1], [0, 0, 1, 1], [], []>} : vector<64x16xf32>, vector<16x64xf32>, vector<64x64xf32> -> vector<64x64xf32>
    %c0_14 = arith.constant 0 : index
    %c0_15 = arith.constant 0 : index
    %26 = vector.load %arg5[%c0_14, %c0_15] : memref<1x64xf32, #tpu.memory_space<vmem>>, vector<1x64xf32>
    %27 = vector.broadcast %26 : vector<1x64xf32> to vector<64x64xf32>
    %28 = arith.addf %25, %27 : vector<64x64xf32>
    %c0_16 = arith.constant 0 : index
    %c0_17 = arith.constant 0 : index
    %29 = vector.load %arg6[%c0_16, %c0_17] : memref<64x64xf32, #tpu.memory_space<vmem>>, vector<64x64xf32>
    tpu.vector_store %arg6[%c0_16, %c0_17], %28 {strides = array<i32>} : memref<64x64xf32, #tpu.memory_space<vmem>>, vector<64x64xf32>,
    return
  }
  func.func @transform_0(%arg0: i32) -> (i32, i32) {
    %c0_i32 = arith.constant 0 : i32
    %c0_i32_0 = arith.constant 0 : i32
    return %arg0, %c0_i32 : i32, i32
  }
  func.func @transform_1(%arg0: i32) -> (i32, i32) {
    %c0_i32 = arith.constant 0 : i32
    %c0_i32_0 = arith.constant 0 : i32
    %c0_i32_1 = arith.constant 0 : i32
    return %c0_i32, %c0_i32_0 : i32, i32
  }
  func.func @transform_2(%arg0: i32) -> (i32, i32) {
    %c0_i32 = arith.constant 0 : i32
    %c0_i32_0 = arith.constant 0 : i32
    %c0_i32_1 = arith.constant 0 : i32
    return %c0_i32, %c0_i32_0 : i32, i32
  }
  func.func @transform_3(%arg0: i32) -> (i32, i32) {
    %c0_i32 = arith.constant 0 : i32
    %c0_i32_0 = arith.constant 0 : i32
    %c0_i32_1 = arith.constant 0 : i32
    return %c0_i32, %c0_i32_0 : i32, i32
  }
  func.func @transform_4(%arg0: i32) -> (i32, i32) {
    %c0_i32 = arith.constant 0 : i32
    %c0_i32_0 = arith.constant 0 : i32
    %c0_i32_1 = arith.constant 0 : i32
    return %c0_i32, %c0_i32_0 : i32, i32
  }
  func.func @transform_5(%arg0: i32) -> (i32, i32) {
    %c0_i32 = arith.constant 0 : i32
    %c0_i32_0 = arith.constant 0 : i32
    return %arg0, %c0_i32 : i32, i32
  }
  func.func @transform_6(%arg0: i32) -> (i32, i32) {
    %c0_i32 = arith.constant 0 : i32
    %c0_i32_0 = arith.constant 0 : i32
    return %arg0, %c0_i32 : i32, i32
  }
}

module attributes {stable_mosaic.version = 11 : i64} {
  func.func @_dwconv3x3_kernel(%arg0: i32, %arg1: memref<1x8x8x64xf32, #tpu.memory_space<vmem>>, %arg2: memref<9x64xf32, #tpu.memory_space<vmem>>, %arg3: memref<1x64xf32, #tpu.memory_space<vmem>>, %arg4: memref<1x8x8x64xf32, #tpu.memory_space<vmem>>, %arg5: memref<10x10x64xf32, #tpu.memory_space<vmem>>) attributes {dimension_semantics = [#tpu.dimension_semantics<parallel>], iteration_bounds = array<i64: 2>, scalar_prefetch = 0 : i64, scratch_operands = 1 : i64, tpu.core_type = #tpu.core_type<tc>, window_params = [{transform_indices = @transform_0, window_bounds = array<i64: 1, 8, 8, 64>}, {pipeline_mode = #tpu.pipeline_mode<synchronous>, transform_indices = @transform_1, window_bounds = array<i64: 9, 64>}, {pipeline_mode = #tpu.pipeline_mode<synchronous>, transform_indices = @transform_2, window_bounds = array<i64: 1, 64>}, {transform_indices = @transform_3, window_bounds = array<i64: 1, 8, 8, 64>}]} {
    %c0 = arith.constant 0 : index
    %c0_0 = arith.constant 0 : index
    %c0_1 = arith.constant 0 : index
    %c0_2 = arith.constant 0 : index
    %0 = vector.load %arg1[%c0, %c0_0, %c0_1, %c0_2] : memref<1x8x8x64xf32, #tpu.memory_space<vmem>>, vector<1x8x8x64xf32>
    %1 = vector.shape_cast %0 : vector<1x8x8x64xf32> to vector<8x8x64xf32>
    %cst = arith.constant 0.000000e+00 : f32
    %2 = vector.broadcast %cst : f32 to vector<10x10x64xf32>
    %c0_3 = arith.constant 0 : index
    %c0_4 = arith.constant 0 : index
    %c0_5 = arith.constant 0 : index
    %3 = vector.load %arg5[%c0_3, %c0_4, %c0_5] : memref<10x10x64xf32, #tpu.memory_space<vmem>>, vector<10x10x64xf32>
    tpu.vector_store %arg5[%c0_3, %c0_4, %c0_5], %2 {strides = array<i32>} : memref<10x10x64xf32, #tpu.memory_space<vmem>>, vector<10x10x64xf32>,
    %c1 = arith.constant 1 : index
    %c1_6 = arith.constant 1 : index
    %c0_7 = arith.constant 0 : index
    %4 = vector.load %arg5[%c1, %c1_6, %c0_7] : memref<10x10x64xf32, #tpu.memory_space<vmem>>, vector<8x8x64xf32>
    tpu.vector_store %arg5[%c1, %c1_6, %c0_7], %1 {strides = array<i32>} : memref<10x10x64xf32, #tpu.memory_space<vmem>>, vector<8x8x64xf32>,
    %cst_8 = arith.constant 0.000000e+00 : f32
    %5 = vector.broadcast %cst_8 : f32 to vector<8x8x64xf32>
    %c0_9 = arith.constant 0 : index
    %c0_10 = arith.constant 0 : index
    %c0_11 = arith.constant 0 : index
    %6 = vector.load %arg5[%c0_9, %c0_10, %c0_11] : memref<10x10x64xf32, #tpu.memory_space<vmem>>, vector<8x8x64xf32>
    %c0_12 = arith.constant 0 : index
    %c0_13 = arith.constant 0 : index
    %7 = vector.load %arg2[%c0_12, %c0_13] : memref<9x64xf32, #tpu.memory_space<vmem>>, vector<1x64xf32>
    %8 = vector.shape_cast %7 : vector<1x64xf32> to vector<1x1x64xf32>
    %9 = vector.broadcast %8 : vector<1x1x64xf32> to vector<8x8x64xf32>
    %10 = arith.mulf %6, %9 : vector<8x8x64xf32>
    %11 = arith.addf %5, %10 : vector<8x8x64xf32>
    %c0_14 = arith.constant 0 : index
    %c1_15 = arith.constant 1 : index
    %c0_16 = arith.constant 0 : index
    %12 = vector.load %arg5[%c0_14, %c1_15, %c0_16] : memref<10x10x64xf32, #tpu.memory_space<vmem>>, vector<8x8x64xf32>
    %c1_17 = arith.constant 1 : index
    %c0_18 = arith.constant 0 : index
    %13 = vector.load %arg2[%c1_17, %c0_18] : memref<9x64xf32, #tpu.memory_space<vmem>>, vector<1x64xf32>
    %14 = vector.shape_cast %13 : vector<1x64xf32> to vector<1x1x64xf32>
    %15 = vector.broadcast %14 : vector<1x1x64xf32> to vector<8x8x64xf32>
    %16 = arith.mulf %12, %15 : vector<8x8x64xf32>
    %17 = arith.addf %11, %16 : vector<8x8x64xf32>
    %c0_19 = arith.constant 0 : index
    %c2 = arith.constant 2 : index
    %c0_20 = arith.constant 0 : index
    %18 = vector.load %arg5[%c0_19, %c2, %c0_20] : memref<10x10x64xf32, #tpu.memory_space<vmem>>, vector<8x8x64xf32>
    %c2_21 = arith.constant 2 : index
    %c0_22 = arith.constant 0 : index
    %19 = vector.load %arg2[%c2_21, %c0_22] : memref<9x64xf32, #tpu.memory_space<vmem>>, vector<1x64xf32>
    %20 = vector.shape_cast %19 : vector<1x64xf32> to vector<1x1x64xf32>
    %21 = vector.broadcast %20 : vector<1x1x64xf32> to vector<8x8x64xf32>
    %22 = arith.mulf %18, %21 : vector<8x8x64xf32>
    %23 = arith.addf %17, %22 : vector<8x8x64xf32>
    %c1_23 = arith.constant 1 : index
    %c0_24 = arith.constant 0 : index
    %c0_25 = arith.constant 0 : index
    %24 = vector.load %arg5[%c1_23, %c0_24, %c0_25] : memref<10x10x64xf32, #tpu.memory_space<vmem>>, vector<8x8x64xf32>
    %c3 = arith.constant 3 : index
    %c0_26 = arith.constant 0 : index
    %25 = vector.load %arg2[%c3, %c0_26] : memref<9x64xf32, #tpu.memory_space<vmem>>, vector<1x64xf32>
    %26 = vector.shape_cast %25 : vector<1x64xf32> to vector<1x1x64xf32>
    %27 = vector.broadcast %26 : vector<1x1x64xf32> to vector<8x8x64xf32>
    %28 = arith.mulf %24, %27 : vector<8x8x64xf32>
    %29 = arith.addf %23, %28 : vector<8x8x64xf32>
    %c1_27 = arith.constant 1 : index
    %c1_28 = arith.constant 1 : index
    %c0_29 = arith.constant 0 : index
    %30 = vector.load %arg5[%c1_27, %c1_28, %c0_29] : memref<10x10x64xf32, #tpu.memory_space<vmem>>, vector<8x8x64xf32>
    %c4 = arith.constant 4 : index
    %c0_30 = arith.constant 0 : index
    %31 = vector.load %arg2[%c4, %c0_30] : memref<9x64xf32, #tpu.memory_space<vmem>>, vector<1x64xf32>
    %32 = vector.shape_cast %31 : vector<1x64xf32> to vector<1x1x64xf32>
    %33 = vector.broadcast %32 : vector<1x1x64xf32> to vector<8x8x64xf32>
    %34 = arith.mulf %30, %33 : vector<8x8x64xf32>
    %35 = arith.addf %29, %34 : vector<8x8x64xf32>
    %c1_31 = arith.constant 1 : index
    %c2_32 = arith.constant 2 : index
    %c0_33 = arith.constant 0 : index
    %36 = vector.load %arg5[%c1_31, %c2_32, %c0_33] : memref<10x10x64xf32, #tpu.memory_space<vmem>>, vector<8x8x64xf32>
    %c5 = arith.constant 5 : index
    %c0_34 = arith.constant 0 : index
    %37 = vector.load %arg2[%c5, %c0_34] : memref<9x64xf32, #tpu.memory_space<vmem>>, vector<1x64xf32>
    %38 = vector.shape_cast %37 : vector<1x64xf32> to vector<1x1x64xf32>
    %39 = vector.broadcast %38 : vector<1x1x64xf32> to vector<8x8x64xf32>
    %40 = arith.mulf %36, %39 : vector<8x8x64xf32>
    %41 = arith.addf %35, %40 : vector<8x8x64xf32>
    %c2_35 = arith.constant 2 : index
    %c0_36 = arith.constant 0 : index
    %c0_37 = arith.constant 0 : index
    %42 = vector.load %arg5[%c2_35, %c0_36, %c0_37] : memref<10x10x64xf32, #tpu.memory_space<vmem>>, vector<8x8x64xf32>
    %c6 = arith.constant 6 : index
    %c0_38 = arith.constant 0 : index
    %43 = vector.load %arg2[%c6, %c0_38] : memref<9x64xf32, #tpu.memory_space<vmem>>, vector<1x64xf32>
    %44 = vector.shape_cast %43 : vector<1x64xf32> to vector<1x1x64xf32>
    %45 = vector.broadcast %44 : vector<1x1x64xf32> to vector<8x8x64xf32>
    %46 = arith.mulf %42, %45 : vector<8x8x64xf32>
    %47 = arith.addf %41, %46 : vector<8x8x64xf32>
    %c2_39 = arith.constant 2 : index
    %c1_40 = arith.constant 1 : index
    %c0_41 = arith.constant 0 : index
    %48 = vector.load %arg5[%c2_39, %c1_40, %c0_41] : memref<10x10x64xf32, #tpu.memory_space<vmem>>, vector<8x8x64xf32>
    %c7 = arith.constant 7 : index
    %c0_42 = arith.constant 0 : index
    %49 = vector.load %arg2[%c7, %c0_42] : memref<9x64xf32, #tpu.memory_space<vmem>>, vector<1x64xf32>
    %50 = vector.shape_cast %49 : vector<1x64xf32> to vector<1x1x64xf32>
    %51 = vector.broadcast %50 : vector<1x1x64xf32> to vector<8x8x64xf32>
    %52 = arith.mulf %48, %51 : vector<8x8x64xf32>
    %53 = arith.addf %47, %52 : vector<8x8x64xf32>
    %c2_43 = arith.constant 2 : index
    %c2_44 = arith.constant 2 : index
    %c0_45 = arith.constant 0 : index
    %54 = vector.load %arg5[%c2_43, %c2_44, %c0_45] : memref<10x10x64xf32, #tpu.memory_space<vmem>>, vector<8x8x64xf32>
    %c8 = arith.constant 8 : index
    %c0_46 = arith.constant 0 : index
    %55 = vector.load %arg2[%c8, %c0_46] : memref<9x64xf32, #tpu.memory_space<vmem>>, vector<1x64xf32>
    %56 = vector.shape_cast %55 : vector<1x64xf32> to vector<1x1x64xf32>
    %57 = vector.broadcast %56 : vector<1x1x64xf32> to vector<8x8x64xf32>
    %58 = arith.mulf %54, %57 : vector<8x8x64xf32>
    %59 = arith.addf %53, %58 : vector<8x8x64xf32>
    %c0_47 = arith.constant 0 : index
    %c0_48 = arith.constant 0 : index
    %60 = vector.load %arg3[%c0_47, %c0_48] : memref<1x64xf32, #tpu.memory_space<vmem>>, vector<1x64xf32>
    %61 = vector.shape_cast %60 : vector<1x64xf32> to vector<1x1x64xf32>
    %62 = vector.broadcast %61 : vector<1x1x64xf32> to vector<8x8x64xf32>
    %63 = arith.addf %59, %62 : vector<8x8x64xf32>
    %cst_49 = arith.constant 5.000000e-01 : f32
    %64 = vector.broadcast %cst_49 : f32 to vector<8x8x64xf32>
    %65 = arith.mulf %64, %63 : vector<8x8x64xf32>
    %cst_50 = arith.constant 0.707106769 : f32
    %66 = vector.broadcast %cst_50 : f32 to vector<8x8x64xf32>
    %67 = arith.mulf %63, %66 : vector<8x8x64xf32>
    %68 = math.erf %67 : vector<8x8x64xf32>
    %cst_51 = arith.constant 1.000000e+00 : f32
    %69 = vector.broadcast %cst_51 : f32 to vector<8x8x64xf32>
    %70 = arith.addf %69, %68 : vector<8x8x64xf32>
    %71 = arith.mulf %65, %70 : vector<8x8x64xf32>
    %c0_52 = arith.constant 0 : index
    %c0_53 = arith.constant 0 : index
    %c0_54 = arith.constant 0 : index
    %c0_55 = arith.constant 0 : index
    %72 = vector.load %arg4[%c0_52, %c0_53, %c0_54, %c0_55] : memref<1x8x8x64xf32, #tpu.memory_space<vmem>>, vector<1x8x8x64xf32>
    %73 = vector.shape_cast %72 : vector<1x8x8x64xf32> to vector<8x8x64xf32>
    %74 = vector.shape_cast %71 : vector<8x8x64xf32> to vector<1x8x8x64xf32>
    tpu.vector_store %arg4[%c0_52, %c0_53, %c0_54, %c0_55], %74 {strides = array<i32>} : memref<1x8x8x64xf32, #tpu.memory_space<vmem>>, vector<1x8x8x64xf32>,
    return
  }
  func.func @transform_0(%arg0: i32) -> (i32, i32, i32, i32) {
    %c0_i32 = arith.constant 0 : i32
    %c0_i32_0 = arith.constant 0 : i32
    %c0_i32_1 = arith.constant 0 : i32
    %c0_i32_2 = arith.constant 0 : i32
    return %arg0, %c0_i32, %c0_i32_0, %c0_i32_1 : i32, i32, i32, i32
  }
  func.func @transform_1(%arg0: i32) -> (i32, i32) {
    %c0_i32 = arith.constant 0 : i32
    %c0_i32_0 = arith.constant 0 : i32
    %c0_i32_1 = arith.constant 0 : i32
    return %c0_i32, %c0_i32_0 : i32, i32
  }
  func.func @transform_2(%arg0: i32) -> (i32, i32) {
    %c0_i32 = arith.constant 0 : i32
    %c0_i32_0 = arith.constant 0 : i32
    %c0_i32_1 = arith.constant 0 : i32
    return %c0_i32, %c0_i32_0 : i32, i32
  }
  func.func @transform_3(%arg0: i32) -> (i32, i32, i32, i32) {
    %c0_i32 = arith.constant 0 : i32
    %c0_i32_0 = arith.constant 0 : i32
    %c0_i32_1 = arith.constant 0 : i32
    %c0_i32_2 = arith.constant 0 : i32
    return %arg0, %c0_i32, %c0_i32_0, %c0_i32_1 : i32, i32, i32, i32
  }
}

module attributes {stable_mosaic.version = 11 : i64} {
  func.func @_linear_res2_kernel(%arg0: i32, %arg1: memref<64x64xf32, #tpu.memory_space<vmem>>, %arg2: memref<64x16xf32, #tpu.memory_space<vmem>>, %arg3: memref<64x16xf32, #tpu.memory_space<vmem>>, %arg4: memref<64x16xf32, #tpu.memory_space<vmem>>, %arg5: memref<1x16xf32, #tpu.memory_space<vmem>>, %arg6: memref<64x16xf32, #tpu.memory_space<vmem>>) attributes {dimension_semantics = [#tpu.dimension_semantics<parallel>], iteration_bounds = array<i64: 2>, scalar_prefetch = 0 : i64, scratch_operands = 0 : i64, tpu.core_type = #tpu.core_type<tc>, window_params = [{transform_indices = @transform_0, window_bounds = array<i64: 64, 64>}, {transform_indices = @transform_1, window_bounds = array<i64: 64, 16>}, {transform_indices = @transform_2, window_bounds = array<i64: 64, 16>}, {pipeline_mode = #tpu.pipeline_mode<synchronous>, transform_indices = @transform_3, window_bounds = array<i64: 64, 16>}, {pipeline_mode = #tpu.pipeline_mode<synchronous>, transform_indices = @transform_4, window_bounds = array<i64: 1, 16>}, {transform_indices = @transform_5, window_bounds = array<i64: 64, 16>}]} {
    %c0 = arith.constant 0 : index
    %c0_0 = arith.constant 0 : index
    %0 = vector.load %arg1[%c0, %c0_0] : memref<64x64xf32, #tpu.memory_space<vmem>>, vector<64x64xf32>
    %c0_1 = arith.constant 0 : index
    %c0_2 = arith.constant 0 : index
    %1 = vector.load %arg4[%c0_1, %c0_2] : memref<64x16xf32, #tpu.memory_space<vmem>>, vector<64x16xf32>
    %cst = arith.constant dense<0.000000e+00> : vector<64x16xf32>
    %2 = tpu.matmul %0, %1, %cst {dimension_numbers = #tpu.dot_dimension_numbers<[1], [0], [0], [1], [0, 0, 1, 1], [], []>} : vector<64x64xf32>, vector<64x16xf32>, vector<64x16xf32> -> vector<64x16xf32>
    %c0_3 = arith.constant 0 : index
    %c0_4 = arith.constant 0 : index
    %3 = vector.load %arg5[%c0_3, %c0_4] : memref<1x16xf32, #tpu.memory_space<vmem>>, vector<1x16xf32>
    %4 = vector.broadcast %3 : vector<1x16xf32> to vector<64x16xf32>
    %5 = arith.addf %2, %4 : vector<64x16xf32>
    %c0_5 = arith.constant 0 : index
    %c0_6 = arith.constant 0 : index
    %6 = vector.load %arg2[%c0_5, %c0_6] : memref<64x16xf32, #tpu.memory_space<vmem>>, vector<64x16xf32>
    %c0_7 = arith.constant 0 : index
    %c0_8 = arith.constant 0 : index
    %7 = vector.load %arg3[%c0_7, %c0_8] : memref<64x16xf32, #tpu.memory_space<vmem>>, vector<64x16xf32>
    %8 = arith.addf %6, %7 : vector<64x16xf32>
    %9 = arith.addf %8, %5 : vector<64x16xf32>
    %c0_9 = arith.constant 0 : index
    %c0_10 = arith.constant 0 : index
    %10 = vector.load %arg6[%c0_9, %c0_10] : memref<64x16xf32, #tpu.memory_space<vmem>>, vector<64x16xf32>
    tpu.vector_store %arg6[%c0_9, %c0_10], %9 {strides = array<i32>} : memref<64x16xf32, #tpu.memory_space<vmem>>, vector<64x16xf32>,
    return
  }
  func.func @transform_0(%arg0: i32) -> (i32, i32) {
    %c0_i32 = arith.constant 0 : i32
    %c0_i32_0 = arith.constant 0 : i32
    return %arg0, %c0_i32 : i32, i32
  }
  func.func @transform_1(%arg0: i32) -> (i32, i32) {
    %c0_i32 = arith.constant 0 : i32
    %c0_i32_0 = arith.constant 0 : i32
    return %arg0, %c0_i32 : i32, i32
  }
  func.func @transform_2(%arg0: i32) -> (i32, i32) {
    %c0_i32 = arith.constant 0 : i32
    %c0_i32_0 = arith.constant 0 : i32
    return %arg0, %c0_i32 : i32, i32
  }
  func.func @transform_3(%arg0: i32) -> (i32, i32) {
    %c0_i32 = arith.constant 0 : i32
    %c0_i32_0 = arith.constant 0 : i32
    %c0_i32_1 = arith.constant 0 : i32
    return %c0_i32, %c0_i32_0 : i32, i32
  }
  func.func @transform_4(%arg0: i32) -> (i32, i32) {
    %c0_i32 = arith.constant 0 : i32
    %c0_i32_0 = arith.constant 0 : i32
    %c0_i32_1 = arith.constant 0 : i32
    return %c0_i32, %c0_i32_0 : i32, i32
  }
  func.func @transform_5(%arg0: i32) -> (i32, i32) {
    %c0_i32 = arith.constant 0 : i32
    %c0_i32_0 = arith.constant 0 : i32
    return %arg0, %c0_i32 : i32, i32
  }
}

</mosaic_0001>

<bundles_post_ra>
// kernel: mlla_forward_pallas.11
= control target key start
LH: loop header
LB: loop body
LE: loop exit
PB: predicated region body
PF: predicated region fallthrough
CT: control target
= control target key end

     0   :  { %s619_s12 = smov 0   ;;  %s857_s0 = inlined_call_operand.vmem [shape: f32[2,8,8,16], index: 0, kind: input, shape index: {}]   ;;  %s858_s1 = inlined_call_operand.vmem [shape: f32[9,16], index: 1, kind: input, shape index: {}]   ;;  %s859_s2 = inlined_call_operand.vmem [shape: f32[1,16], index: 2, kind: input, shape index: {}]   ;;  %s860_s3 = inlined_call_operand.vmem [shape: f32[2,8,8,16], index: 3, kind: output, shape index: {}]  }
   0x1 LB: > { %s558_s13 = sadd.s32 4294967295, %s596_s12   ;;  %p562_p0 = scmp.ge.s32.totalorder %s596_s12, 1  ;;  %s596_s12 = sphi %s619_s12, %s13_s12  }
   0x2   : > { %p137_p1 = scmp.lt.s32.totalorder %s596_s12, 3 }
   0x4   : > { %p138_p2 = pnand %p562_p0, %p137_p1 }
   0x5   : > { %p627_p3 = scmp.lt.s32.totalorder (!%p138_p2), %s558_s13, 1 }
   0x6   : > { %141 = sbr.rel (%p138_p2) target bundleno = 79 (0x4f), region = 32 }
   0xb   : > { %vm179_vm0 = vcmask 130048   ;;  %vm181_vm1 = vcmask 123904   ;;  %v598_v0 = vmov 0.0   ;;  %s863_s13 = smov (!%p627_p3, %s558_s13), 1  ;;  %v664_v1 = vld [vmem:[%s858_s1] ss:$0 sm:$0xff] }
   0xc   : > { %180 = vst.msk [vmem:[#allocation2] sm:$0xff] %vm179_vm0, %v598_v0  ;;  %183 = vst.msk [vmem:[#allocation2 + $0x10] sm:$0xff] %vm179_vm0, %v598_v0  ;;  %s579_s15 = sshll.u32 %s863_s13, 6  ;;  %v669_v2 = vld [vmem:[%s858_s1 + $0x1] ss:$0 sm:$0xff] }
   0xd   : > { %185 = vst.msk [vmem:[#allocation2 + $0x20] sm:$0xff] %vm179_vm0, %v598_v0  ;;  %187 = vst.msk [vmem:[#allocation2 + $0x30] sm:$0xff] %vm179_vm0, %v598_v0  ;;  %s165_s18 = scalar_lea.vmem %s857_s0, %s579_s15  ;;  %v674_v3 = vld [vmem:[%s858_s1 + $0x2] ss:$0 sm:$0xff]  ;;  %v714_v19 = vld [vmem:[%s858_s1 + $0x3] ss:$0 sm:$0xff]  ;;  %s783_s17 = scalar_lea.vmem %s860_s3, %s579_s15 }
   0xe   : > { %189 = vst.msk [vmem:[#allocation2 + $0x40] sm:$0xff] %vm179_vm0, %v598_v0  ;;  %191 = vst.msk [vmem:[#allocation2 + $0x50] sm:$0xff] %vm179_vm0, %v598_v0  ;;  %v676_v4 = vld [vmem:[%s165_s18] sm:$0xff]  ;;  %v678_v5 = vld [vmem:[%s165_s18 + $0x8] sm:$0xff] }
   0xf   : > { %193 = vst.msk [vmem:[#allocation2 + $0x60] sm:$0xff] %vm179_vm0, %v598_v0  ;;  %195 = vst.msk [vmem:[#allocation2 + $0x70] sm:$0xff] %vm179_vm0, %v598_v0  ;;  %v680_v6 = vld [vmem:[%s165_s18 + $0x10] sm:$0xff]  ;;  %v688_v7 = vld [vmem:[%s165_s18 + $0x18] sm:$0xff] }
  0x10   : > { %197 = vst.msk [vmem:[#allocation2 + $0x80] sm:$0xff] %vm179_vm0, %v598_v0  ;;  %199 = vst.msk [vmem:[#allocation2 + $0x90] sm:$0xff] %vm179_vm0, %v598_v0  ;;  %v690_v8 = vld [vmem:[%s165_s18 + $0x20] sm:$0xff]  ;;  %v692_v9 = vld [vmem:[%s165_s18 + $0x28] sm:$0xff] }
  0x11   : > { %182 = vst.msk [vmem:[#allocation2 + $0x8] sm:$0x3] %vm181_vm1, %v598_v0  ;;  %184 = vst.msk [vmem:[#allocation2 + $0x18] sm:$0x3] %vm181_vm1, %v598_v0  ;;  %v700_v10 = vld [vmem:[%s165_s18 + $0x30] sm:$0xff]  ;;  %v702_v11 = vld [vmem:[%s165_s18 + $0x38] sm:$0xff] }
  0x12   : > { %186 = vst.msk [vmem:[#allocation2 + $0x28] sm:$0x3] %vm181_vm1, %v598_v0  ;;  %188 = vst.msk [vmem:[#allocation2 + $0x38] sm:$0x3] %vm181_vm1, %v598_v0  ;;  %v719_v20 = vld [vmem:[%s858_s1 + $0x4] ss:$0 sm:$0xff] }
  0x13   : > { %190 = vst.msk [vmem:[#allocation2 + $0x48] sm:$0x3] %vm181_vm1, %v598_v0  ;;  %192 = vst.msk [vmem:[#allocation2 + $0x58] sm:$0x3] %vm181_vm1, %v598_v0  ;;  %v210_v12 = vld [vmem:[#allocation2] sm:$0xff] }
  0x14   : > { %194 = vst.msk [vmem:[#allocation2 + $0x68] sm:$0x3] %vm181_vm1, %v598_v0  ;;  %196 = vst.msk [vmem:[#allocation2 + $0x78] sm:$0x3] %vm181_vm1, %v598_v0  ;;  %v223_v13 = vmul.f32 %v664_v1, %v210_v12  ;;  %v724_v24 = vld [vmem:[%s858_s1 + $0x5] ss:$0 sm:$0xff] }
  0x15   : > { %198 = vst.msk [vmem:[#allocation2 + $0x88] sm:$0x3] %vm181_vm1, %v598_v0  ;;  %200 = vst.msk [vmem:[#allocation2 + $0x98] sm:$0x3] %vm181_vm1, %v598_v0  ;;  %v730_v28 = vld [vmem:[%s858_s1 + $0x6] ss:$0 sm:$0xff] }
  0x16   : > { %202 = vst.msk [vmem:[#allocation2 + $0x11] sm:$0xff] %vm179_vm0, %v676_v4  ;;  %203 = vst.msk [vmem:[#allocation2 + $0x21] sm:$0xff] %vm179_vm0, %v678_v5  ;;  %v736_v31 = vld [vmem:[%s858_s1 + $0x7] ss:$0 sm:$0xff]  ;;  %v743_v36 = vld [vmem:[%s858_s1 + $0x8] ss:$0 sm:$0xff] }
  0x17   : > { %204 = vst.msk [vmem:[#allocation2 + $0x31] sm:$0xff] %vm179_vm0, %v680_v6  ;;  %205 = vst.msk [vmem:[#allocation2 + $0x41] sm:$0xff] %vm179_vm0, %v688_v7 }
  0x18   : > { %206 = vst.msk [vmem:[#allocation2 + $0x51] sm:$0xff] %vm179_vm0, %v690_v8  ;;  %207 = vst.msk [vmem:[#allocation2 + $0x61] sm:$0xff] %vm179_vm0, %v692_v9  ;;  %v239_v14 = vld [vmem:[#allocation2 + $0x1] sm:$0xff] }
  0x19   : > { %208 = vst.msk [vmem:[#allocation2 + $0x71] sm:$0xff] %vm179_vm0, %v700_v10  ;;  %209 = vst.msk [vmem:[#allocation2 + $0x81] sm:$0xff] %vm179_vm0, %v702_v11  ;;  %v268_v15 = vld [vmem:[#allocation2 + $0x2] sm:$0xff]  ;;  %v252_v16 = vmul.f32 %v669_v2, %v239_v14 }
  0x1a   : > { %v281_v17 = vmul.f32 %v674_v3, %v268_v15 }
  0x1b   : > { %v260_v18 = vadd.f32 %v252_v16, %v223_v13 }
  0x1d   : > { %v289_v21 = vadd.f32 %v281_v17, %v260_v18  ;;  %v297_v22 = vld [vmem:[#allocation2 + $0x10] sm:$0xff]  ;;  %v385_v27 = vld [vmem:[#allocation2 + $0x20] sm:$0xff] }
  0x1e   : > { %v326_v23 = vld [vmem:[#allocation2 + $0x11] sm:$0xff]  ;;  %v310_v25 = vmul.f32 %v714_v19, %v297_v22  ;;  %v224_v29 = vmul.f32 %v664_v1, %v297_v22  ;;  %v414_v30 = vld [vmem:[#allocation2 + $0x21] sm:$0xff]  ;;  %v398_v38 = vmul.f32 %v730_v28, %v385_v27  ;;  %v225_v45 = vmul.f32 %v664_v1, %v385_v27 }
  0x1f   : > { %v355_v26 = vld [vmem:[#allocation2 + $0x12] sm:$0xff]  ;;  %v253_v32 = vmul.f32 %v669_v2, %v326_v23  ;;  %v339_v34 = vmul.f32 %v719_v20, %v326_v23  ;;  %v443_v35 = vld [vmem:[#allocation2 + $0x22] sm:$0xff]  ;;  %v427_v42 = vmul.f32 %v736_v31, %v414_v30  ;;  %v254_v46 = vmul.f32 %v669_v2, %v414_v30 }
  0x20   : > { %v318_v33 = vadd.f32 %v310_v25, %v289_v21  ;;  %v368_v37 = vmul.f32 %v724_v24, %v355_v26  ;;  %v282_v40 = vmul.f32 %v674_v3, %v355_v26  ;;  %v386_v43 = vld [vmem:[#allocation2 + $0x30] sm:$0xff]  ;;  %v456_v47 = vmul.f32 %v743_v36, %v443_v35  ;;  %v387_v63 = vld [vmem:[#allocation2 + $0x40] sm:$0xff] }
  0x21   : > { %v261_v39 = vadd.f32 %v253_v32, %v224_v29  ;;  %v415_v44 = vld [vmem:[#allocation2 + $0x31] sm:$0xff]  ;;  %v311_v49 = vmul.f32 %v714_v19, %v385_v27  ;;  %v340_v50 = vmul.f32 %v719_v20, %v414_v30  ;;  %v369_v52 = vmul.f32 %v724_v24, %v443_v35  ;;  %v416_v16 = vld [vmem:[#allocation2 + $0x41] sm:$0xff]  ;;  %v768_v25 = vld [vmem:[%s859_s2] ss:$0 sm:$0xff] }
  0x22   : > { %v347_v41 = vadd.f32 %v339_v34, %v318_v33  ;;  %v444_v53 = vld [vmem:[#allocation2 + $0x32] sm:$0xff]  ;;  %v262_v54 = vadd.f32 %v254_v46, %v225_v45  ;;  %v283_v55 = vmul.f32 %v674_v3, %v443_v35  ;;  %v399_v57 = vmul.f32 %v730_v28, %v386_v43  ;;  %v445_v21 = vld [vmem:[#allocation2 + $0x42] sm:$0xff] }
  0x23   : > { %v290_v48 = vadd.f32 %v282_v40, %v261_v39  ;;  %v428_v58 = vmul.f32 %v736_v31, %v415_v44  ;;  %v226_v59 = vmul.f32 %v664_v1, %v386_v43  ;;  %v312_v62 = vmul.f32 %v714_v19, %v386_v43  ;;  %v388_v35 = vld [vmem:[#allocation2 + $0x50] sm:$0xff] }
  0x24   : > { %v376_v51 = vadd.f32 %v368_v37, %v347_v41  ;;  %v291_v61 = vadd.f32 %v283_v55, %v262_v54  ;;  %v255_v0 = vmul.f32 %v669_v2, %v415_v44  ;;  %v457_v13 = vmul.f32 %v743_v36, %v444_v53  ;;  %v417_v45 = vld [vmem:[#allocation2 + $0x51] sm:$0xff] }
  0x25   : > { %v319_v56 = vadd.f32 %v311_v49, %v290_v48  ;;  %v341_v14 = vmul.f32 %v719_v20, %v415_v44  ;;  %v370_v15 = vmul.f32 %v724_v24, %v444_v53  ;;  %v284_v23 = vmul.f32 %v674_v3, %v444_v53  ;;  %v446_v54 = vld [vmem:[#allocation2 + $0x52] sm:$0xff] }
  0x26   : > { %v406_v60 = vadd.f32 %v398_v38, %v376_v51  ;;  %v320_v18 = vadd.f32 %v312_v62, %v291_v61  ;;  %v263_v22 = vadd.f32 %v255_v0, %v226_v59  ;;  %v400_v27 = vmul.f32 %v730_v28, %v387_v63  ;;  %v389_v0 = vld [vmem:[#allocation2 + $0x60] sm:$0xff] }
  0x27   : > { %v348_v12 = vadd.f32 %v340_v50, %v319_v56  ;;  %v313_v29 = vmul.f32 %v714_v19, %v387_v63  ;;  %v227_v30 = vmul.f32 %v664_v1, %v387_v63  ;;  %v256_v37 = vmul.f32 %v669_v2, %v416_v16 }
  0x28   : > { %v435_v17 = vadd.f32 %v427_v42, %v406_v60  ;;  %v349_v33 = vadd.f32 %v341_v14, %v320_v18  ;;  %v292_v34 = vadd.f32 %v284_v23, %v263_v22  ;;  %v429_v39 = vmul.f32 %v736_v31, %v416_v16 }
  0x29   : > { %v377_v26 = vadd.f32 %v369_v52, %v348_v12  ;;  %v342_v40 = vmul.f32 %v719_v20, %v416_v16  ;;  %v285_v41 = vmul.f32 %v674_v3, %v445_v21  ;;  %v264_v46 = vadd.f32 %v256_v37, %v227_v30 }
  0x2a   : > { %v464_v32 = vadd.f32 %v456_v47, %v435_v17  ;;  %v378_v43 = vadd.f32 %v370_v15, %v349_v33  ;;  %v321_v44 = vadd.f32 %v313_v29, %v292_v34  ;;  %v458_v48 = vmul.f32 %v743_v36, %v445_v21  ;;  %v447_v34 = vld [vmem:[#allocation2 + $0x62] sm:$0xff] }
  0x2b   : > { %v407_v38 = vadd.f32 %v399_v57, %v377_v26  ;;  %v371_v49 = vmul.f32 %v724_v24, %v445_v21  ;;  %v314_v50 = vmul.f32 %v714_v19, %v388_v35  ;;  %v293_v55 = vadd.f32 %v285_v41, %v264_v46  ;;  %v418_v21 = vld [vmem:[#allocation2 + $0x61] sm:$0xff]  ;;  %v419_v46 = vld [vmem:[#allocation2 + $0x71] sm:$0xff] }
  0x2c   : > { %v479_v42 = vadd.f32 %v768_v25, %v464_v32  ;;  %v408_v52 = vadd.f32 %v400_v27, %v378_v43  ;;  %v350_v53 = vadd.f32 %v342_v40, %v321_v44  ;;  %v401_v57 = vmul.f32 %v730_v28, %v388_v35 }
  0x2d   : > { %v436_v47 = vadd.f32 %v428_v58, %v407_v38  ;;  %v228_v59 = vmul.f32 %v664_v1, %v388_v35  ;;  %v257_v60 = vmul.f32 %v669_v2, %v417_v45  ;;  %v322_v62 = vadd.f32 %v314_v50, %v293_v55  ;;  %v390_v38 = vld [vmem:[#allocation2 + $0x70] sm:$0xff] }
  0x2e   : > { %v487_v51 = vadd.f32 %v479_v42, %v676_v4  ;;  %v437_v58 = vadd.f32 %v429_v39, %v408_v52  ;;  %v379_v61 = vadd.f32 %v371_v49, %v350_v53  ;;  %v343_v63 = vmul.f32 %v719_v20, %v417_v45  ;;  %v448_v53 = vld [vmem:[#allocation2 + $0x72] sm:$0xff] }
  0x2f   : > { %v465_v56 = vadd.f32 %v457_v13, %v436_v47  ;;  %v430_v12 = vmul.f32 %v736_v31, %v417_v45  ;;  %v265_v14 = vadd.f32 %v257_v60, %v228_v59  ;;  %v286_v13 = vmul.f32 %v674_v3, %v446_v54 }
  0x30   : > { %495 = vst.msk [vmem:[%s783_s17] sm:$0xff] %vm179_vm0, %v487_v51  ;;  %v466_v15 = vadd.f32 %v458_v48, %v437_v58  ;;  %v409_v16 = vadd.f32 %v401_v57, %v379_v61  ;;  %v351_v17 = vadd.f32 %v343_v63, %v322_v62  ;;  %v372_v18 = vmul.f32 %v724_v24, %v446_v54 }
  0x31   : > { %v480_v4 = vadd.f32 %v768_v25, %v465_v56  ;;  %v459_v23 = vmul.f32 %v743_v36, %v446_v54  ;;  %v294_v26 = vadd.f32 %v286_v13, %v265_v14  ;;  %v315_v27 = vmul.f32 %v714_v19, %v389_v0  ;;  %v391_v56 = vld [vmem:[#allocation2 + $0x80] sm:$0xff] }
  0x32   : > { %v481_v29 = vadd.f32 %v768_v25, %v466_v15  ;;  %v438_v30 = vadd.f32 %v430_v12, %v409_v16  ;;  %v380_v32 = vadd.f32 %v372_v18, %v351_v17  ;;  %v402_v33 = vmul.f32 %v730_v28, %v389_v0  ;;  %v420_v16 = vld [vmem:[#allocation2 + $0x81] sm:$0xff] }
  0x33   : > { %v488_v22 = vadd.f32 %v480_v4, %v678_v5  ;;  %v323_v35 = vadd.f32 %v315_v27, %v294_v26  ;;  %v344_v37 = vmul.f32 %v719_v20, %v418_v21  ;;  %v229_v5 = vmul.f32 %v664_v1, %v389_v0  ;;  %v449_v26 = vld [vmem:[#allocation2 + $0x82] sm:$0xff]  ;;  %v392_v27 = vld [vmem:[#allocation2 + $0x90] sm:$0xff] }
  0x34   : > { %v258_v39 = vmul.f32 %v669_v2, %v418_v21  ;;  %v489_v40 = vadd.f32 %v481_v29, %v680_v6  ;;  %v467_v41 = vadd.f32 %v459_v23, %v438_v30  ;;  %v410_v42 = vadd.f32 %v402_v33, %v380_v32 }
  0x35   : > { %496 = vst.msk [vmem:[%s783_s17 + $0x8] sm:$0xff] %vm179_vm0, %v488_v22  ;;  %v431_v43 = vmul.f32 %v736_v31, %v418_v21  ;;  %v352_v44 = vadd.f32 %v344_v37, %v323_v35  ;;  %v373_v45 = vmul.f32 %v724_v24, %v447_v34  ;;  %v287_v48 = vmul.f32 %v674_v3, %v447_v34 }
  0x36   : > { %v266_v47 = vadd.f32 %v258_v39, %v229_v5  ;;  %497 = vst.msk [vmem:[%s783_s17 + $0x10] sm:$0xff] %vm179_vm0, %v489_v40  ;;  %v482_v49 = vadd.f32 %v768_v25, %v467_v41  ;;  %v460_v51 = vmul.f32 %v743_v36, %v447_v34  ;;  %v403_v6 = vmul.f32 %v730_v28, %v390_v38  ;;  %v421_v5 = vld [vmem:[#allocation2 + $0x91] sm:$0xff] }
  0x37   : > { %v439_v50 = vadd.f32 %v431_v43, %v410_v42  ;;  %v381_v52 = vadd.f32 %v373_v45, %v352_v44  ;;  %v316_v55 = vmul.f32 %v714_v19, %v390_v38  ;;  %v230_v57 = vmul.f32 %v664_v1, %v390_v38  ;;  %v450_v40 = vld [vmem:[#allocation2 + $0x92] sm:$0xff] }
  0x38   : > { %v295_v54 = vadd.f32 %v287_v48, %v266_v47  ;;  %v490_v59 = vadd.f32 %v482_v49, %v688_v7  ;;  %v259_v58 = vmul.f32 %v669_v2, %v419_v46  ;;  %v432_v62 = vmul.f32 %v736_v31, %v419_v46 }
  0x39   : > { %v468_v60 = vadd.f32 %v460_v51, %v439_v50  ;;  %v411_v61 = vadd.f32 %v403_v6, %v381_v52  ;;  %v345_v0 = vmul.f32 %v719_v20, %v419_v46  ;;  %v288_v14 = vmul.f32 %v674_v3, %v448_v53 }
  0x3a   : > { %v324_v63 = vadd.f32 %v316_v55, %v295_v54  ;;  %498 = vst.msk [vmem:[%s783_s17 + $0x18] sm:$0xff] %vm179_vm0, %v490_v59  ;;  %v267_v12 = vadd.f32 %v259_v58, %v230_v57  ;;  %v317_v1 = vmul.f32 %v714_v19, %v391_v56  ;;  %v461_v13 = vmul.f32 %v743_v36, %v448_v53 }
  0x3b   : > { %v483_v4 = vadd.f32 %v768_v25, %v468_v60  ;;  %v440_v7 = vadd.f32 %v432_v62, %v411_v61  ;;  %v374_v15 = vmul.f32 %v724_v24, %v448_v53  ;;  %v404_v23 = vmul.f32 %v730_v28, %v391_v56 }
  0x3c   : > { %v353_v2 = vadd.f32 %v345_v0, %v324_v63  ;;  %v296_v18 = vadd.f32 %v288_v14, %v267_v12  ;;  %v346_v19 = vmul.f32 %v719_v20, %v420_v16  ;;  %v433_v32 = vmul.f32 %v736_v31, %v420_v16 }
  0x3d   : > { %v491_v17 = vadd.f32 %v483_v4, %v690_v8  ;;  %v469_v21 = vadd.f32 %v461_v13, %v440_v7  ;;  %v375_v8 = vmul.f32 %v724_v24, %v449_v26  ;;  %v405_v34 = vmul.f32 %v730_v28, %v392_v27 }
  0x3e   : > { %v382_v22 = vadd.f32 %v374_v15, %v353_v2  ;;  %v325_v3 = vadd.f32 %v317_v1, %v296_v18  ;;  %v462_v38 = vmul.f32 %v743_v36, %v449_v26  ;;  %v434_v42 = vmul.f32 %v736_v31, %v421_v5 }
  0x3f   : > { %499 = vst.msk [vmem:[%s783_s17 + $0x20] sm:$0xff] %vm179_vm0, %v491_v17  ;;  %v484_v29 = vadd.f32 %v768_v25, %v469_v21  ;;  %v463_v28 = vmul.f32 %v743_v36, %v450_v40 }
  0x40   : > { %v412_v30 = vadd.f32 %v404_v23, %v382_v22  ;;  %v354_v33 = vadd.f32 %v346_v19, %v325_v3 }
  0x41   : > { %v492_v35 = vadd.f32 %v484_v29, %v692_v9 }
  0x42   : > { %v441_v37 = vadd.f32 %v433_v32, %v412_v30  ;;  %v383_v39 = vadd.f32 %v375_v8, %v354_v33 }
  0x43   : > { %500 = vst.msk [vmem:[%s783_s17 + $0x28] sm:$0xff] %vm179_vm0, %v492_v35 }
  0x44   : > { %v470_v20 = vadd.f32 %v462_v38, %v441_v37  ;;  %v413_v41 = vadd.f32 %v405_v34, %v383_v39 }
  0x46   : > { %v485_v24 = vadd.f32 %v768_v25, %v470_v20  ;;  %v442_v43 = vadd.f32 %v434_v42, %v413_v41 }
  0x48   : > { %v493_v9 = vadd.f32 %v485_v24, %v700_v10  ;;  %v471_v44 = vadd.f32 %v463_v28, %v442_v43 }
  0x4a   : > { %501 = vst.msk [vmem:[%s783_s17 + $0x30] sm:$0xff] %vm179_vm0, %v493_v9  ;;  %v486_v45 = vadd.f32 %v768_v25, %v471_v44 }
  0x4c   : > { %v494_v46 = vadd.f32 %v486_v45, %v702_v11 }
  0x4e   : > { %502 = vst.msk [vmem:[%s783_s17 + $0x38] sm:$0xff] %vm179_vm0, %v494_v46 }
  0x4f PF: > { %s13_s12 = sadd.s32 1, %s596_s12  }
  0x50   : > { %p10_p4 = scmp.ge.s32.totalorder %s13_s12, 4  }
  0x52   :  { %12 = sbr.rel (!%p10_p4) target bundleno = 1 (0x1), region = 64 }

// kernel: mlla_forward_pallas.13
= control target key start
LH: loop header
LB: loop body
LE: loop exit
PB: predicated region body
PF: predicated region fallthrough
CT: control target
= control target key end

     0   :  { %s707_s12 = smov 0   ;;  %s937_s0 = inlined_call_operand.vmem [shape: f32[2,8,8,16], index: 0, kind: input, shape index: {}]   ;;  %s938_s1 = inlined_call_operand.vmem [shape: f32[9,16], index: 1, kind: input, shape index: {}]   ;;  %s939_s2 = inlined_call_operand.vmem [shape: f32[1,16], index: 2, kind: input, shape index: {}]   ;;  %s940_s3 = inlined_call_operand.vmem [shape: f32[2,8,8,16], index: 3, kind: output, shape index: {}]  }
   0x1 LB: > { %s606_s13 = sadd.s32 4294967295, %s684_s12   ;;  %p610_p0 = scmp.ge.s32.totalorder %s684_s12, 1  ;;  %s684_s12 = sphi %s707_s12, %s13_s12  }
   0x2   : > { %p137_p1 = scmp.lt.s32.totalorder %s684_s12, 3 }
   0x4   : > { %p138_p2 = pnand %p610_p0, %p137_p1 }
   0x5   : > { %p715_p3 = scmp.lt.s32.totalorder (!%p138_p2), %s606_s13, 1 }
   0x6   : > { %141 = sbr.rel (%p138_p2) target bundleno = 115 (0x73), region = 32 }
   0xb   : > { %vm179_vm0 = vcmask 130048   ;;  %vm181_vm1 = vcmask 123904   ;;  %v686_v0 = vmov 0.0   ;;  %s943_s13 = smov (!%p715_p3, %s606_s13), 1  ;;  %v752_v1 = vld [vmem:[%s938_s1] ss:$0 sm:$0xff] }
   0xc   : > { %180 = vst.msk [vmem:[#allocation2] sm:$0xff] %vm179_vm0, %v686_v0  ;;  %183 = vst.msk [vmem:[#allocation2 + $0x10] sm:$0xff] %vm179_vm0, %v686_v0  ;;  %s635_s15 = sshll.u32 %s943_s13, 6  ;;  %v757_v2 = vld [vmem:[%s938_s1 + $0x1] ss:$0 sm:$0xff] }
   0xd   : > { %185 = vst.msk [vmem:[#allocation2 + $0x20] sm:$0xff] %vm179_vm0, %v686_v0  ;;  %187 = vst.msk [vmem:[#allocation2 + $0x30] sm:$0xff] %vm179_vm0, %v686_v0  ;;  %s165_s18 = scalar_lea.vmem %s937_s0, %s635_s15  ;;  %v762_v3 = vld [vmem:[%s938_s1 + $0x2] ss:$0 sm:$0xff]  ;;  %v778_v19 = vld [vmem:[%s938_s1 + $0x3] ss:$0 sm:$0xff]  ;;  %s909_s17 = scalar_lea.vmem %s940_s3, %s635_s15 }
   0xe   : > { %189 = vst.msk [vmem:[#allocation2 + $0x40] sm:$0xff] %vm179_vm0, %v686_v0  ;;  %191 = vst.msk [vmem:[#allocation2 + $0x50] sm:$0xff] %vm179_vm0, %v686_v0  ;;  %v171_v4 = vld [vmem:[%s165_s18] sm:$0xff]  ;;  %v172_v5 = vld [vmem:[%s165_s18 + $0x8] sm:$0xff] }
   0xf   : > { %193 = vst.msk [vmem:[#allocation2 + $0x60] sm:$0xff] %vm179_vm0, %v686_v0  ;;  %195 = vst.msk [vmem:[#allocation2 + $0x70] sm:$0xff] %vm179_vm0, %v686_v0  ;;  %v173_v6 = vld [vmem:[%s165_s18 + $0x10] sm:$0xff]  ;;  %v174_v7 = vld [vmem:[%s165_s18 + $0x18] sm:$0xff] }
  0x10   : > { %197 = vst.msk [vmem:[#allocation2 + $0x80] sm:$0xff] %vm179_vm0, %v686_v0  ;;  %199 = vst.msk [vmem:[#allocation2 + $0x90] sm:$0xff] %vm179_vm0, %v686_v0  ;;  %v175_v8 = vld [vmem:[%s165_s18 + $0x20] sm:$0xff]  ;;  %v176_v9 = vld [vmem:[%s165_s18 + $0x28] sm:$0xff] }
  0x11   : > { %182 = vst.msk [vmem:[#allocation2 + $0x8] sm:$0x3] %vm181_vm1, %v686_v0  ;;  %184 = vst.msk [vmem:[#allocation2 + $0x18] sm:$0x3] %vm181_vm1, %v686_v0  ;;  %v177_v10 = vld [vmem:[%s165_s18 + $0x30] sm:$0xff]  ;;  %v178_v11 = vld [vmem:[%s165_s18 + $0x38] sm:$0xff] }
  0x12   : > { %186 = vst.msk [vmem:[#allocation2 + $0x28] sm:$0x3] %vm181_vm1, %v686_v0  ;;  %188 = vst.msk [vmem:[#allocation2 + $0x38] sm:$0x3] %vm181_vm1, %v686_v0  ;;  %v783_v20 = vld [vmem:[%s938_s1 + $0x4] ss:$0 sm:$0xff] }
  0x13   : > { %190 = vst.msk [vmem:[#allocation2 + $0x48] sm:$0x3] %vm181_vm1, %v686_v0  ;;  %192 = vst.msk [vmem:[#allocation2 + $0x58] sm:$0x3] %vm181_vm1, %v686_v0  ;;  %v210_v12 = vld [vmem:[#allocation2] sm:$0xff] }
  0x14   : > { %194 = vst.msk [vmem:[#allocation2 + $0x68] sm:$0x3] %vm181_vm1, %v686_v0  ;;  %196 = vst.msk [vmem:[#allocation2 + $0x78] sm:$0x3] %vm181_vm1, %v686_v0  ;;  %v223_v13 = vmul.f32 %v752_v1, %v210_v12  ;;  %v788_v21 = vld [vmem:[%s938_s1 + $0x5] ss:$0 sm:$0xff] }
  0x15   : > { %198 = vst.msk [vmem:[#allocation2 + $0x88] sm:$0x3] %vm181_vm1, %v686_v0  ;;  %200 = vst.msk [vmem:[#allocation2 + $0x98] sm:$0x3] %vm181_vm1, %v686_v0  ;;  %v793_v22 = vld [vmem:[%s938_s1 + $0x6] ss:$0 sm:$0xff] }
  0x16   : > { %202 = vst.msk [vmem:[#allocation2 + $0x11] sm:$0xff] %vm179_vm0, %v171_v4  ;;  %203 = vst.msk [vmem:[#allocation2 + $0x21] sm:$0xff] %vm179_vm0, %v172_v5  ;;  %v798_v23 = vld [vmem:[%s938_s1 + $0x7] ss:$0 sm:$0xff]  ;;  %v803_v24 = vld [vmem:[%s938_s1 + $0x8] ss:$0 sm:$0xff] }
  0x17   : > { %204 = vst.msk [vmem:[#allocation2 + $0x31] sm:$0xff] %vm179_vm0, %v173_v6  ;;  %205 = vst.msk [vmem:[#allocation2 + $0x41] sm:$0xff] %vm179_vm0, %v174_v7 }
  0x18   : > { %206 = vst.msk [vmem:[#allocation2 + $0x51] sm:$0xff] %vm179_vm0, %v175_v8  ;;  %207 = vst.msk [vmem:[#allocation2 + $0x61] sm:$0xff] %vm179_vm0, %v176_v9  ;;  %v239_v14 = vld [vmem:[#allocation2 + $0x1] sm:$0xff] }
  0x19   : > { %208 = vst.msk [vmem:[#allocation2 + $0x71] sm:$0xff] %vm179_vm0, %v177_v10  ;;  %209 = vst.msk [vmem:[#allocation2 + $0x81] sm:$0xff] %vm179_vm0, %v178_v11  ;;  %v268_v15 = vld [vmem:[#allocation2 + $0x2] sm:$0xff]  ;;  %v252_v16 = vmul.f32 %v757_v2, %v239_v14 }
  0x1a   : > { %v281_v17 = vmul.f32 %v762_v3, %v268_v15 }
  0x1b   : > { %v260_v18 = vadd.f32 %v252_v16, %v223_v13  ;;  %v834_v16 = vld [vmem:[%s939_s2] ss:$0 sm:$0xff] }
  0x1d   : > { %v289_v25 = vadd.f32 %v281_v17, %v260_v18  ;;  %v297_v26 = vld [vmem:[#allocation2 + $0x10] sm:$0xff]  ;;  %v385_v30 = vld [vmem:[#allocation2 + $0x20] sm:$0xff] }
  0x1e   : > { %v326_v27 = vld [vmem:[#allocation2 + $0x11] sm:$0xff]  ;;  %v310_v29 = vmul.f32 %v778_v19, %v297_v26  ;;  %v414_v31 = vld [vmem:[#allocation2 + $0x21] sm:$0xff]  ;;  %v224_v33 = vmul.f32 %v752_v1, %v297_v26  ;;  %v398_v38 = vmul.f32 %v793_v22, %v385_v30  ;;  %v311_v46 = vmul.f32 %v778_v19, %v385_v30 }
  0x1f   : > { %v355_v28 = vld [vmem:[#allocation2 + $0x12] sm:$0xff]  ;;  %v443_v32 = vld [vmem:[#allocation2 + $0x22] sm:$0xff]  ;;  %v253_v34 = vmul.f32 %v757_v2, %v326_v27  ;;  %v339_v36 = vmul.f32 %v783_v20, %v326_v27  ;;  %v427_v40 = vmul.f32 %v798_v23, %v414_v31  ;;  %v225_v48 = vmul.f32 %v752_v1, %v385_v30 }
  0x20   : > { %v318_v35 = vadd.f32 %v310_v29, %v289_v25  ;;  %v368_v37 = vmul.f32 %v788_v21, %v355_v28  ;;  %v386_v39 = vld [vmem:[#allocation2 + $0x30] sm:$0xff]  ;;  %v456_v41 = vmul.f32 %v803_v24, %v443_v32  ;;  %v282_v43 = vmul.f32 %v762_v3, %v355_v28  ;;  %v387_v58 = vld [vmem:[#allocation2 + $0x40] sm:$0xff] }
  0x21   : > { %v261_v42 = vadd.f32 %v253_v34, %v224_v33  ;;  %v415_v44 = vld [vmem:[#allocation2 + $0x31] sm:$0xff]  ;;  %v254_v49 = vmul.f32 %v757_v2, %v414_v31  ;;  %v340_v51 = vmul.f32 %v783_v20, %v414_v31  ;;  %v369_v52 = vmul.f32 %v788_v21, %v443_v32  ;;  %v416_v59 = vld [vmem:[#allocation2 + $0x41] sm:$0xff] }
  0x22   : > { %v347_v45 = vadd.f32 %v339_v36, %v318_v35  ;;  %v444_v47 = vld [vmem:[#allocation2 + $0x32] sm:$0xff]  ;;  %v399_v53 = vmul.f32 %v793_v22, %v386_v39  ;;  %v428_v55 = vmul.f32 %v798_v23, %v415_v44  ;;  %v283_v57 = vmul.f32 %v762_v3, %v443_v32  ;;  %v445_v6 = vld [vmem:[#allocation2 + $0x42] sm:$0xff] }
  0x23   : > { %v290_v50 = vadd.f32 %v282_v43, %v261_v42  ;;  %v262_v56 = vadd.f32 %v254_v49, %v225_v48  ;;  %v457_v61 = vmul.f32 %v803_v24, %v444_v47  ;;  %v312_v62 = vmul.f32 %v778_v19, %v386_v39  ;;  %v388_v30 = vld [vmem:[#allocation2 + $0x50] sm:$0xff] }
  0x24   : > { %v376_v54 = vadd.f32 %v368_v37, %v347_v45  ;;  %v226_v63 = vmul.f32 %v752_v1, %v386_v39  ;;  %v341_v5 = vmul.f32 %v783_v20, %v415_v44  ;;  %v255_v7 = vmul.f32 %v757_v2, %v415_v44  ;;  %v417_v31 = vld [vmem:[#allocation2 + $0x51] sm:$0xff] }
  0x25   : > { %v319_v60 = vadd.f32 %v311_v46, %v290_v50  ;;  %v291_v4 = vadd.f32 %v283_v57, %v262_v56  ;;  %v370_v9 = vmul.f32 %v788_v21, %v444_v47  ;;  %v400_v10 = vmul.f32 %v793_v22, %v387_v58  ;;  %v446_v48 = vld [vmem:[#allocation2 + $0x52] sm:$0xff]  ;;  %v389_v57 = vld [vmem:[#allocation2 + $0x60] sm:$0xff] }
  0x26   : > { %v406_v0 = vadd.f32 %v398_v38, %v376_v54  ;;  %v429_v11 = vmul.f32 %v798_v23, %v416_v59  ;;  %v263_v14 = vadd.f32 %v255_v7, %v226_v63  ;;  %v284_v15 = vmul.f32 %v762_v3, %v444_v47 }
  0x27   : > { %v348_v8 = vadd.f32 %v340_v51, %v319_v60  ;;  %v320_v13 = vadd.f32 %v312_v62, %v291_v4  ;;  %v458_v18 = vmul.f32 %v803_v24, %v445_v6  ;;  %v313_v25 = vmul.f32 %v778_v19, %v387_v58  ;;  %v418_v60 = vld [vmem:[#allocation2 + $0x61] sm:$0xff] }
  0x28   : > { %v435_v12 = vadd.f32 %v427_v40, %v406_v0  ;;  %v227_v26 = vmul.f32 %v752_v1, %v387_v58  ;;  %v292_v29 = vadd.f32 %v284_v15, %v263_v14  ;;  %v256_v32 = vmul.f32 %v757_v2, %v416_v59  ;;  %v447_v14 = vld [vmem:[#allocation2 + $0x62] sm:$0xff] }
  0x29   : > { %v377_v17 = vadd.f32 %v369_v52, %v348_v8  ;;  %v349_v28 = vadd.f32 %v341_v5, %v320_v13  ;;  %v342_v34 = vmul.f32 %v783_v20, %v416_v59  ;;  %v371_v35 = vmul.f32 %v788_v21, %v445_v6 }
  0x2a   : > { %v464_v27 = vadd.f32 %v456_v41, %v435_v12  ;;  %v285_v36 = vmul.f32 %v762_v3, %v445_v6  ;;  %v321_v39 = vadd.f32 %v313_v25, %v292_v29  ;;  %v264_v40 = vadd.f32 %v256_v32, %v227_v26  ;;  %v419_v29 = vld [vmem:[#allocation2 + $0x71] sm:$0xff] }
  0x2b   : > { %v407_v33 = vadd.f32 %v399_v53, %v377_v17  ;;  %v378_v38 = vadd.f32 %v370_v9, %v349_v28  ;;  %v401_v42 = vmul.f32 %v793_v22, %v388_v30  ;;  %v430_v43 = vmul.f32 %v798_v23, %v417_v31  ;;  %v390_v28 = vld [vmem:[#allocation2 + $0x70] sm:$0xff] }
  0x2c   : > { %v844_v37 = vadd.f32 %v834_v16, %v464_v27  ;;  %v314_v44 = vmul.f32 %v778_v19, %v388_v30  ;;  %v350_v47 = vadd.f32 %v342_v34, %v321_v39  ;;  %v293_v49 = vadd.f32 %v285_v36, %v264_v40 }
  0x2d   : > { %v436_v41 = vadd.f32 %v428_v55, %v407_v33  ;;  %v408_v46 = vadd.f32 %v400_v10, %v378_v38  ;;  %v343_v51 = vmul.f32 %v783_v20, %v417_v31  ;;  %v228_v52 = vmul.f32 %v752_v1, %v388_v30  ;;  %v448_v38 = vld [vmem:[#allocation2 + $0x72] sm:$0xff] }
  0x2e   : > { %v625_v45 = vmul.f32 -1.442695, %v844_v37  ;;  %v257_v53 = vmul.f32 %v757_v2, %v417_v31  ;;  %v379_v55 = vadd.f32 %v371_v35, %v350_v47  ;;  %v322_v56 = vadd.f32 %v314_v44, %v293_v49  ;;  %v391_v47 = vld [vmem:[#allocation2 + $0x80] sm:$0xff] }
  0x2f   : > { %v465_v50 = vadd.f32 %v457_v61, %v436_v41  ;;  %v437_v54 = vadd.f32 %v429_v11, %v408_v46  ;;  %v459_v59 = vmul.f32 %v803_v24, %v446_v48  ;;  %v286_v61 = vmul.f32 %v762_v3, %v446_v48 }
  0x30   : > { %646 = vpow2.f32 %v625_v45  ;;  %v265_v62 = vadd.f32 %v257_v53, %v228_v52  ;;  %v409_v0 = vadd.f32 %v401_v42, %v379_v55  ;;  %v351_v4 = vadd.f32 %v343_v51, %v322_v56 }
  0x31   : > { %v854_v58 = vadd.f32 %v834_v16, %v465_v50  ;;  %v466_v63 = vadd.f32 %v458_v18, %v437_v54  ;;  %v372_v5 = vmul.f32 %v788_v21, %v446_v48  ;;  %v402_v7 = vmul.f32 %v793_v22, %v389_v57 }
  0x32   : > { %v294_v8 = vadd.f32 %v286_v61, %v265_v62  ;;  %v315_v9 = vmul.f32 %v778_v19, %v389_v57  ;;  %v438_v11 = vadd.f32 %v430_v43, %v409_v0  ;;  %v431_v13 = vmul.f32 %v798_v23, %v418_v60 }
  0x33   : > { %v626_v6 = vmul.f32 -1.442695, %v854_v58  ;;  %v863_v10 = vadd.f32 %v834_v16, %v466_v63  ;;  %v380_v12 = vadd.f32 %v372_v5, %v351_v4  ;;  %v344_v17 = vmul.f32 %v783_v20, %v418_v60  ;;  %v420_v63 = vld [vmem:[#allocation2 + $0x81] sm:$0xff]  ;;  %v392_v5 = vld [vmem:[#allocation2 + $0x90] sm:$0xff] }
  0x34   : > { %v323_v15 = vadd.f32 %v315_v9, %v294_v8  ;;  %v229_v18 = vmul.f32 %v752_v1, %v389_v57  ;;  %v467_v26 = vadd.f32 %v459_v59, %v438_v11  ;;  %v258_v30 = vmul.f32 %v757_v2, %v418_v60  ;;  %v449_v8 = vld [vmem:[#allocation2 + $0x82] sm:$0xff] }
  0x35   : > { %648 = vpow2.f32 %v626_v6  ;;  %v627_v25 = vmul.f32 -1.442695, %v863_v10  ;;  %v410_v27 = vadd.f32 %v402_v7, %v380_v12  ;;  %v460_v31 = vmul.f32 %v803_v24, %v447_v14 }
  0x36   : > { %v352_v32 = vadd.f32 %v344_v17, %v323_v15  ;;  %v373_v33 = vmul.f32 %v788_v21, %v447_v14  ;;  %v287_v34 = vmul.f32 %v762_v3, %v447_v14  ;;  %v874_v35 = vadd.f32 %v834_v16, %v467_v26 }
  0x37   : > { %650 = vpow2.f32 %v627_v25  ;;  %v439_v36 = vadd.f32 %v431_v13, %v410_v27  ;;  %v266_v39 = vadd.f32 %v258_v30, %v229_v18  ;;  %v403_v41 = vmul.f32 %v793_v22, %v390_v28 }
  0x38   : > { %v381_v40 = vadd.f32 %v373_v33, %v352_v32  ;;  %v432_v42 = vmul.f32 %v798_v23, %v419_v29  ;;  %v628_v43 = vmul.f32 -1.442695, %v874_v35  ;;  %v316_v46 = vmul.f32 %v778_v19, %v390_v28  ;;  %v450_v32 = vld [vmem:[#allocation2 + $0x92] sm:$0xff] }
  0x39   : > { %v468_v44 = vadd.f32 %v460_v31, %v439_v36  ;;  %v295_v45 = vadd.f32 %v287_v34, %v266_v39  ;;  %v461_v49 = vmul.f32 %v803_v24, %v448_v38  ;;  %v230_v50 = vmul.f32 %v752_v1, %v390_v28  ;;  %v421_v28 = vld [vmem:[#allocation2 + $0x91] sm:$0xff] }
  0x3a   : > { %v411_v48 = vadd.f32 %v403_v41, %v381_v40  ;;  %v259_v51 = vmul.f32 %v757_v2, %v419_v29  ;;  %652 = vpow2.f32 %v628_v43  ;;  %v345_v54 = vmul.f32 %v783_v20, %v419_v29 }
  0x3b   : > { %v884_v52 = vadd.f32 %v834_v16, %v468_v44  ;;  %v324_v53 = vadd.f32 %v316_v46, %v295_v45  ;;  %v288_v59 = vmul.f32 %v762_v3, %v448_v38  ;;  %v317_v60 = vmul.f32 %v778_v19, %v391_v47 }
  0x3c   : > { %v440_v56 = vadd.f32 %v432_v42, %v411_v48  ;;  %v267_v57 = vadd.f32 %v259_v51, %v230_v50  ;;  %v374_v2 = vmul.f32 %v788_v21, %v448_v38  ;;  %v404_v7 = vmul.f32 %v793_v22, %v391_v47 }
  0x3d   : > { %v647_v55 = vpop.eup %646  ;;  %v629_v61 = vmul.f32 -1.442695, %v884_v52  ;;  %v353_v1 = vadd.f32 %v345_v54, %v324_v53  ;;  %v346_v9 = vmul.f32 %v783_v20, %v420_v63  ;;  %v433_v13 = vmul.f32 %v798_v23, %v420_v63 }
  0x3e   : > { %v511_v62 = vadd.f32 1.0, %v647_v55  ;;  %v469_v0 = vadd.f32 %v461_v49, %v440_v56  ;;  %v296_v4 = vadd.f32 %v288_v59, %v267_v57  ;;  %v405_v14 = vmul.f32 %v793_v22, %v392_v5 }
  0x3f   : > { %v382_v6 = vadd.f32 %v374_v2, %v353_v1  ;;  %v375_v25 = vmul.f32 %v788_v21, %v449_v8  ;;  %v462_v27 = vmul.f32 %v803_v24, %v449_v8  ;;  %v434_v22 = vmul.f32 %v798_v23, %v421_v28 }
  0x40   : > { %654 = vrcp.f32 %v511_v62  ;;  %v893_v3 = vadd.f32 %v834_v16, %v469_v0  ;;  %v325_v19 = vadd.f32 %v317_v60, %v296_v4  ;;  %v463_v38 = vmul.f32 %v803_v24, %v450_v32 }
  0x41   : > { %656 = vpow2.f32 %v629_v61  ;;  %v412_v12 = vadd.f32 %v404_v7, %v382_v6 }
  0x42   : > { %v649_v11 = vpop.eup %648  ;;  %v630_v17 = vmul.f32 -1.442695, %v893_v3  ;;  %v354_v18 = vadd.f32 %v346_v9, %v325_v19 }
  0x43   : > { %v512_v15 = vadd.f32 1.0, %v649_v11  ;;  %v441_v26 = vadd.f32 %v433_v13, %v412_v12 }
  0x44   : > { %v651_v29 = vpop.eup %650  ;;  %v383_v30 = vadd.f32 %v375_v25, %v354_v18 }
  0x45   : > { %658 = vrcp.f32 %v512_v15  ;;  %v513_v20 = vadd.f32 1.0, %v651_v29  ;;  %v470_v31 = vadd.f32 %v462_v27, %v441_v26 }
  0x46   : > { %660 = vpow2.f32 %v630_v17  ;;  %v413_v33 = vadd.f32 %v405_v14, %v383_v30 }
  0x47   : > { %662 = vrcp.f32 %v513_v20  ;;  %v485_v34 = vadd.f32 %v834_v16, %v470_v31  ;;  %v653_v36 = vpop.eup %652 }
  0x48   : > { %v442_v21 = vadd.f32 %v434_v22, %v413_v33  ;;  %v514_v39 = vadd.f32 1.0, %v653_v36 }
  0x49   : > { %v631_v40 = vmul.f32 -1.442695, %v485_v34 }
  0x4a   : > { %v471_v41 = vadd.f32 %v463_v38, %v442_v21  ;;  %664 = vrcp.f32 %v514_v39 }
  0x4b   : > { %666 = vpow2.f32 %v631_v40 }
  0x4c   : > { %v486_v23 = vadd.f32 %v834_v16, %v471_v41 }
  0x4d   : > { %v655_v42 = vpop.eup %654 }
  0x4e   : > { %v657_v43 = vpop.eup %656  ;;  %v535_v24 = vmul.f32 %v655_v42, %v844_v37  ;;  %v632_v45 = vmul.f32 -1.442695, %v486_v23 }
  0x4f   : > { %v515_v44 = vadd.f32 1.0, %v657_v43 }
  0x50   : > { %543 = vst.msk [vmem:[%s909_s17] sm:$0xff] %vm179_vm0, %v535_v24 }
  0x51   : > { %668 = vrcp.f32 %v515_v44 }
  0x52   : > { %v659_v46 = vpop.eup %658  ;;  %670 = vpow2.f32 %v632_v45 }
  0x53   : > { %v661_v47 = vpop.eup %660  ;;  %v536_v48 = vmul.f32 %v659_v46, %v854_v58 }
  0x54   : > { %v516_v49 = vadd.f32 1.0, %v661_v47  ;;  %v663_v50 = vpop.eup %662 }
  0x55   : > { %544 = vst.msk [vmem:[%s909_s17 + $0x8] sm:$0xff] %vm179_vm0, %v536_v48  ;;  %v537_v16 = vmul.f32 %v663_v50, %v863_v10 }
  0x56   : > { %672 = vrcp.f32 %v516_v49 }
  0x57   : > { %545 = vst.msk [vmem:[%s909_s17 + $0x10] sm:$0xff] %vm179_vm0, %v537_v16  ;;  %v665_v37 = vpop.eup %664 }
  0x58   : > { %v667_v51 = vpop.eup %666  ;;  %v538_v53 = vmul.f32 %v665_v37, %v874_v35 }
  0x59   : > { %v517_v54 = vadd.f32 1.0, %v667_v51 }
  0x5a   : > { %546 = vst.msk [vmem:[%s909_s17 + $0x18] sm:$0xff] %vm179_vm0, %v538_v53 }
  0x5b   : > { %674 = vrcp.f32 %v517_v54 }
  0x5e   : > { %v669_v58 = vpop.eup %668 }
  0x5f   : > { %v671_v55 = vpop.eup %670  ;;  %v539_v56 = vmul.f32 %v669_v58, %v884_v52 }
  0x60   : > { %v518_v57 = vadd.f32 1.0, %v671_v55 }
  0x61   : > { %547 = vst.msk [vmem:[%s909_s17 + $0x20] sm:$0xff] %vm179_vm0, %v539_v56 }
  0x62   : > { %676 = vrcp.f32 %v518_v57 }
  0x63   : > { %v673_v10 = vpop.eup %672 }
  0x64   : > { %v540_v59 = vmul.f32 %v673_v10, %v893_v3 }
  0x66   : > { %548 = vst.msk [vmem:[%s909_s17 + $0x28] sm:$0xff] %vm179_vm0, %v540_v59 }
  0x68   : > { %v675_v60 = vpop.eup %674 }
  0x69   : > { %v541_v35 = vmul.f32 %v675_v60, %v485_v34 }
  0x6b   : > { %549 = vst.msk [vmem:[%s909_s17 + $0x30] sm:$0xff] %vm179_vm0, %v541_v35 }
  0x6f   : > { %v677_v62 = vpop.eup %676 }
  0x70   : > { %v542_v61 = vmul.f32 %v677_v62, %v486_v23 }
  0x72   : > { %550 = vst.msk [vmem:[%s909_s17 + $0x38] sm:$0xff] %vm179_vm0, %v542_v61 }
  0x73 PF: > { %s13_s12 = sadd.s32 1, %s684_s12  }
  0x74   : > { %p10_p4 = scmp.ge.s32.totalorder %s13_s12, 4  }
  0x76   :  { %12 = sbr.rel (!%p10_p4) target bundleno = 1 (0x1), region = 64 }

// kernel: mlla_forward_pallas.12
= control target key start
LH: loop header
LB: loop body
LE: loop exit
PB: predicated region body
PF: predicated region fallthrough
CT: control target
= control target key end

     0   :  { %s1083_s27 = smov 0   ;;  %s1250_s0 = inlined_call_operand.vmem [shape: f32[128,16], index: 0, kind: input, shape index: {}]   ;;  %s1251_s1 = inlined_call_operand.vmem [shape: f32[1,16], index: 1, kind: input, shape index: {}]   ;;  %s1252_s2 = inlined_call_operand.vmem [shape: f32[1,16], index: 2, kind: input, shape index: {}]   ;;  %s1253_s3 = inlined_call_operand.vmem [shape: f32[16,16], index: 3, kind: input, shape index: {}]   ;;  %s1254_s4 = inlined_call_operand.vmem [shape: f32[1,16], index: 4, kind: input, shape index: {}]   ;;  %s1255_s5 = inlined_call_operand.vmem [shape: f32[16,16], index: 5, kind: input, shape index: {}]   ;;  %s1256_s6 = inlined_call_operand.vmem [shape: f32[1,16], index: 6, kind: input, shape index: {}]   ;;  %s1257_s7 = inlined_call_operand.vmem [shape: f32[128,16], index: 7, kind: output, shape index: {0}]   ;;  %s1258_s8 = inlined_call_operand.vmem [shape: f32[128,16], index: 8, kind: output, shape index: {1}]  }
   0x1 LB: > { %s881_s28 = sadd.s32 4294967295, %s1036_s27   ;;  %p885_p0 = scmp.ge.s32.totalorder %s1036_s27, 1  ;;  %s1036_s27 = sphi %s1083_s27, %s19_s27  }
   0x2   : > { %p266_p1 = scmp.lt.s32.totalorder %s1036_s27, 3 }
   0x4   : > { %p267_p2 = pnand %p885_p0, %p266_p1 }
   0x5   : > { %s886_s29 = sshll.u32 (!%p267_p2), %s881_s28, 3 }
   0x6   : > { %270 = sbr.rel (%p267_p2) target bundleno = 571 (0x23b), region = 48  ;;  %p306_p3 = scmp.lt.s32.totalorder (!%p267_p2), %s886_s29, 15 }
   0xb   : > { %s1260_s29 = smov (!%p306_p3, %s886_s29), 15  ;;  %vm333_vm0 = vcmask 130048   ;;  %v468_v56 = vld [vmem:[%s1253_s3 + $0x8] sm:$0xff]  ;;  %v467_v58 = vld [vmem:[%s1253_s3] sm:$0xff] }
   0xc   : > { %s1091_s30 = sshll.u32 %s1260_s29, 3  ;;  %942 = vmatprep.subr.mxu0 %v468_v56  ;;  %v670_v57 = vld [vmem:[%s1255_s5 + $0x8] sm:$0xff]  ;;  %v669_v59 = vld [vmem:[%s1255_s5] sm:$0xff] }
   0xd   : > { %s309_s11 = scalar_lea.vmem %s1250_s0, %s1091_s30  ;;  %943 = vmatpush3.msra.mxu0 %v468_v56  ;;  %958 = vmatprep.subr.mxu1 %v670_v57  ;;  %s1197_s10 = scalar_lea.vmem %s1258_s8, %s1091_s30 }
   0xe   : > { %v323_v0 = vld [vmem:[%s309_s11] sm:$0xff]  ;;  %v325_v1 = vld [vmem:[%s309_s11 + $0x10] sm:$0xff]  ;;  %v324_v2 = vld [vmem:[%s309_s11 + $0x8] sm:$0xff]  ;;  %944 = vmatprep.subr.mxu0 %v467_v58  ;;  %959 = vmatpush3.msra.mxu1 %v670_v57  ;;  %s315_s13 = scalar_lea.vmem %s1257_s7, %s1091_s30 }
   0xf   : > { %v334_v3 = vsel %vm333_vm0, %v323_v0, 0.0  ;;  %v340_v4 = vsel %vm333_vm0, %v325_v1, 0.0  ;;  %v326_v5 = vld [vmem:[%s309_s11 + $0x18] sm:$0xff]  ;;  %v337_v6 = vsel %vm333_vm0, %v324_v2, 0.0  ;;  %v327_v8 = vld [vmem:[%s309_s11 + $0x20] sm:$0xff]  ;;  %v328_v9 = vld [vmem:[%s309_s11 + $0x28] sm:$0xff]  ;;  %945 = vmatpush3.msra.mxu0 %v467_v58  ;;  %960 = vmatprep.subr.mxu1 %v669_v59 }
  0x10   : > { %335 = vadd.xlane.f32.xlu0 %v334_v3  ;;  %341 = vadd.xlane.f32.xlu1 %v340_v4  ;;  %v343_v7 = vsel %vm333_vm0, %v326_v5, 0.0  ;;  %v346_v10 = vsel %vm333_vm0, %v327_v8, 0.0  ;;  %v349_v11 = vsel %vm333_vm0, %v328_v9, 0.0  ;;  %v329_v12 = vld [vmem:[%s309_s11 + $0x30] sm:$0xff]  ;;  %v330_v13 = vld [vmem:[%s309_s11 + $0x38] sm:$0xff] }
  0x11   : > { %v352_v14 = vsel %vm333_vm0, %v329_v12, 0.0  ;;  %v355_v15 = vsel %vm333_vm0, %v330_v13, 0.0  ;;  %961 = vmatpush3.msra.mxu1 %v669_v59 }
  0x14   : > { %338 = vadd.xlane.f32.xlu0 %v337_v6  ;;  %344 = vadd.xlane.f32.xlu1 %v343_v7 }
  0x18   : > { %347 = vadd.xlane.f32.xlu0 %v346_v10  ;;  %350 = vadd.xlane.f32.xlu1 %v349_v11 }
  0x1c   : > { %353 = vadd.xlane.f32.xlu0 %v352_v14  ;;  %356 = vadd.xlane.f32.xlu1 %v355_v15 }
  0x99   : > { %v336_v16 = vpop.xlane.xlu0 %335  ;;  %v342_v17 = vpop.xlane.xlu1 %341 }
  0x9a   : > { %v359_v18 = vmul.f32 0.0625, %v336_v16  ;;  %v361_v19 = vmul.f32 0.0625, %v342_v17 }
  0x9c   : > { %v1105_v20 = vsub.f32 %v323_v0, %v359_v18  ;;  %v1107_v21 = vsub.f32 %v325_v1, %v361_v19 }
  0x9d   : > { %v339_v22 = vpop.xlane.xlu0 %338  ;;  %v345_v23 = vpop.xlane.xlu1 %344 }
  0x9e   : > { %v360_v24 = vmul.f32 0.0625, %v339_v22  ;;  %v362_v25 = vmul.f32 0.0625, %v345_v23  ;;  %v375_v26 = vmul.f32 %v1105_v20, %v1105_v20  ;;  %v377_v27 = vmul.f32 %v1107_v21, %v1107_v21  ;;  %v892_v22 = vld [vmem:[%s1251_s1] ss:$0 sm:$0xff] }
  0xa0   : > { %v1113_v28 = vsub.f32 %v324_v2, %v360_v24  ;;  %v1115_v29 = vsub.f32 %v326_v5, %v362_v25  ;;  %v383_v30 = vsel %vm333_vm0, %v375_v26, 0.0  ;;  %v389_v33 = vsel %vm333_vm0, %v377_v27, 0.0  ;;  %v893_v25 = vld [vmem:[%s1252_s2] ss:$0 sm:$0xff] }
  0xa1   : > { %384 = vadd.xlane.f32.xlu0 %v383_v30  ;;  %v348_v31 = vpop.xlane.xlu0 %347  ;;  %v351_v32 = vpop.xlane.xlu1 %350 }
  0xa2   : > { %v363_v34 = vmul.f32 0.0625, %v348_v31  ;;  %v364_v35 = vmul.f32 0.0625, %v351_v32  ;;  %v376_v36 = vmul.f32 %v1113_v28, %v1113_v28  ;;  %v378_v37 = vmul.f32 %v1115_v29, %v1115_v29 }
  0xa4   : > { %v1123_v38 = vsub.f32 %v327_v8, %v363_v34  ;;  %v1125_v39 = vsub.f32 %v328_v9, %v364_v35  ;;  %v386_v40 = vsel %vm333_vm0, %v376_v36, 0.0  ;;  %v392_v43 = vsel %vm333_vm0, %v378_v37, 0.0 }
  0xa5   : > { %390 = vadd.xlane.f32.xlu0 %v389_v33  ;;  %387 = vadd.xlane.f32.xlu1 %v386_v40  ;;  %v354_v41 = vpop.xlane.xlu0 %353  ;;  %v357_v42 = vpop.xlane.xlu1 %356 }
  0xa6   : > { %v365_v44 = vmul.f32 0.0625, %v354_v41  ;;  %v366_v45 = vmul.f32 0.0625, %v357_v42  ;;  %v379_v46 = vmul.f32 %v1123_v38, %v1123_v38  ;;  %v380_v47 = vmul.f32 %v1125_v39, %v1125_v39 }
  0xa8   : > { %v1133_v48 = vsub.f32 %v329_v12, %v365_v44  ;;  %v1135_v49 = vsub.f32 %v330_v13, %v366_v45  ;;  %v395_v50 = vsel %vm333_vm0, %v379_v46, 0.0  ;;  %v398_v51 = vsel %vm333_vm0, %v380_v47, 0.0 }
  0xa9   : > { %393 = vadd.xlane.f32.xlu1 %v392_v43  ;;  %396 = vadd.xlane.f32.xlu0 %v395_v50 }
  0xaa   : > { %v381_v52 = vmul.f32 %v1133_v48, %v1133_v48  ;;  %v382_v53 = vmul.f32 %v1135_v49, %v1135_v49 }
  0xac   : > { %v401_v54 = vsel %vm333_vm0, %v381_v52, 0.0  ;;  %v404_v55 = vsel %vm333_vm0, %v382_v53, 0.0 }
  0xad   : > { %399 = vadd.xlane.f32.xlu1 %v398_v51  ;;  %402 = vadd.xlane.f32.xlu0 %v401_v54 }
  0xb1   : > { %405 = vadd.xlane.f32.xlu1 %v404_v55  ;;  %v894_v55 = vld [vmem:[%s1254_s4] ss:$0 sm:$0xff] }
 0x12a   : > { %v385_v60 = vpop.xlane.xlu0 %384 }
 0x12b   : > { %v407_v61 = vmul.f32 0.0625, %v385_v60 }
 0x12d   : > { %v415_v62 = vadd.f32 1e-05, %v407_v61 }
 0x12e   : > { %v388_v63 = vpop.xlane.xlu1 %387  ;;  %v391_v0 = vpop.xlane.xlu0 %390 }
 0x12f   : > { %982 = vrsqrt.f32 %v415_v62  ;;  %v408_v1 = vmul.f32 0.0625, %v388_v63  ;;  %v409_v2 = vmul.f32 0.0625, %v391_v0 }
 0x131   : > { %v416_v3 = vadd.f32 1e-05, %v408_v1  ;;  %v417_v4 = vadd.f32 1e-05, %v409_v2 }
 0x132   : > { %v394_v5 = vpop.xlane.xlu1 %393  ;;  %v397_v6 = vpop.xlane.xlu0 %396 }
 0x133   : > { %984 = vrsqrt.f32 %v416_v3  ;;  %v410_v7 = vmul.f32 0.0625, %v394_v5  ;;  %v411_v8 = vmul.f32 0.0625, %v397_v6 }
 0x134   : > { %986 = vrsqrt.f32 %v417_v4 }
 0x135   : > { %v418_v9 = vadd.f32 1e-05, %v410_v7  ;;  %v419_v10 = vadd.f32 1e-05, %v411_v8 }
 0x136   : > { %v400_v11 = vpop.xlane.xlu1 %399  ;;  %v403_v12 = vpop.xlane.xlu0 %402 }
 0x137   : > { %988 = vrsqrt.f32 %v418_v9  ;;  %v412_v13 = vmul.f32 0.0625, %v400_v11  ;;  %v413_v14 = vmul.f32 0.0625, %v403_v12 }
 0x138   : > { %990 = vrsqrt.f32 %v419_v10 }
 0x139   : > { %v420_v15 = vadd.f32 1e-05, %v412_v13  ;;  %v421_v16 = vadd.f32 1e-05, %v413_v14 }
 0x13a   : > { %v406_v17 = vpop.xlane.xlu1 %405 }
 0x13b   : > { %992 = vrsqrt.f32 %v420_v15  ;;  %v414_v18 = vmul.f32 0.0625, %v406_v17 }
 0x13c   : > { %v983_v19 = vpop.eup %982  ;;  %994 = vrsqrt.f32 %v421_v16 }
 0x13d   : > { %v422_v23 = vadd.f32 1e-05, %v414_v18  ;;  %v431_v24 = vmul.f32 %v983_v19, %v1105_v20 }
 0x13f   : > { %996 = vrsqrt.f32 %v422_v23  ;;  %v445_v26 = vmul.f32 %v892_v22, %v431_v24 }
 0x140   : > { %v985_v27 = vpop.eup %984 }
 0x141   : > { %v987_v30 = vpop.eup %986  ;;  %v459_v31 = vadd.f32 %v893_v25, %v445_v26  ;;  %v432_v32 = vmul.f32 %v985_v27, %v1113_v28 }
 0x142   : > { %v433_v33 = vmul.f32 %v987_v30, %v1107_v21 }
 0x143   : > { %946 = vmatprep.mubr.msk.f32.mxu0 %vm333_vm0, %v459_v31  ;;  %962 = vmatprep.mubr.msk.f32.mxu1 %vm333_vm0, %v459_v31  ;;  %v446_v34 = vmul.f32 %v892_v22, %v432_v32 }
 0x144   : > { %v989_v35 = vpop.eup %988  ;;  %v447_v20 = vmul.f32 %v892_v22, %v433_v33 }
 0x145   : > { %v991_v36 = vpop.eup %990  ;;  %v460_v37 = vadd.f32 %v893_v25, %v446_v34  ;;  %v434_v40 = vmul.f32 %v989_v35, %v1115_v29 }
 0x146   : > { %v461_v41 = vadd.f32 %v893_v25, %v447_v20  ;;  %v435_v42 = vmul.f32 %v991_v36, %v1123_v38 }
 0x147   : > { %947 = vmatmul.mubr.msk.f32.vlgmr.msra.gmra.mxu0 %vm333_vm0, %v460_v37  ;;  %963 = vmatmul.mubr.msk.f32.vlgmr.msra.gmra.mxu1 %vm333_vm0, %v460_v37  ;;  %v448_v28 = vmul.f32 %v892_v22, %v434_v40 }
 0x148   : > { %v993_v21 = vpop.eup %992  ;;  %949 = vmatprep.mubr.msk.f32.mxu0 %vm333_vm0, %v461_v41  ;;  %965 = vmatprep.mubr.msk.f32.mxu1 %vm333_vm0, %v461_v41  ;;  %v449_v43 = vmul.f32 %v892_v22, %v435_v42 }
 0x149   : > { %v995_v44 = vpop.eup %994  ;;  %v462_v45 = vadd.f32 %v893_v25, %v448_v28  ;;  %v436_v46 = vmul.f32 %v993_v21, %v1125_v39 }
 0x14a   : > { %v463_v47 = vadd.f32 %v893_v25, %v449_v43  ;;  %v437_v29 = vmul.f32 %v995_v44, %v1133_v48 }
 0x14b   : > { %950 = vmatmul.mubr.msk.f32.gmra.mxu0 %vm333_vm0, %v462_v45  ;;  %966 = vmatmul.mubr.msk.f32.gmra.mxu1 %vm333_vm0, %v462_v45  ;;  %v450_v38 = vmul.f32 %v892_v22, %v436_v46 }
 0x14c   : > { %v997_v50 = vpop.eup %996  ;;  %952 = vmatprep.mubr.msk.f32.mxu0 %vm333_vm0, %v463_v47  ;;  %968 = vmatprep.mubr.msk.f32.mxu1 %vm333_vm0, %v463_v47  ;;  %v451_v51 = vmul.f32 %v892_v22, %v437_v29 }
 0x14d   : > { %v464_v52 = vadd.f32 %v893_v25, %v450_v38  ;;  %v438_v53 = vmul.f32 %v997_v50, %v1135_v49  ;;  %v911_v49 = vld [vmem:[%s1256_s6] ss:$0 sm:$0xff] }
 0x14e   : > { %v465_v54 = vadd.f32 %v893_v25, %v451_v51 }
 0x14f   : > { %953 = vmatmul.mubr.msk.f32.gmra.mxu0 %vm333_vm0, %v464_v52  ;;  %969 = vmatmul.mubr.msk.f32.gmra.mxu1 %vm333_vm0, %v464_v52  ;;  %v452_v39 = vmul.f32 %v892_v22, %v438_v53 }
 0x150   : > { %955 = vmatprep.mubr.msk.f32.mxu0 %vm333_vm0, %v465_v54  ;;  %971 = vmatprep.mubr.msk.f32.mxu1 %vm333_vm0, %v465_v54 }
 0x151   : > { %v466_v48 = vadd.f32 %v893_v25, %v452_v39 }
 0x153   : > { %956 = vmatmul.mubr.msk.f32.gmra.mxu0 %vm333_vm0, %v466_v48  ;;  %972 = vmatmul.mubr.msk.f32.gmra.mxu1 %vm333_vm0, %v466_v48 }
 0x207   : > { %v948_v56 = vpop.f32.mrf.mxu0  ;;  %v964_v57 = vpop.f32.mrf.mxu1 }
 0x208   : > { %v1199_v58 = vadd.f32 %v948_v56, %v894_v55  ;;  %v750_v59 = vadd.f32 %v964_v57, %v911_v49 }
 0x209   : > { %v566_v60 = vpop.f32.mrf.mxu0  ;;  %v744_v61 = vpop.f32.mrf.mxu1 }
 0x20a   : > { %v904_v62 = vmul.f32 -1.442695, %v1199_v58  ;;  %784 = vst.msk [vmem:[%s1197_s10 + $0x8] sm:$0xff] %vm333_vm0, %v750_v59  ;;  %v1204_v63 = vadd.f32 %v894_v55, %v566_v60  ;;  %v745_v0 = vadd.f32 %v911_v49, %v744_v61 }
 0x20b   : > { %v951_v1 = vpop.f32.mrf.mxu0  ;;  %v967_v2 = vpop.f32.mrf.mxu1 }
 0x20c   : > { %998 = vpow2.f32 %v904_v62  ;;  %v903_v3 = vmul.f32 -1.442695, %v1204_v63  ;;  %783 = vst.msk [vmem:[%s1197_s10] sm:$0xff] %vm333_vm0, %v745_v0  ;;  %v1209_v4 = vadd.f32 %v951_v1, %v894_v55  ;;  %v760_v5 = vadd.f32 %v967_v2, %v911_v49 }
 0x20d   : > { %v576_v6 = vpop.f32.mrf.mxu0  ;;  %v754_v7 = vpop.f32.mrf.mxu1 }
 0x20e   : > { %1000 = vpow2.f32 %v903_v3  ;;  %v906_v8 = vmul.f32 -1.442695, %v1209_v4  ;;  %786 = vst.msk [vmem:[%s1197_s10 + $0x18] sm:$0xff] %vm333_vm0, %v760_v5  ;;  %v1214_v9 = vadd.f32 %v894_v55, %v576_v6  ;;  %v755_v10 = vadd.f32 %v911_v49, %v754_v7 }
 0x20f   : > { %v954_v11 = vpop.f32.mrf.mxu0  ;;  %v970_v12 = vpop.f32.mrf.mxu1 }
 0x210   : > { %1002 = vpow2.f32 %v906_v8  ;;  %v905_v13 = vmul.f32 -1.442695, %v1214_v9  ;;  %785 = vst.msk [vmem:[%s1197_s10 + $0x10] sm:$0xff] %vm333_vm0, %v755_v10  ;;  %v1219_v14 = vadd.f32 %v954_v11, %v894_v55  ;;  %v770_v15 = vadd.f32 %v970_v12, %v911_v49 }
 0x211   : > { %v586_v16 = vpop.f32.mrf.mxu0  ;;  %v764_v17 = vpop.f32.mrf.mxu1 }
 0x212   : > { %1004 = vpow2.f32 %v905_v13  ;;  %v908_v18 = vmul.f32 -1.442695, %v1219_v14  ;;  %788 = vst.msk [vmem:[%s1197_s10 + $0x28] sm:$0xff] %vm333_vm0, %v770_v15  ;;  %v587_v19 = vadd.f32 %v894_v55, %v586_v16  ;;  %v765_v22 = vadd.f32 %v911_v49, %v764_v17 }
 0x213   : > { %v957_v23 = vpop.f32.mrf.mxu0  ;;  %v973_v24 = vpop.f32.mrf.mxu1 }
 0x214   : > { %1006 = vpow2.f32 %v908_v18  ;;  %v907_v25 = vmul.f32 -1.442695, %v587_v19  ;;  %787 = vst.msk [vmem:[%s1197_s10 + $0x20] sm:$0xff] %vm333_vm0, %v765_v22  ;;  %v602_v26 = vadd.f32 %v957_v23, %v894_v55  ;;  %v780_v27 = vadd.f32 %v973_v24, %v911_v49 }
 0x215   : > { %v596_v30 = vpop.f32.mrf.mxu0  ;;  %v774_v31 = vpop.f32.mrf.mxu1 }
 0x216   : > { %1008 = vpow2.f32 %v907_v25  ;;  %v910_v32 = vmul.f32 -1.442695, %v602_v26  ;;  %790 = vst.msk [vmem:[%s1197_s10 + $0x38] sm:$0xff] %vm333_vm0, %v780_v27  ;;  %v597_v33 = vadd.f32 %v894_v55, %v596_v30  ;;  %v775_v34 = vadd.f32 %v911_v49, %v774_v31 }
 0x218   : > { %1010 = vpow2.f32 %v910_v32  ;;  %v909_v35 = vmul.f32 -1.442695, %v597_v33  ;;  %789 = vst.msk [vmem:[%s1197_s10 + $0x30] sm:$0xff] %vm333_vm0, %v775_v34 }
 0x219   : > { %v999_v20 = vpop.eup %998 }
 0x21a   : > { %v630_v36 = vadd.f32 1.0, %v999_v20  ;;  %1012 = vpow2.f32 %v909_v35 }
 0x21b   : > { %v1001_v37 = vpop.eup %1000 }
 0x21c   : > { %1014 = vrcp.f32 %v630_v36  ;;  %v629_v40 = vadd.f32 1.0, %v1001_v37 }
 0x21d   : > { %v1003_v41 = vpop.eup %1002 }
 0x21e   : > { %1016 = vrcp.f32 %v629_v40  ;;  %v632_v42 = vadd.f32 1.0, %v1003_v41 }
 0x21f   : > { %v1005_v28 = vpop.eup %1004 }
 0x220   : > { %1018 = vrcp.f32 %v632_v42  ;;  %v631_v21 = vadd.f32 1.0, %v1005_v28 }
 0x221   : > { %v1007_v43 = vpop.eup %1006 }
 0x222   : > { %1020 = vrcp.f32 %v631_v21  ;;  %v634_v44 = vadd.f32 1.0, %v1007_v43 }
 0x223   : > { %v1009_v45 = vpop.eup %1008 }
 0x224   : > { %1022 = vrcp.f32 %v634_v44  ;;  %v633_v46 = vadd.f32 1.0, %v1009_v45 }
 0x225   : > { %v1011_v47 = vpop.eup %1010 }
 0x226   : > { %1024 = vrcp.f32 %v633_v46  ;;  %v636_v29 = vadd.f32 1.0, %v1011_v47 }
 0x227   : > { %v1013_v38 = vpop.eup %1012 }
 0x228   : > { %1026 = vrcp.f32 %v636_v29  ;;  %v635_v50 = vadd.f32 1.0, %v1013_v38 }
 0x229   : > { %v1015_v51 = vpop.eup %1014 }
 0x22a   : > { %v654_v52 = vmul.f32 %v1015_v51, %v1199_v58  ;;  %1028 = vrcp.f32 %v635_v50 }
 0x22b   : > { %v1017_v53 = vpop.eup %1016 }
 0x22c   : > { %662 = vst.msk [vmem:[%s315_s13 + $0x8] sm:$0xff] %vm333_vm0, %v654_v52  ;;  %v653_v54 = vmul.f32 %v1017_v53, %v1204_v63 }
 0x22d   : > { %v1019_v39 = vpop.eup %1018 }
 0x22e   : > { %661 = vst.msk [vmem:[%s315_s13] sm:$0xff] %vm333_vm0, %v653_v54  ;;  %v656_v48 = vmul.f32 %v1019_v39, %v1209_v4 }
 0x22f   : > { %v1021_v55 = vpop.eup %1020 }
 0x230   : > { %664 = vst.msk [vmem:[%s315_s13 + $0x18] sm:$0xff] %vm333_vm0, %v656_v48  ;;  %v655_v49 = vmul.f32 %v1021_v55, %v1214_v9 }
 0x231   : > { %v1023_v56 = vpop.eup %1022 }
 0x232   : > { %663 = vst.msk [vmem:[%s315_s13 + $0x10] sm:$0xff] %vm333_vm0, %v655_v49  ;;  %v658_v57 = vmul.f32 %v1023_v56, %v1219_v14 }
 0x233   : > { %v1025_v58 = vpop.eup %1024 }
 0x234   : > { %666 = vst.msk [vmem:[%s315_s13 + $0x28] sm:$0xff] %vm333_vm0, %v658_v57  ;;  %v657_v59 = vmul.f32 %v1025_v58, %v587_v19 }
 0x235   : > { %v1027_v60 = vpop.eup %1026 }
 0x236   : > { %665 = vst.msk [vmem:[%s315_s13 + $0x20] sm:$0xff] %vm333_vm0, %v657_v59  ;;  %v660_v61 = vmul.f32 %v1027_v60, %v602_v26 }
 0x237   : > { %v1029_v62 = vpop.eup %1028 }
 0x238   : > { %668 = vst.msk [vmem:[%s315_s13 + $0x38] sm:$0xff] %vm333_vm0, %v660_v61  ;;  %v659_v63 = vmul.f32 %v1029_v62, %v597_v33 }
 0x23a   : > { %667 = vst.msk [vmem:[%s315_s13 + $0x30] sm:$0xff] %vm333_vm0, %v659_v63 }
 0x23b PF: > { %s19_s27 = sadd.s32 1, %s1036_s27  }
 0x23c   : > { %p16_p4 = scmp.ge.s32.totalorder %s19_s27, 4  }
 0x23e   :  { %18 = sbr.rel (!%p16_p4) target bundleno = 1 (0x1), region = 90 }

// kernel: mlla_forward_pallas.14
= control target key start
LH: loop header
LB: loop body
LE: loop exit
PB: predicated region body
PF: predicated region fallthrough
CT: control target
= control target key end

     0   :  { %s528_s12 = smov 0   ;;  %s587_s0 = inlined_call_operand.vmem [shape: f32[128,16], index: 0, kind: input, shape index: {}]   ;;  %s588_s1 = inlined_call_operand.vmem [shape: f32[16,32], index: 1, kind: input, shape index: {}]   ;;  %s589_s2 = inlined_call_operand.vmem [shape: f32[1,32], index: 2, kind: input, shape index: {}]   ;;  %s590_s3 = inlined_call_operand.vmem [shape: f32[128,32], index: 3, kind: output, shape index: {}]  }
   0x1 LB: > { %s426_s13 = sadd.s32 4294967295, %s506_s12   ;;  %p430_p0 = scmp.ge.s32.totalorder %s506_s12, 1  ;;  %s506_s12 = sphi %s528_s12, %s13_s12  }
   0x2   : > { %p138_p1 = scmp.lt.s32.totalorder %s506_s12, 3 }
   0x4   : > { %p139_p2 = pnand %p430_p0, %p138_p1 }
   0x5   : > { %s431_s18 = sshll.u32 (!%p139_p2), %s426_s13, 3 }
   0x6   : > { %142 = sbr.rel (%p139_p2) target bundleno = 237 (0xed), region = 32  ;;  %p163_p3 = scmp.lt.s32.totalorder (!%p139_p2), %s431_s18, 15 }
   0xb   : > { %v183_v0 = vld [vmem:[%s588_s1 + $0x8] sm:$0xff]  ;;  %v182_v1 = vld [vmem:[%s588_s1] sm:$0xff]  ;;  %s592_s18 = smov (!%p163_p3, %s431_s18), 15  ;;  %vm191_vm0 = vcmask 130048   ;;  %vm361_vm1 = vcmask 261120  }
   0xc   : > { %456 = vmatprep.subr.mxu0 %v183_v0  ;;  %472 = vmatprep.subr.mxu1 %v183_v0  ;;  %s432_s19 = sshll.u32 %s592_s18, 3  ;;  %v435_v10 = vld [vmem:[%s589_s2] ss:$0 sm:$0xff] }
   0xd   : > { %457 = vmatpush3.msra.mxu0 %v183_v0  ;;  %474 = vmatpush3.msra.mxu1 %v183_v0  ;;  %s166_s22 = scalar_lea.vmem %s587_s0, %s432_s19  ;;  %s566_s27 = scalar_lea.vmem %s590_s3, %s432_s19 }
   0xe   : > { %458 = vmatprep.subr.mxu0 %v182_v1  ;;  %473 = vmatprep.subr.mxu1 %v182_v1  ;;  %v174_v2 = vld [vmem:[%s166_s22] sm:$0xff]  ;;  %v175_v4 = vld [vmem:[%s166_s22 + $0x8] sm:$0xff]  ;;  %v176_v6 = vld [vmem:[%s166_s22 + $0x10] sm:$0xff] }
   0xf   : > { %459 = vmatpush3.msra.mxu0 %v182_v1  ;;  %475 = vmatpush3.msra.mxu1 %v182_v1  ;;  %v178_v3 = vld [vmem:[%s166_s22 + $0x20] sm:$0xff]  ;;  %v179_v5 = vld [vmem:[%s166_s22 + $0x28] sm:$0xff]  ;;  %v180_v7 = vld [vmem:[%s166_s22 + $0x30] sm:$0xff] }
  0x10   : > { %460 = vmatprep.mubr.msk.f32.mxu0 %vm191_vm0, %v174_v2  ;;  %466 = vmatprep.mubr.msk.f32.mxu1 %vm191_vm0, %v178_v3  ;;  %v177_v8 = vld [vmem:[%s166_s22 + $0x18] sm:$0xff] }
  0x11   : > { %461 = vmatmul.mubr.msk.f32.vlgmr.msra.gmra.mxu0 %vm191_vm0, %v175_v4  ;;  %467 = vmatmul.mubr.msk.f32.vlgmr.msra.gmra.mxu1 %vm191_vm0, %v179_v5  ;;  %v181_v9 = vld [vmem:[%s166_s22 + $0x38] sm:$0xff] }
  0x12   : > { %463 = vmatprep.mubr.msk.f32.mxu0 %vm191_vm0, %v176_v6  ;;  %469 = vmatprep.mubr.msk.f32.mxu1 %vm191_vm0, %v180_v7 }
  0x15   : > { %464 = vmatmul.mubr.msk.f32.gmra.mxu0 %vm191_vm0, %v177_v8  ;;  %470 = vmatmul.mubr.msk.f32.gmra.mxu1 %vm191_vm0, %v181_v9 }
  0xd1   : > { %v462_v11 = vpop.f32.mrf.mxu0  ;;  %v468_v12 = vpop.f32.mrf.mxu1 }
  0xd2   : > { %v288_v13 = vadd.f32 %v462_v11, %v435_v10  ;;  %v308_v14 = vadd.f32 %v468_v12, %v435_v10 }
  0xd3   : > { %v282_v15 = vpop.f32.mrf.mxu0  ;;  %v302_v16 = vpop.f32.mrf.mxu1 }
  0xd4   : > { %v339_v17 = vmul.f32 1.442695, %v288_v13  ;;  %v347_v18 = vmul.f32 1.442695, %v308_v14  ;;  %v283_v19 = vadd.f32 %v435_v10, %v282_v15  ;;  %v303_v20 = vadd.f32 %v435_v10, %v302_v16 }
  0xd5   : > { %v465_v21 = vpop.f32.mrf.mxu0  ;;  %v471_v22 = vpop.f32.mrf.mxu1  ;;  %v330_v35 = vadd.f32 1.0, %v288_v13  ;;  %vm322_vm2 = vcmp.gt.f32.partialorder %v288_v13, 0.0  ;;  %v334_v37 = vadd.f32 1.0, %v308_v14  ;;  %vm326_vm3 = vcmp.gt.f32.partialorder %v308_v14, 0.0 }
  0xd6   : > { %484 = vpow2.f32 %v339_v17  ;;  %v298_v23 = vadd.f32 %v465_v21, %v435_v10  ;;  %v318_v24 = vadd.f32 %v471_v22, %v435_v10  ;;  %v337_v25 = vmul.f32 1.442695, %v283_v19 }
  0xd7   : > { %486 = vpow2.f32 %v347_v18  ;;  %v292_v26 = vpop.f32.mrf.mxu0  ;;  %v345_v27 = vmul.f32 1.442695, %v303_v20  ;;  %v312_v28 = vpop.f32.mrf.mxu1  ;;  %v329_v41 = vadd.f32 1.0, %v283_v19  ;;  %vm321_vm4 = vcmp.gt.f32.partialorder %v283_v19, 0.0 }
  0xd8   : > { %488 = vpow2.f32 %v337_v25  ;;  %v343_v29 = vmul.f32 1.442695, %v298_v23  ;;  %v351_v30 = vmul.f32 1.442695, %v318_v24  ;;  %v293_v31 = vadd.f32 %v435_v10, %v292_v26 }
  0xd9   : > { %490 = vpow2.f32 %v345_v27  ;;  %v313_v32 = vadd.f32 %v435_v10, %v312_v28  ;;  %v333_v43 = vadd.f32 1.0, %v303_v20  ;;  %vm325_vm5 = vcmp.gt.f32.partialorder %v303_v20, 0.0 }
  0xda   : > { %492 = vpow2.f32 %v343_v29  ;;  %v341_v33 = vmul.f32 1.442695, %v293_v31  ;;  %v332_v46 = vadd.f32 1.0, %v298_v23  ;;  %vm324_vm6 = vcmp.gt.f32.partialorder %v298_v23, 0.0 }
  0xdb   : > { %494 = vpow2.f32 %v351_v30  ;;  %v349_v34 = vmul.f32 1.442695, %v313_v32  ;;  %v336_v49 = vadd.f32 1.0, %v318_v24  ;;  %vm328_vm7 = vcmp.gt.f32.partialorder %v318_v24, 0.0 }
  0xdc   : > { %496 = vpow2.f32 %v341_v33  ;;  %v331_v53 = vadd.f32 1.0, %v293_v31  ;;  %vm323_vm8 = vcmp.gt.f32.partialorder %v293_v31, 0.0  ;;  %v335_v55 = vadd.f32 1.0, %v313_v32 }
  0xdd   : > { %498 = vpow2.f32 %v349_v34  ;;  %vm327_vm9 = vcmp.gt.f32.partialorder %v313_v32, 0.0 }
  0xe3   : > { %v485_v36 = vpop.eup %484 }
  0xe4   : > { %v487_v38 = vpop.eup %486  ;;  %v354_v39 = vsel %vm322_vm2, %v330_v35, %v485_v36 }
  0xe5   : > { %363 = vst.msk [vmem:[%s566_s27 + $0x8] sm:$0xff] %vm361_vm1, %v354_v39  ;;  %v358_v40 = vsel %vm326_vm3, %v334_v37, %v487_v38  ;;  %v489_v42 = vpop.eup %488 }
  0xe6   : > { %367 = vst.msk [vmem:[%s566_s27 + $0x28] sm:$0xff] %vm361_vm1, %v358_v40  ;;  %v491_v44 = vpop.eup %490  ;;  %v353_v45 = vsel %vm321_vm4, %v329_v41, %v489_v42 }
  0xe7   : > { %v493_v47 = vpop.eup %492  ;;  %362 = vst.msk [vmem:[%s566_s27] sm:$0xff] %vm361_vm1, %v353_v45  ;;  %v357_v48 = vsel %vm325_vm5, %v333_v43, %v491_v44 }
  0xe8   : > { %v495_v50 = vpop.eup %494  ;;  %366 = vst.msk [vmem:[%s566_s27 + $0x20] sm:$0xff] %vm361_vm1, %v357_v48  ;;  %v356_v51 = vsel %vm324_vm6, %v332_v46, %v493_v47 }
  0xe9   : > { %365 = vst.msk [vmem:[%s566_s27 + $0x18] sm:$0xff] %vm361_vm1, %v356_v51  ;;  %v360_v52 = vsel %vm328_vm7, %v336_v49, %v495_v50  ;;  %v497_v54 = vpop.eup %496 }
  0xea   : > { %369 = vst.msk [vmem:[%s566_s27 + $0x38] sm:$0xff] %vm361_vm1, %v360_v52  ;;  %v499_v56 = vpop.eup %498  ;;  %v355_v57 = vsel %vm323_vm8, %v331_v53, %v497_v54 }
  0xeb   : > { %364 = vst.msk [vmem:[%s566_s27 + $0x10] sm:$0xff] %vm361_vm1, %v355_v57  ;;  %v359_v58 = vsel %vm327_vm9, %v335_v55, %v499_v56 }
  0xec   : > { %368 = vst.msk [vmem:[%s566_s27 + $0x30] sm:$0xff] %vm361_vm1, %v359_v58 }
  0xed PF: > { %s13_s12 = sadd.s32 1, %s506_s12  }
  0xee   : > { %p10_p4 = scmp.ge.s32.totalorder %s13_s12, 4  }
  0xf0   :  { %12 = sbr.rel (!%p10_p4) target bundleno = 1 (0x1), region = 62 }

// kernel: mlla_forward_pallas.17
= control target key start
LH: loop header
LB: loop body
LE: loop exit
PB: predicated region body
PF: predicated region fallthrough
CT: control target
= control target key end

     0   :  { %s723_s21 = smov 0   ;;  %s831_s0 = inlined_call_operand.vmem [shape: f32[128,16], index: 0, kind: input, shape index: {}]   ;;  %s832_s1 = inlined_call_operand.vmem [shape: f32[128,16], index: 1, kind: input, shape index: {}]   ;;  %s833_s2 = inlined_call_operand.vmem [shape: f32[128,16], index: 2, kind: input, shape index: {}]   ;;  %s834_s3 = inlined_call_operand.vmem [shape: f32[128,16], index: 3, kind: input, shape index: {}]   ;;  %s835_s4 = inlined_call_operand.vmem [shape: f32[16,16], index: 4, kind: input, shape index: {}]   ;;  %s836_s5 = inlined_call_operand.vmem [shape: f32[1,16], index: 5, kind: input, shape index: {}]   ;;  %s837_s6 = inlined_call_operand.vmem [shape: f32[128,16], index: 6, kind: output, shape index: {}]  }
   0x1 LB: > { %s616_s22 = sadd.s32 4294967295, %s686_s21   ;;  %p620_p0 = scmp.ge.s32.totalorder %s686_s21, 1  ;;  %s686_s21 = sphi %s723_s21, %s16_s21  }
   0x2   : > { %p246_p1 = scmp.lt.s32.totalorder %s686_s21, 3 }
   0x4   : > { %p247_p2 = pnand %p620_p0, %p246_p1 }
   0x5   : > { %s621_s27 = sshll.u32 (!%p247_p2), %s616_s22, 3 }
   0x6   : > { %250 = sbr.rel (%p247_p2) target bundleno = 229 (0xe5), region = 44  ;;  %p292_p3 = scmp.lt.s32.totalorder (!%p247_p2), %s621_s27, 15 }
   0xb   : > { %v362_v0 = vld [vmem:[%s835_s4 + $0x8] sm:$0xff]  ;;  %v361_v1 = vld [vmem:[%s835_s4] sm:$0xff]  ;;  %s839_s27 = smov (!%p292_p3, %s621_s27), 15  ;;  %vm370_vm0 = vcmask 130048  }
   0xc   : > { %652 = vmatprep.subr.mxu0 %v362_v0  ;;  %668 = vmatprep.subr.mxu1 %v362_v0  ;;  %s737_s28 = sshll.u32 %s839_s27, 3  ;;  %v631_v42 = vld [vmem:[%s836_s5] ss:$0 sm:$0xff] }
   0xd   : > { %653 = vmatpush3.msra.mxu0 %v362_v0  ;;  %670 = vmatpush3.msra.mxu1 %v362_v0  ;;  %s743_s7 = scalar_lea.vmem %s831_s0, %s737_s28  ;;  %s749_s10 = scalar_lea.vmem %s832_s1, %s737_s28 }
   0xe   : > { %654 = vmatprep.subr.mxu0 %v361_v1  ;;  %669 = vmatprep.subr.mxu1 %v361_v1  ;;  %s755_s13 = scalar_lea.vmem %s833_s2, %s737_s28  ;;  %v321_v2 = vld [vmem:[%s743_s7] sm:$0xff]  ;;  %v322_v10 = vld [vmem:[%s743_s7 + $0x8] sm:$0xff]  ;;  %v323_v20 = vld [vmem:[%s743_s7 + $0x10] sm:$0xff]  ;;  %s793_s16 = scalar_lea.vmem %s834_s3, %s737_s28 }
   0xf   : > { %655 = vmatpush3.msra.mxu0 %v361_v1  ;;  %671 = vmatpush3.msra.mxu1 %v361_v1  ;;  %v329_v3 = vld [vmem:[%s749_s10] sm:$0xff]  ;;  %v330_v11 = vld [vmem:[%s749_s10 + $0x8] sm:$0xff]  ;;  %v331_v21 = vld [vmem:[%s749_s10 + $0x10] sm:$0xff]  ;;  %s804_s22 = scalar_lea.vmem %s837_s6, %s737_s28 }
  0x10   : > { %v325_v4 = vld [vmem:[%s743_s7 + $0x20] sm:$0xff]  ;;  %v337_v5 = vadd.f32 %v329_v3, %v321_v2  ;;  %v346_v12 = vld [vmem:[%s755_s13 + $0x8] sm:$0xff]  ;;  %v338_v14 = vadd.f32 %v330_v11, %v322_v10  ;;  %v347_v22 = vld [vmem:[%s755_s13 + $0x10] sm:$0xff]  ;;  %v339_v24 = vadd.f32 %v331_v21, %v323_v20 }
  0x11   : > { %v345_v6 = vld [vmem:[%s755_s13] sm:$0xff]  ;;  %v326_v15 = vld [vmem:[%s743_s7 + $0x28] sm:$0xff]  ;;  %v327_v25 = vld [vmem:[%s743_s7 + $0x30] sm:$0xff] }
  0x12   : > { %v333_v7 = vld [vmem:[%s749_s10 + $0x20] sm:$0xff]  ;;  %v353_v13 = vmul.f32 %v345_v6, %v337_v5  ;;  %v334_v16 = vld [vmem:[%s749_s10 + $0x28] sm:$0xff]  ;;  %v354_v23 = vmul.f32 %v346_v12, %v338_v14  ;;  %v335_v26 = vld [vmem:[%s749_s10 + $0x30] sm:$0xff]  ;;  %v355_v33 = vmul.f32 %v347_v22, %v339_v24 }
  0x13   : > { %v349_v8 = vld [vmem:[%s755_s13 + $0x20] sm:$0xff]  ;;  %v341_v9 = vadd.f32 %v333_v7, %v325_v4  ;;  %v350_v17 = vld [vmem:[%s755_s13 + $0x28] sm:$0xff]  ;;  %v342_v19 = vadd.f32 %v334_v16, %v326_v15  ;;  %v351_v27 = vld [vmem:[%s755_s13 + $0x30] sm:$0xff]  ;;  %v343_v29 = vadd.f32 %v335_v26, %v327_v25 }
  0x14   : > { %656 = vmatprep.mubr.msk.f32.mxu0 %vm370_vm0, %v353_v13  ;;  %v324_v30 = vld [vmem:[%s743_s7 + $0x18] sm:$0xff]  ;;  %v501_v44 = vld [vmem:[%s793_s16 + $0x8] sm:$0xff]  ;;  %v500_v50 = vld [vmem:[%s793_s16] sm:$0xff] }
  0x15   : > { %v357_v18 = vmul.f32 %v349_v8, %v341_v9  ;;  %v358_v28 = vmul.f32 %v350_v17, %v342_v19  ;;  %v332_v31 = vld [vmem:[%s749_s10 + $0x18] sm:$0xff]  ;;  %657 = vmatmul.mubr.msk.f32.vlgmr.msra.gmra.mxu0 %vm370_vm0, %v354_v23  ;;  %v359_v38 = vmul.f32 %v351_v27, %v343_v29  ;;  %v505_v47 = vld [vmem:[%s793_s16 + $0x28] sm:$0xff]  ;;  %v504_v54 = vld [vmem:[%s793_s16 + $0x20] sm:$0xff] }
  0x16   : > { %v348_v32 = vld [vmem:[%s755_s13 + $0x18] sm:$0xff]  ;;  %v340_v34 = vadd.f32 %v332_v31, %v324_v30  ;;  %659 = vmatprep.mubr.msk.f32.mxu0 %vm370_vm0, %v355_v33  ;;  %v502_v2 = vld [vmem:[%s793_s16 + $0x10] sm:$0xff] }
  0x17   : > { %662 = vmatprep.mubr.msk.f32.mxu1 %vm370_vm0, %v357_v18  ;;  %v328_v35 = vld [vmem:[%s743_s7 + $0x38] sm:$0xff]  ;;  %v506_v6 = vld [vmem:[%s793_s16 + $0x30] sm:$0xff] }
  0x18   : > { %v336_v36 = vld [vmem:[%s749_s10 + $0x38] sm:$0xff]  ;;  %663 = vmatmul.mubr.msk.f32.vlgmr.msra.gmra.mxu1 %vm370_vm0, %v358_v28  ;;  %v356_v40 = vmul.f32 %v348_v32, %v340_v34 }
  0x19   : > { %v352_v37 = vld [vmem:[%s755_s13 + $0x38] sm:$0xff]  ;;  %v344_v39 = vadd.f32 %v336_v36, %v328_v35  ;;  %665 = vmatprep.mubr.msk.f32.mxu1 %vm370_vm0, %v359_v38 }
  0x1a   : > { %660 = vmatmul.mubr.msk.f32.gmra.mxu0 %vm370_vm0, %v356_v40  ;;  %v503_v58 = vld [vmem:[%s793_s16 + $0x18] sm:$0xff] }
  0x1b   : > { %v360_v41 = vmul.f32 %v352_v37, %v344_v39  ;;  %v507_v62 = vld [vmem:[%s793_s16 + $0x38] sm:$0xff] }
  0x1d   : > { %666 = vmatmul.mubr.msk.f32.gmra.mxu1 %vm370_vm0, %v360_v41 }
  0xd5   : > { %v658_v43 = vpop.f32.mrf.mxu0 }
  0xd6   : > { %v467_v45 = vadd.f32 %v658_v43, %v631_v42 }
  0xd7   : > { %v461_v49 = vpop.f32.mrf.mxu0 }
  0xd8   : > { %v664_v46 = vpop.f32.mrf.mxu1  ;;  %v509_v51 = vadd.f32 %v501_v44, %v467_v45  ;;  %v462_v52 = vadd.f32 %v631_v42, %v461_v49 }
  0xd9   : > { %v487_v48 = vadd.f32 %v664_v46, %v631_v42 }
  0xda   : > { %v481_v53 = vpop.f32.mrf.mxu1  ;;  %v661_v57 = vpop.f32.mrf.mxu0  ;;  %517 = vst.msk [vmem:[%s804_s22 + $0x8] sm:$0xff] %vm370_vm0, %v509_v51  ;;  %v508_v59 = vadd.f32 %v500_v50, %v462_v52 }
  0xdb   : > { %v513_v55 = vadd.f32 %v505_v47, %v487_v48  ;;  %v482_v56 = vadd.f32 %v631_v42, %v481_v53  ;;  %v477_v60 = vadd.f32 %v661_v57, %v631_v42 }
  0xdc   : > { %v471_v1 = vpop.f32.mrf.mxu0  ;;  %516 = vst.msk [vmem:[%s804_s22] sm:$0xff] %vm370_vm0, %v508_v59 }
  0xdd   : > { %v667_v61 = vpop.f32.mrf.mxu1  ;;  %521 = vst.msk [vmem:[%s804_s22 + $0x28] sm:$0xff] %vm370_vm0, %v513_v55  ;;  %v512_v63 = vadd.f32 %v504_v54, %v482_v56  ;;  %v511_v3 = vadd.f32 %v503_v58, %v477_v60  ;;  %v472_v4 = vadd.f32 %v631_v42, %v471_v1 }
  0xde   : > { %v497_v0 = vadd.f32 %v667_v61, %v631_v42 }
  0xdf   : > { %v491_v5 = vpop.f32.mrf.mxu1  ;;  %520 = vst.msk [vmem:[%s804_s22 + $0x20] sm:$0xff] %vm370_vm0, %v512_v63  ;;  %519 = vst.msk [vmem:[%s804_s22 + $0x18] sm:$0xff] %vm370_vm0, %v511_v3  ;;  %v510_v9 = vadd.f32 %v502_v2, %v472_v4 }
  0xe0   : > { %v515_v7 = vadd.f32 %v507_v62, %v497_v0  ;;  %v492_v8 = vadd.f32 %v631_v42, %v491_v5 }
  0xe1   : > { %518 = vst.msk [vmem:[%s804_s22 + $0x10] sm:$0xff] %vm370_vm0, %v510_v9 }
  0xe2   : > { %523 = vst.msk [vmem:[%s804_s22 + $0x38] sm:$0xff] %vm370_vm0, %v515_v7  ;;  %v514_v10 = vadd.f32 %v506_v6, %v492_v8 }
  0xe4   : > { %522 = vst.msk [vmem:[%s804_s22 + $0x30] sm:$0xff] %vm370_vm0, %v514_v10 }
  0xe5 PF: > { %s16_s21 = sadd.s32 1, %s686_s21  }
  0xe6   : > { %p13_p4 = scmp.ge.s32.totalorder %s16_s21, 4  }
  0xe8   :  { %15 = sbr.rel (!%p13_p4) target bundleno = 1 (0x1), region = 83 }

// kernel: mlla_forward_pallas.15
= control target key start
LH: loop header
LB: loop body
LE: loop exit
PB: predicated region body
PF: predicated region fallthrough
CT: control target
= control target key end

     0   :  { %s1160_s18 = smov 0   ;;  %s1162_s19 = smov 0   ;;  %s1293_s0 = inlined_call_operand.vmem [shape: f32[2,4,64,4], index: 0, kind: input, shape index: {}]   ;;  %s1294_s1 = inlined_call_operand.vmem [shape: f32[2,4,64,4], index: 1, kind: input, shape index: {}]   ;;  %s1295_s2 = inlined_call_operand.vmem [shape: f32[2,4,64,4], index: 2, kind: input, shape index: {}]   ;;  %s1296_s3 = inlined_call_operand.vmem [shape: f32[2,4,64,4], index: 3, kind: input, shape index: {}]   ;;  %s1297_s4 = inlined_call_operand.vmem [shape: f32[2,4,64,4], index: 4, kind: input, shape index: {}]   ;;  %s1298_s5 = inlined_call_operand.vmem [shape: f32[2,4,64,4], index: 5, kind: output, shape index: {}]  }
   0x1   :  { %s1164_s20 = smov 0   ;;  %s1166_s21 = smov 0  }
   0x2   :  { %s1168_s22 = smov 0  }
   0x3 LB: > { %s24_s23 = sadd.s32 1, %s1118_s20  ;;  %s27_s24 = sadd.s32 1, %s1122_s21  ;;  %s1126_s22 = sphi %s1168_s22, %s15_s22   ;;  %s1122_s21 = sphi %s1166_s21, %s1302_s21   ;;  %s1118_s20 = sphi %s1164_s20, %s1301_s20   ;;  %s1114_s19 = sphi %s1162_s19, %s1300_s19   ;;  %s1110_s18 = sphi %s1160_s18, %s1299_s18  }
   0x4   : > { %p25_p0 = scmp.ge.s32.totalorder %s24_s23, 4  ;;  %p948_p1 = scmp.ge.s32.totalorder %s1126_s22, 1 }
   0x5   : > { %p271_p2 = scmp.lt.s32.totalorder %s1126_s22, 9 }
   0x6   : > { %s1304_s23 = smov (%p25_p0, %s24_s23), 0  ;;  %s1306_s24 = smov (!%p25_p0, %s27_s24), %s1122_s21 }
   0x7   : > { %p272_p3 = pnand %p948_p1, %p271_p2  ;;  %p29_p4 = scmp.ge.s32.totalorder %s1306_s24, 2 }
   0x8   : > { %p343_p5 = scmp.lt.s32.totalorder (!%p272_p3), %s1114_s19, 1  ;;  %p345_p6 = scmp.lt.s32.totalorder (!%p272_p3), %s1110_s18, 3 }
   0x9   : > { %s1308_s24 = smov (%p29_p4, %s1306_s24), 0  ;;  %275 = sbr.rel (%p272_p3) target bundleno = 552 (0x228), region = 40 }
   0xe   : > { %v1128_v0 = vmov 0.0   ;;  %vm1129_vm0 = vmmov 0   ;;  %s1310_s19 = smov (!%p343_p5, %s1114_s19), 1  ;;  %s1312_s18 = smov (!%p345_p6, %s1110_s18), 3  ;;  %vm541_vm1 = vcmask 523264   ;;  %vm437_vm2 = vcmask 31744  }
   0xf   : > { %997 = vmatprep.subr.mxu0 %v1128_v0  ;;  %1013 = vmatprep.mubr.msk.f32.mxu0 %vm1129_vm0, %v1128_v0  ;;  %s950_s25 = sshll.u32 %s1310_s19, 5  ;;  %s949_s26 = sshll.u32 %s1312_s18, 3  ;;  %vm640_vm3 = vcmask 1043456  }
  0x10   : > { %s349_s27 = sadd.s32 %s950_s25, %s949_s26 }
  0x11   : > { %s1190_s28 = sshll.u32 %s349_s27, 3 }
  0x12   : > { %s1196_s6 = scalar_lea.vmem %s1297_s4, %s1190_s28  ;;  %s369_s9 = scalar_lea.vmem %s1295_s2, %s1190_s28 }
  0x13   : > { %v429_v1 = vld [vmem:[%s1196_s6] sm:$0xff]  ;;  %v430_v2 = vld [vmem:[%s1196_s6 + $0x8] sm:$0xff]  ;;  %v420_v3 = vld [vmem:[%s369_s9 + $0x38] sm:$0xff]  ;;  %s360_s12 = scalar_lea.vmem %s1294_s1, %s1190_s28  ;;  %s1222_s15 = scalar_lea.vmem %s1296_s3, %s1190_s28 }
  0x14   : > { %509 = vxpose.xlu0.b32.start [1/8] (short) (narrow) %v429_v1, 8  ;;  %v419_v4 = vld [vmem:[%s369_s9 + $0x30] sm:$0xff]  ;;  %998 = vmatpush3.msra.mxu0 %v420_v3  ;;  %v418_v6 = vld [vmem:[%s369_s9 + $0x28] sm:$0xff]  ;;  %v417_v7 = vld [vmem:[%s369_s9 + $0x20] sm:$0xff]  ;;  %s351_s18 = scalar_lea.vmem %s1293_s0, %s1190_s28  ;;  %s1260_s26 = scalar_lea.vmem %s1298_s5, %s1190_s28 }
  0x15   : > { %v431_v5 = vld [vmem:[%s1196_s6 + $0x10] sm:$0xff]  ;;  %999 = vmatprep.subr.mxu0 %v1128_v0  ;;  %v432_v8 = vld [vmem:[%s1196_s6 + $0x18] sm:$0xff]  ;;  %v433_v11 = vld [vmem:[%s1196_s6 + $0x20] sm:$0xff] }
  0x16   : > { %1000 = vmatpush3.msra.mxu0 %v419_v4  ;;  %v416_v9 = vld [vmem:[%s369_s9 + $0x18] sm:$0xff]  ;;  %v415_v10 = vld [vmem:[%s369_s9 + $0x10] sm:$0xff]  ;;  %v414_v12 = vld [vmem:[%s369_s9 + $0x8] sm:$0xff] }
  0x17   : > { %1001 = vmatprep.subr.mxu0 %v1128_v0  ;;  %v413_v13 = vld [vmem:[%s369_s9] sm:$0xff]  ;;  %v434_v14 = vld [vmem:[%s1196_s6 + $0x28] sm:$0xff]  ;;  %v435_v15 = vld [vmem:[%s1196_s6 + $0x30] sm:$0xff] }
  0x18   : > { %510 = vxpose.xlu0.b32.cont [2/8] (short) (narrow) %v430_v2, 8  ;;  %1002 = vmatpush3.msra.mxu0 %v418_v6  ;;  %v436_v16 = vld [vmem:[%s1196_s6 + $0x38] sm:$0xff]  ;;  %v405_v18 = vld [vmem:[%s360_s12] sm:$0xff]  ;;  %v406_v19 = vld [vmem:[%s360_s12 + $0x8] sm:$0xff] }
  0x19   : > { %1003 = vmatprep.subr.mxu0 %v1128_v0  ;;  %v438_v20 = vsel %vm437_vm2, %v405_v18, 0.0  ;;  %v439_v21 = vsel %vm437_vm2, %v406_v19, 0.0  ;;  %v407_v22 = vld [vmem:[%s360_s12 + $0x10] sm:$0xff]  ;;  %v408_v25 = vld [vmem:[%s360_s12 + $0x18] sm:$0xff]  ;;  %v409_v28 = vld [vmem:[%s360_s12 + $0x20] sm:$0xff] }
  0x1a   : > { %1004 = vmatpush3.msra.mxu0 %v417_v7  ;;  %v440_v23 = vadd.f32 %v439_v21, %v438_v20  ;;  %v441_v24 = vsel %vm437_vm2, %v407_v22, 0.0  ;;  %v443_v27 = vsel %vm437_vm2, %v408_v25, 0.0  ;;  %v445_v30 = vsel %vm437_vm2, %v409_v28, 0.0  ;;  %v421_v31 = vld [vmem:[%s1222_s15] sm:$0xff]  ;;  %v410_v32 = vld [vmem:[%s360_s12 + $0x28] sm:$0xff]  ;;  %v411_v35 = vld [vmem:[%s360_s12 + $0x30] sm:$0xff] }
  0x1b   : > { %1005 = vmatprep.subr.mxu0 %v1128_v0  ;;  %1018 = vmatprep.mubr.msk.f32.mxu1 %vm437_vm2, %v421_v31  ;;  %v447_v34 = vsel %vm437_vm2, %v410_v32, 0.0  ;;  %v449_v37 = vsel %vm437_vm2, %v411_v35, 0.0  ;;  %v412_v38 = vld [vmem:[%s360_s12 + $0x38] sm:$0xff]  ;;  %v397_v48 = vld [vmem:[%s351_s18] sm:$0xff]  ;;  %v398_v49 = vld [vmem:[%s351_s18 + $0x8] sm:$0xff] }
  0x1c   : > { %511 = vxpose.xlu0.b32.cont [3/8] (short) (narrow) %v431_v5, 8  ;;  %1006 = vmatpush3.msra.mxu0 %v416_v9  ;;  %v442_v26 = vadd.f32 %v441_v24, %v440_v23  ;;  %v451_v40 = vsel %vm437_vm2, %v412_v38, 0.0  ;;  %v399_v53 = vld [vmem:[%s351_s18 + $0x10] sm:$0xff]  ;;  %v400_v57 = vld [vmem:[%s351_s18 + $0x18] sm:$0xff]  ;;  %v401_v60 = vld [vmem:[%s351_s18 + $0x20] sm:$0xff] }
  0x1d   : > { %1007 = vmatprep.subr.mxu0 %v1128_v0  ;;  %v402_v63 = vld [vmem:[%s351_s18 + $0x28] sm:$0xff]  ;;  %v403_v2 = vld [vmem:[%s351_s18 + $0x30] sm:$0xff]  ;;  %v404_v5 = vld [vmem:[%s351_s18 + $0x38] sm:$0xff] }
  0x1e   : > { %1008 = vmatpush3.msra.mxu0 %v415_v10  ;;  %v444_v29 = vadd.f32 %v443_v27, %v442_v26  ;;  %v428_v18 = vld [vmem:[%s1222_s15 + $0x38] sm:$0xff] }
  0x1f   : > { %1009 = vmatprep.subr.mxu0 %v1128_v0 }
  0x20   : > { %512 = vxpose.xlu0.b32.cont [4/8] (short) (narrow) %v432_v8, 8  ;;  %1010 = vmatpush3.msra.mxu0 %v414_v12  ;;  %v446_v33 = vadd.f32 %v445_v30, %v444_v29  ;;  %v422_v12 = vld [vmem:[%s1222_s15 + $0x8] sm:$0xff] }
  0x21   : > { %1011 = vmatprep.subr.mxu0 %v1128_v0 }
  0x22   : > { %1012 = vmatpush3.msra.mxu0 %v413_v13  ;;  %v448_v36 = vadd.f32 %v447_v34, %v446_v33  ;;  %v423_v13 = vld [vmem:[%s1222_s15 + $0x10] sm:$0xff] }
  0x24   : > { %513 = vxpose.xlu0.b32.cont [5/8] (short) (narrow) %v433_v11, 8  ;;  %v450_v39 = vadd.f32 %v449_v37, %v448_v36 }
  0x26   : > { %v452_v41 = vadd.f32 %v451_v40, %v450_v39 }
  0x28   : > { %514 = vxpose.xlu0.b32.cont [6/8] (short) (narrow) %v434_v14, 8  ;;  %v453_v42 = vrot.slane %v452_v41, 4  ;;  %v424_v14 = vld [vmem:[%s1222_s15 + $0x18] sm:$0xff] }
  0x2a   : > { %v454_v43 = vadd.f32 %v453_v42, %v452_v41 }
  0x2c   : > { %515 = vxpose.xlu0.b32.cont [7/8] (short) (narrow) %v435_v15, 8  ;;  %v455_v44 = vrot.slane %v454_v43, 2  ;;  %v425_v15 = vld [vmem:[%s1222_s15 + $0x20] sm:$0xff] }
  0x2e   : > { %v456_v45 = vadd.f32 %v455_v44, %v454_v43 }
  0x30   : > { %516 = vxpose.xlu0.b32.end [8/8] (short) (narrow) %v436_v16, 8  ;;  %v457_v46 = vrot.slane %v456_v45, 1  ;;  %v426_v16 = vld [vmem:[%s1222_s15 + $0x28] sm:$0xff] }
  0x32   : > { %v458_v47 = vadd.f32 %v457_v46, %v456_v45 }
  0x34   : > { %v460_v50 = vmul.f32 0.015625, %v458_v47 }
  0x36   : > { %v461_v51 = vmul.f32 %v460_v50, %v397_v48  ;;  %v462_v52 = vmul.f32 %v460_v50, %v398_v49  ;;  %v463_v56 = vmul.f32 %v460_v50, %v399_v53  ;;  %v464_v59 = vmul.f32 %v460_v50, %v400_v57 }
  0x37   : > { %v465_v62 = vmul.f32 %v460_v50, %v401_v60  ;;  %v466_v1 = vmul.f32 %v460_v50, %v402_v63  ;;  %v467_v4 = vmul.f32 %v460_v50, %v403_v2  ;;  %v468_v7 = vmul.f32 %v460_v50, %v404_v5 }
  0x38   : > { %v469_v54 = vsel %vm437_vm2, %v461_v51, 0.0  ;;  %v472_v55 = vsel %vm437_vm2, %v462_v52, 0.0  ;;  %v475_v58 = vsel %vm437_vm2, %v463_v56, 0.0  ;;  %v478_v61 = vsel %vm437_vm2, %v464_v59, 0.0 }
  0x39   : > { %470 = vadd.xlane.f32.xlu1 %v469_v54  ;;  %v481_v0 = vsel %vm437_vm2, %v465_v62, 0.0  ;;  %v484_v3 = vsel %vm437_vm2, %v466_v1, 0.0  ;;  %v487_v6 = vsel %vm437_vm2, %v467_v4, 0.0  ;;  %v490_v8 = vsel %vm437_vm2, %v468_v7, 0.0 }
  0x3d   : > { %473 = vadd.xlane.f32.xlu1 %v472_v55 }
  0x41   : > { %476 = vadd.xlane.f32.xlu1 %v475_v58 }
  0x45   : > { %479 = vadd.xlane.f32.xlu1 %v478_v61 }
  0x49   : > { %482 = vadd.xlane.f32.xlu1 %v481_v0 }
  0x4d   : > { %485 = vadd.xlane.f32.xlu1 %v484_v3 }
  0x51   : > { %488 = vadd.xlane.f32.xlu1 %v487_v6 }
  0x55   : > { %491 = vadd.xlane.f32.xlu1 %v490_v8 }
  0x90   : > { %v525_v17 = vpop.trf.xlu0 }
  0x91   : > { %1014 = vmatmul.mubr.msk.f32.vlgmr.msra.gmra.mxu0 %vm541_vm1, %v525_v17  ;;  %v427_v17 = vld [vmem:[%s1222_s15 + $0x30] sm:$0xff] }
  0xc2   : > { %v471_v19 = vpop.xlane.xlu1 %470 }
  0xc3   : > { %v493_v27 = vadd.f32 1e-06, %v471_v19 }
  0xc6   : > { %v474_v20 = vpop.xlane.xlu1 %473 }
  0xc7   : > { %v494_v25 = vadd.f32 1e-06, %v474_v20 }
  0xc9   : > { %1072 = vrcp.f32 %v494_v25 }
  0xca   : > { %v477_v21 = vpop.xlane.xlu1 %476  ;;  %1074 = vrcp.f32 %v493_v27 }
  0xcb   : > { %v495_v29 = vadd.f32 1e-06, %v477_v21 }
  0xce   : > { %v480_v22 = vpop.xlane.xlu1 %479 }
  0xcf   : > { %v496_v28 = vadd.f32 1e-06, %v480_v22 }
  0xd1   : > { %1076 = vrcp.f32 %v496_v28 }
  0xd2   : > { %v483_v23 = vpop.xlane.xlu1 %482  ;;  %1078 = vrcp.f32 %v495_v29 }
  0xd3   : > { %v497_v32 = vadd.f32 1e-06, %v483_v23 }
  0xd6   : > { %v486_v24 = vpop.xlane.xlu1 %485  ;;  %v1073_v35 = vpop.eup %1072 }
  0xd7   : > { %v498_v31 = vadd.f32 1e-06, %v486_v24  ;;  %v1075_v38 = vpop.eup %1074 }
  0xd9   : > { %1080 = vrcp.f32 %v498_v31 }
  0xda   : > { %v489_v26 = vpop.xlane.xlu1 %488  ;;  %1082 = vrcp.f32 %v497_v32 }
  0xdb   : > { %v499_v34 = vadd.f32 1e-06, %v489_v26 }
  0xde   : > { %v492_v30 = vpop.xlane.xlu1 %491  ;;  %v1077_v41 = vpop.eup %1076 }
  0xdf   : > { %v500_v33 = vadd.f32 1e-06, %v492_v30  ;;  %v1079_v44 = vpop.eup %1078 }
  0xe1   : > { %1084 = vrcp.f32 %v500_v33 }
  0xe2   : > { %1086 = vrcp.f32 %v499_v34 }
  0xe6   : > { %v1081_v47 = vpop.eup %1080 }
  0xe7   : > { %v1083_v49 = vpop.eup %1082 }
  0xee   : > { %v1085_v51 = vpop.eup %1084 }
  0xef   : > { %v1087_v56 = vpop.eup %1086 }
 0x151   : > { %v611_v9 = vpop.f32.mrf.mxu0 }
 0x152   : > { %v615_v10 = vmul.f32 0.015625, %v611_v9 }
 0x153   : > { %v1015_v11 = vpop.f32.mrf.mxu0 }
 0x154   : > { %1016 = vmatprep.subr.msk.mxu1 %vm640_vm3, %v615_v10 }
 0x155   : > { %1017 = vmatpush3.msk.msra.mxu1 %vm640_vm3, %v615_v10 }
 0x156   : > { %1019 = vmatmul.mubr.msk.f32.vlgmr.msra.gmra.mxu1 %vm437_vm2, %v422_v12 }
 0x157   : > { %1021 = vmatprep.mubr.msk.f32.mxu1 %vm437_vm2, %v423_v13 }
 0x15a   : > { %1022 = vmatmul.mubr.msk.f32.gmra.mxu1 %vm437_vm2, %v424_v14 }
 0x15b   : > { %1024 = vmatprep.mubr.msk.f32.mxu1 %vm437_vm2, %v425_v15 }
 0x15e   : > { %1025 = vmatmul.mubr.msk.f32.gmra.mxu1 %vm437_vm2, %v426_v16 }
 0x15f   : > { %1027 = vmatprep.mubr.msk.f32.mxu1 %vm437_vm2, %v427_v17 }
 0x162   : > { %1028 = vmatmul.mubr.msk.f32.gmra.mxu1 %vm437_vm2, %v428_v18 }
 0x216   : > { %v1020_v36 = vpop.f32.mrf.mxu1 }
 0x217   : > { %v750_v37 = vmul.f32 %v1073_v35, %v1020_v36 }
 0x218   : > { %v710_v39 = vpop.f32.mrf.mxu1 }
 0x219   : > { %758 = vst.msk [vmem:[%s1260_s26 + $0x8] sm:$0xff] %vm437_vm2, %v750_v37  ;;  %v749_v40 = vmul.f32 %v1075_v38, %v710_v39 }
 0x21a   : > { %v1023_v42 = vpop.f32.mrf.mxu1 }
 0x21b   : > { %757 = vst.msk [vmem:[%s1260_s26] sm:$0xff] %vm437_vm2, %v749_v40  ;;  %v752_v43 = vmul.f32 %v1077_v41, %v1023_v42 }
 0x21c   : > { %v720_v45 = vpop.f32.mrf.mxu1 }
 0x21d   : > { %760 = vst.msk [vmem:[%s1260_s26 + $0x18] sm:$0xff] %vm437_vm2, %v752_v43  ;;  %v751_v46 = vmul.f32 %v1079_v44, %v720_v45 }
 0x21e   : > { %v1026_v48 = vpop.f32.mrf.mxu1 }
 0x21f   : > { %759 = vst.msk [vmem:[%s1260_s26 + $0x10] sm:$0xff] %vm437_vm2, %v751_v46  ;;  %v754_v50 = vmul.f32 %v1081_v47, %v1026_v48 }
 0x220   : > { %v730_v52 = vpop.f32.mrf.mxu1 }
 0x221   : > { %762 = vst.msk [vmem:[%s1260_s26 + $0x28] sm:$0xff] %vm437_vm2, %v754_v50  ;;  %v753_v53 = vmul.f32 %v1083_v49, %v730_v52 }
 0x222   : > { %v1029_v54 = vpop.f32.mrf.mxu1 }
 0x223   : > { %761 = vst.msk [vmem:[%s1260_s26 + $0x20] sm:$0xff] %vm437_vm2, %v753_v53  ;;  %v756_v55 = vmul.f32 %v1085_v51, %v1029_v54 }
 0x224   : > { %v740_v57 = vpop.f32.mrf.mxu1 }
 0x225   : > { %764 = vst.msk [vmem:[%s1260_s26 + $0x38] sm:$0xff] %vm437_vm2, %v756_v55  ;;  %v755_v58 = vmul.f32 %v1087_v56, %v740_v57 }
 0x227   : > { %763 = vst.msk [vmem:[%s1260_s26 + $0x30] sm:$0xff] %vm437_vm2, %v755_v58 }
 0x228 PF: > { %s15_s22 = sadd.s32 1, %s1126_s22   ;;  %s1299_s18 = smov %s1118_s20 }
 0x229   : > { %p12_p7 = scmp.ge.s32.totalorder %s15_s22, 10   ;;  %s1300_s19 = smov %s1122_s21 }
 0x22a   : > { %s1301_s20 = smov %s1304_s23  ;;  %s1302_s21 = smov %s1308_s24 }
 0x22b   :  { %14 = sbr.rel (!%p12_p7) target bundleno = 3 (0x3), region = 82 }

// kernel: mlla_forward_pallas.19
= control target key start
LH: loop header
LB: loop body
LE: loop exit
PB: predicated region body
PF: predicated region fallthrough
CT: control target
= control target key end

     0   :  { %s779_s21 = smov 0   ;;  %s909_s0 = inlined_call_operand.vmem [shape: f32[128,16], index: 0, kind: input, shape index: {}]   ;;  %s910_s1 = inlined_call_operand.vmem [shape: f32[1,16], index: 1, kind: input, shape index: {}]   ;;  %s911_s2 = inlined_call_operand.vmem [shape: f32[1,16], index: 2, kind: input, shape index: {}]   ;;  %s912_s3 = inlined_call_operand.vmem [shape: f32[16,64], index: 3, kind: input, shape index: {}]   ;;  %s913_s4 = inlined_call_operand.vmem [shape: f32[1,64], index: 4, kind: input, shape index: {}]   ;;  %s914_s5 = inlined_call_operand.vmem [shape: f32[128,64], index: 5, kind: output, shape index: {0}]   ;;  %s915_s6 = inlined_call_operand.vmem [shape: f32[128,16], index: 6, kind: output, shape index: {1}]  }
   0x1 LB: > { %s658_s22 = sadd.s32 4294967295, %s742_s21   ;;  %p662_p0 = scmp.ge.s32.totalorder %s742_s21, 1  ;;  %s742_s21 = sphi %s779_s21, %s17_s21  }
   0x2   : > { %p216_p1 = scmp.lt.s32.totalorder %s742_s21, 3 }
   0x4   : > { %p217_p2 = pnand %p662_p0, %p216_p1 }
   0x5   : > { %s663_s23 = sshll.u32 (!%p217_p2), %s658_s22, 3 }
   0x6   : > { %220 = sbr.rel (%p217_p2) target bundleno = 537 (0x219), region = 40  ;;  %p252_p3 = scmp.lt.s32.totalorder (!%p217_p2), %s663_s23, 15 }
   0xb   : > { %s917_s23 = smov (!%p252_p3, %s663_s23), 15  ;;  %vm279_vm0 = vcmask 130048   ;;  %v422_v56 = vld [vmem:[%s912_s3 + $0x8] sm:$0xff]  ;;  %v421_v57 = vld [vmem:[%s912_s3] sm:$0xff]  ;;  %vm559_vm1 = vcmask 523264  }
   0xc   : > { %s787_s24 = sshll.u32 %s917_s23, 3  ;;  %692 = vmatprep.subr.mxu0 %v422_v56  ;;  %708 = vmatprep.subr.mxu1 %v422_v56 }
   0xd   : > { %s255_s27 = scalar_lea.vmem %s909_s0, %s787_s24  ;;  %693 = vmatpush3.msra.mxu0 %v422_v56  ;;  %710 = vmatpush3.msra.mxu1 %v422_v56  ;;  %s858_s14 = scalar_lea.vmem %s915_s6, %s787_s24 }
   0xe   : > { %v269_v0 = vld [vmem:[%s255_s27] sm:$0xff]  ;;  %v270_v1 = vld [vmem:[%s255_s27 + $0x8] sm:$0xff]  ;;  %v271_v8 = vld [vmem:[%s255_s27 + $0x10] sm:$0xff]  ;;  %694 = vmatprep.subr.mxu0 %v421_v57  ;;  %709 = vmatprep.subr.mxu1 %v421_v57  ;;  %s261_s19 = scalar_lea.vmem %s914_s5, %s787_s24 }
   0xf   : > { %v273_v2 = vld [vmem:[%s255_s27 + $0x20] sm:$0xff]  ;;  %v280_v3 = vsel %vm279_vm0, %v269_v0, 0.0  ;;  %v283_v4 = vsel %vm279_vm0, %v270_v1, 0.0  ;;  %v274_v5 = vld [vmem:[%s255_s27 + $0x28] sm:$0xff]  ;;  %v275_v9 = vld [vmem:[%s255_s27 + $0x30] sm:$0xff]  ;;  %v286_v10 = vsel %vm279_vm0, %v271_v8, 0.0  ;;  %695 = vmatpush3.msra.mxu0 %v421_v57  ;;  %711 = vmatpush3.msra.mxu1 %v421_v57 }
  0x10   : > { %281 = vadd.xlane.f32.xlu0 %v280_v3  ;;  %284 = vadd.xlane.f32.xlu1 %v283_v4  ;;  %v292_v6 = vsel %vm279_vm0, %v273_v2, 0.0  ;;  %v295_v7 = vsel %vm279_vm0, %v274_v5, 0.0  ;;  %v298_v11 = vsel %vm279_vm0, %v275_v9, 0.0  ;;  %v272_v12 = vld [vmem:[%s255_s27 + $0x18] sm:$0xff] }
  0x11   : > { %v276_v13 = vld [vmem:[%s255_s27 + $0x38] sm:$0xff]  ;;  %v289_v14 = vsel %vm279_vm0, %v272_v12, 0.0 }
  0x12   : > { %v301_v15 = vsel %vm279_vm0, %v276_v13, 0.0 }
  0x14   : > { %293 = vadd.xlane.f32.xlu0 %v292_v6  ;;  %296 = vadd.xlane.f32.xlu1 %v295_v7 }
  0x18   : > { %287 = vadd.xlane.f32.xlu0 %v286_v10  ;;  %299 = vadd.xlane.f32.xlu1 %v298_v11 }
  0x1c   : > { %290 = vadd.xlane.f32.xlu0 %v289_v14  ;;  %302 = vadd.xlane.f32.xlu1 %v301_v15 }
  0x99   : > { %v282_v16 = vpop.xlane.xlu0 %281  ;;  %v285_v17 = vpop.xlane.xlu1 %284 }
  0x9a   : > { %v305_v18 = vmul.f32 0.0625, %v282_v16  ;;  %v306_v19 = vmul.f32 0.0625, %v285_v17 }
  0x9c   : > { %v801_v20 = vsub.f32 %v269_v0, %v305_v18  ;;  %v803_v21 = vsub.f32 %v270_v1, %v306_v19  ;;  %v669_v18 = vld [vmem:[%s910_s1] ss:$0 sm:$0xff] }
  0x9d   : > { %v294_v22 = vpop.xlane.xlu0 %293  ;;  %v297_v23 = vpop.xlane.xlu1 %296 }
  0x9e   : > { %v309_v24 = vmul.f32 0.0625, %v294_v22  ;;  %v310_v25 = vmul.f32 0.0625, %v297_v23  ;;  %v321_v26 = vmul.f32 %v801_v20, %v801_v20  ;;  %v322_v27 = vmul.f32 %v803_v21, %v803_v21  ;;  %v670_v23 = vld [vmem:[%s911_s2] ss:$0 sm:$0xff] }
  0xa0   : > { %v809_v28 = vsub.f32 %v273_v2, %v309_v24  ;;  %v811_v29 = vsub.f32 %v274_v5, %v310_v25  ;;  %v329_v30 = vsel %vm279_vm0, %v321_v26, 0.0  ;;  %v332_v33 = vsel %vm279_vm0, %v322_v27, 0.0 }
  0xa1   : > { %330 = vadd.xlane.f32.xlu0 %v329_v30  ;;  %v288_v31 = vpop.xlane.xlu0 %287  ;;  %v300_v32 = vpop.xlane.xlu1 %299 }
  0xa2   : > { %v307_v34 = vmul.f32 0.0625, %v288_v31  ;;  %v311_v35 = vmul.f32 0.0625, %v300_v32  ;;  %v325_v36 = vmul.f32 %v809_v28, %v809_v28  ;;  %v326_v37 = vmul.f32 %v811_v29, %v811_v29 }
  0xa4   : > { %v819_v38 = vsub.f32 %v271_v8, %v307_v34  ;;  %v821_v39 = vsub.f32 %v275_v9, %v311_v35  ;;  %v341_v40 = vsel %vm279_vm0, %v325_v36, 0.0  ;;  %v344_v43 = vsel %vm279_vm0, %v326_v37, 0.0 }
  0xa5   : > { %333 = vadd.xlane.f32.xlu0 %v332_v33  ;;  %342 = vadd.xlane.f32.xlu1 %v341_v40  ;;  %v291_v41 = vpop.xlane.xlu0 %290  ;;  %v303_v42 = vpop.xlane.xlu1 %302 }
  0xa6   : > { %v308_v44 = vmul.f32 0.0625, %v291_v41  ;;  %v312_v45 = vmul.f32 0.0625, %v303_v42  ;;  %v323_v46 = vmul.f32 %v819_v38, %v819_v38  ;;  %v327_v47 = vmul.f32 %v821_v39, %v821_v39 }
  0xa8   : > { %v829_v48 = vsub.f32 %v272_v12, %v308_v44  ;;  %v831_v49 = vsub.f32 %v276_v13, %v312_v45  ;;  %v335_v50 = vsel %vm279_vm0, %v323_v46, 0.0  ;;  %v347_v51 = vsel %vm279_vm0, %v327_v47, 0.0 }
  0xa9   : > { %345 = vadd.xlane.f32.xlu1 %v344_v43  ;;  %336 = vadd.xlane.f32.xlu0 %v335_v50 }
  0xaa   : > { %v324_v52 = vmul.f32 %v829_v48, %v829_v48  ;;  %v328_v53 = vmul.f32 %v831_v49, %v831_v49 }
  0xac   : > { %v338_v54 = vsel %vm279_vm0, %v324_v52, 0.0  ;;  %v350_v55 = vsel %vm279_vm0, %v328_v53, 0.0  ;;  %v671_v53 = vld [vmem:[%s913_s4] ss:$0 sm:$0xff] }
  0xad   : > { %348 = vadd.xlane.f32.xlu1 %v347_v51  ;;  %339 = vadd.xlane.f32.xlu0 %v338_v54 }
  0xb1   : > { %351 = vadd.xlane.f32.xlu1 %v350_v55 }
 0x12a   : > { %v331_v58 = vpop.xlane.xlu0 %330 }
 0x12b   : > { %v353_v59 = vmul.f32 0.0625, %v331_v58 }
 0x12d   : > { %v361_v60 = vadd.f32 1e-05, %v353_v59 }
 0x12e   : > { %v343_v61 = vpop.xlane.xlu1 %342  ;;  %v334_v62 = vpop.xlane.xlu0 %333 }
 0x12f   : > { %720 = vrsqrt.f32 %v361_v60  ;;  %v357_v63 = vmul.f32 0.0625, %v343_v61  ;;  %v354_v0 = vmul.f32 0.0625, %v334_v62 }
 0x131   : > { %v365_v1 = vadd.f32 1e-05, %v357_v63  ;;  %v362_v2 = vadd.f32 1e-05, %v354_v0 }
 0x132   : > { %v346_v3 = vpop.xlane.xlu1 %345  ;;  %v337_v4 = vpop.xlane.xlu0 %336 }
 0x133   : > { %722 = vrsqrt.f32 %v365_v1  ;;  %v358_v5 = vmul.f32 0.0625, %v346_v3  ;;  %v355_v6 = vmul.f32 0.0625, %v337_v4 }
 0x134   : > { %724 = vrsqrt.f32 %v362_v2 }
 0x135   : > { %v366_v7 = vadd.f32 1e-05, %v358_v5  ;;  %v363_v8 = vadd.f32 1e-05, %v355_v6 }
 0x136   : > { %v349_v9 = vpop.xlane.xlu1 %348  ;;  %v340_v10 = vpop.xlane.xlu0 %339 }
 0x137   : > { %726 = vrsqrt.f32 %v366_v7  ;;  %v359_v11 = vmul.f32 0.0625, %v349_v9  ;;  %v356_v12 = vmul.f32 0.0625, %v340_v10 }
 0x138   : > { %728 = vrsqrt.f32 %v363_v8 }
 0x139   : > { %v367_v13 = vadd.f32 1e-05, %v359_v11  ;;  %v364_v14 = vadd.f32 1e-05, %v356_v12 }
 0x13a   : > { %v352_v15 = vpop.xlane.xlu1 %351 }
 0x13b   : > { %730 = vrsqrt.f32 %v367_v13  ;;  %v360_v16 = vmul.f32 0.0625, %v352_v15 }
 0x13c   : > { %v721_v17 = vpop.eup %720  ;;  %732 = vrsqrt.f32 %v364_v14 }
 0x13d   : > { %v368_v19 = vadd.f32 1e-05, %v360_v16  ;;  %v377_v22 = vmul.f32 %v721_v17, %v801_v20 }
 0x13f   : > { %734 = vrsqrt.f32 %v368_v19  ;;  %v391_v24 = vmul.f32 %v669_v18, %v377_v22 }
 0x140   : > { %v723_v25 = vpop.eup %722 }
 0x141   : > { %v725_v26 = vpop.eup %724  ;;  %v405_v27 = vadd.f32 %v670_v23, %v391_v24  ;;  %v381_v30 = vmul.f32 %v723_v25, %v809_v28 }
 0x142   : > { %v378_v20 = vmul.f32 %v725_v26, %v803_v21 }
 0x143   : > { %413 = vst.msk [vmem:[%s858_s14] sm:$0xff] %vm279_vm0, %v405_v27  ;;  %696 = vmatprep.mubr.msk.f32.mxu0 %vm279_vm0, %v405_v27  ;;  %v395_v31 = vmul.f32 %v669_v18, %v381_v30 }
 0x144   : > { %v727_v32 = vpop.eup %726  ;;  %v392_v33 = vmul.f32 %v669_v18, %v378_v20 }
 0x145   : > { %v729_v34 = vpop.eup %728  ;;  %v409_v35 = vadd.f32 %v670_v23, %v395_v31  ;;  %v382_v36 = vmul.f32 %v727_v32, %v811_v29 }
 0x146   : > { %v406_v37 = vadd.f32 %v670_v23, %v392_v33  ;;  %v379_v40 = vmul.f32 %v729_v34, %v819_v38 }
 0x147   : > { %417 = vst.msk [vmem:[%s858_s14 + $0x20] sm:$0xff] %vm279_vm0, %v409_v35  ;;  %702 = vmatprep.mubr.msk.f32.mxu1 %vm279_vm0, %v409_v35  ;;  %v396_v21 = vmul.f32 %v669_v18, %v382_v36 }
 0x148   : > { %v731_v28 = vpop.eup %730  ;;  %414 = vst.msk [vmem:[%s858_s14 + $0x8] sm:$0xff] %vm279_vm0, %v406_v37  ;;  %697 = vmatmul.mubr.msk.f32.vlgmr.msra.gmra.mxu0 %vm279_vm0, %v406_v37  ;;  %v393_v41 = vmul.f32 %v669_v18, %v379_v40 }
 0x149   : > { %v733_v42 = vpop.eup %732  ;;  %v410_v43 = vadd.f32 %v670_v23, %v396_v21  ;;  %v383_v29 = vmul.f32 %v731_v28, %v821_v39 }
 0x14a   : > { %v407_v44 = vadd.f32 %v670_v23, %v393_v41  ;;  %v380_v38 = vmul.f32 %v733_v42, %v829_v48 }
 0x14b   : > { %418 = vst.msk [vmem:[%s858_s14 + $0x28] sm:$0xff] %vm279_vm0, %v410_v43  ;;  %703 = vmatmul.mubr.msk.f32.vlgmr.msra.gmra.mxu1 %vm279_vm0, %v410_v43  ;;  %v397_v45 = vmul.f32 %v669_v18, %v383_v29 }
 0x14c   : > { %v735_v46 = vpop.eup %734  ;;  %415 = vst.msk [vmem:[%s858_s14 + $0x10] sm:$0xff] %vm279_vm0, %v407_v44  ;;  %699 = vmatprep.mubr.msk.f32.mxu0 %vm279_vm0, %v407_v44  ;;  %v394_v47 = vmul.f32 %v669_v18, %v380_v38 }
 0x14d   : > { %v411_v50 = vadd.f32 %v670_v23, %v397_v45  ;;  %v384_v39 = vmul.f32 %v735_v46, %v831_v49 }
 0x14e   : > { %v408_v51 = vadd.f32 %v670_v23, %v394_v47 }
 0x14f   : > { %419 = vst.msk [vmem:[%s858_s14 + $0x30] sm:$0xff] %vm279_vm0, %v411_v50  ;;  %705 = vmatprep.mubr.msk.f32.mxu1 %vm279_vm0, %v411_v50  ;;  %v398_v48 = vmul.f32 %v669_v18, %v384_v39 }
 0x150   : > { %416 = vst.msk [vmem:[%s858_s14 + $0x18] sm:$0xff] %vm279_vm0, %v408_v51  ;;  %700 = vmatmul.mubr.msk.f32.gmra.mxu0 %vm279_vm0, %v408_v51 }
 0x151   : > { %v412_v52 = vadd.f32 %v670_v23, %v398_v48 }
 0x153   : > { %420 = vst.msk [vmem:[%s858_s14 + $0x38] sm:$0xff] %vm279_vm0, %v412_v52  ;;  %706 = vmatmul.mubr.msk.f32.gmra.mxu1 %vm279_vm0, %v412_v52 }
 0x208   : > { %v698_v49 = vpop.f32.mrf.mxu0 }
 0x209   : > { %v526_v54 = vadd.f32 %v698_v49, %v671_v53 }
 0x20a   : > { %v520_v55 = vpop.f32.mrf.mxu0 }
 0x20b   : > { %561 = vst.msk [vmem:[%s261_s19 + $0x8] sm:$0xff] %vm559_vm1, %v526_v54  ;;  %v521_v56 = vadd.f32 %v671_v53, %v520_v55  ;;  %v704_v57 = vpop.f32.mrf.mxu1 }
 0x20c   : > { %v546_v58 = vadd.f32 %v704_v57, %v671_v53 }
 0x20d   : > { %560 = vst.msk [vmem:[%s261_s19] sm:$0xff] %vm559_vm1, %v521_v56  ;;  %v540_v59 = vpop.f32.mrf.mxu1 }
 0x20e   : > { %565 = vst.msk [vmem:[%s261_s19 + $0x28] sm:$0xff] %vm559_vm1, %v546_v58  ;;  %v541_v60 = vadd.f32 %v671_v53, %v540_v59 }
 0x210   : > { %564 = vst.msk [vmem:[%s261_s19 + $0x20] sm:$0xff] %vm559_vm1, %v541_v60  ;;  %v701_v61 = vpop.f32.mrf.mxu0 }
 0x211   : > { %v536_v62 = vadd.f32 %v701_v61, %v671_v53 }
 0x212   : > { %v530_v63 = vpop.f32.mrf.mxu0 }
 0x213   : > { %563 = vst.msk [vmem:[%s261_s19 + $0x18] sm:$0xff] %vm559_vm1, %v536_v62  ;;  %v531_v0 = vadd.f32 %v671_v53, %v530_v63  ;;  %v707_v1 = vpop.f32.mrf.mxu1 }
 0x214   : > { %v556_v2 = vadd.f32 %v707_v1, %v671_v53 }
 0x215   : > { %562 = vst.msk [vmem:[%s261_s19 + $0x10] sm:$0xff] %vm559_vm1, %v531_v0  ;;  %v550_v3 = vpop.f32.mrf.mxu1 }
 0x216   : > { %567 = vst.msk [vmem:[%s261_s19 + $0x38] sm:$0xff] %vm559_vm1, %v556_v2  ;;  %v551_v4 = vadd.f32 %v671_v53, %v550_v3 }
 0x218   : > { %566 = vst.msk [vmem:[%s261_s19 + $0x30] sm:$0xff] %vm559_vm1, %v551_v4 }
 0x219 PF: > { %s17_s21 = sadd.s32 1, %s742_s21  }
 0x21a   : > { %p14_p4 = scmp.ge.s32.totalorder %s17_s21, 4  }
 0x21c   :  { %16 = sbr.rel (!%p14_p4) target bundleno = 1 (0x1), region = 82 }

// kernel: mlla_forward_pallas.16
= control target key start
LH: loop header
LB: loop body
LE: loop exit
PB: predicated region body
PF: predicated region fallthrough
CT: control target
= control target key end

     0   :  { %s611_s12 = smov 0   ;;  %s817_s0 = inlined_call_operand.vmem [shape: f32[2,8,8,16], index: 0, kind: input, shape index: {}]   ;;  %s818_s1 = inlined_call_operand.vmem [shape: f32[9,16], index: 1, kind: input, shape index: {}]   ;;  %s819_s2 = inlined_call_operand.vmem [shape: f32[1,16], index: 2, kind: input, shape index: {}]   ;;  %s820_s3 = inlined_call_operand.vmem [shape: f32[2,8,8,16], index: 3, kind: output, shape index: {}]  }
   0x1 LB: > { %s550_s13 = sadd.s32 4294967295, %s588_s12   ;;  %p554_p0 = scmp.ge.s32.totalorder %s588_s12, 1  ;;  %s588_s12 = sphi %s611_s12, %s13_s12  }
   0x2   : > { %p137_p1 = scmp.lt.s32.totalorder %s588_s12, 3 }
   0x4   : > { %p138_p2 = pnand %p554_p0, %p137_p1 }
   0x5   : > { %p619_p3 = scmp.lt.s32.totalorder (!%p138_p2), %s550_s13, 1 }
   0x6   : > { %141 = sbr.rel (%p138_p2) target bundleno = 76 (0x4c), region = 32 }
   0xb   : > { %vm179_vm0 = vcmask 130048   ;;  %vm181_vm1 = vcmask 123904   ;;  %v590_v0 = vmov 0.0   ;;  %s823_s13 = smov (!%p619_p3, %s550_s13), 1  ;;  %v656_v1 = vld [vmem:[%s818_s1] ss:$0 sm:$0xff] }
   0xc   : > { %180 = vst.msk [vmem:[#allocation2] sm:$0xff] %vm179_vm0, %v590_v0  ;;  %183 = vst.msk [vmem:[#allocation2 + $0x10] sm:$0xff] %vm179_vm0, %v590_v0  ;;  %s571_s15 = sshll.u32 %s823_s13, 6  ;;  %v661_v2 = vld [vmem:[%s818_s1 + $0x1] ss:$0 sm:$0xff] }
   0xd   : > { %185 = vst.msk [vmem:[#allocation2 + $0x20] sm:$0xff] %vm179_vm0, %v590_v0  ;;  %187 = vst.msk [vmem:[#allocation2 + $0x30] sm:$0xff] %vm179_vm0, %v590_v0  ;;  %s165_s18 = scalar_lea.vmem %s817_s0, %s571_s15  ;;  %v666_v3 = vld [vmem:[%s818_s1 + $0x2] ss:$0 sm:$0xff]  ;;  %v682_v19 = vld [vmem:[%s818_s1 + $0x3] ss:$0 sm:$0xff]  ;;  %s747_s17 = scalar_lea.vmem %s820_s3, %s571_s15 }
   0xe   : > { %189 = vst.msk [vmem:[#allocation2 + $0x40] sm:$0xff] %vm179_vm0, %v590_v0  ;;  %191 = vst.msk [vmem:[#allocation2 + $0x50] sm:$0xff] %vm179_vm0, %v590_v0  ;;  %v171_v4 = vld [vmem:[%s165_s18] sm:$0xff]  ;;  %v172_v5 = vld [vmem:[%s165_s18 + $0x8] sm:$0xff] }
   0xf   : > { %193 = vst.msk [vmem:[#allocation2 + $0x60] sm:$0xff] %vm179_vm0, %v590_v0  ;;  %195 = vst.msk [vmem:[#allocation2 + $0x70] sm:$0xff] %vm179_vm0, %v590_v0  ;;  %v173_v6 = vld [vmem:[%s165_s18 + $0x10] sm:$0xff]  ;;  %v174_v7 = vld [vmem:[%s165_s18 + $0x18] sm:$0xff] }
  0x10   : > { %197 = vst.msk [vmem:[#allocation2 + $0x80] sm:$0xff] %vm179_vm0, %v590_v0  ;;  %199 = vst.msk [vmem:[#allocation2 + $0x90] sm:$0xff] %vm179_vm0, %v590_v0  ;;  %v175_v8 = vld [vmem:[%s165_s18 + $0x20] sm:$0xff]  ;;  %v176_v9 = vld [vmem:[%s165_s18 + $0x28] sm:$0xff] }
  0x11   : > { %182 = vst.msk [vmem:[#allocation2 + $0x8] sm:$0x3] %vm181_vm1, %v590_v0  ;;  %184 = vst.msk [vmem:[#allocation2 + $0x18] sm:$0x3] %vm181_vm1, %v590_v0  ;;  %v177_v10 = vld [vmem:[%s165_s18 + $0x30] sm:$0xff]  ;;  %v178_v11 = vld [vmem:[%s165_s18 + $0x38] sm:$0xff] }
  0x12   : > { %186 = vst.msk [vmem:[#allocation2 + $0x28] sm:$0x3] %vm181_vm1, %v590_v0  ;;  %188 = vst.msk [vmem:[#allocation2 + $0x38] sm:$0x3] %vm181_vm1, %v590_v0  ;;  %v687_v20 = vld [vmem:[%s818_s1 + $0x4] ss:$0 sm:$0xff] }
  0x13   : > { %190 = vst.msk [vmem:[#allocation2 + $0x48] sm:$0x3] %vm181_vm1, %v590_v0  ;;  %192 = vst.msk [vmem:[#allocation2 + $0x58] sm:$0x3] %vm181_vm1, %v590_v0  ;;  %v210_v12 = vld [vmem:[#allocation2] sm:$0xff] }
  0x14   : > { %194 = vst.msk [vmem:[#allocation2 + $0x68] sm:$0x3] %vm181_vm1, %v590_v0  ;;  %196 = vst.msk [vmem:[#allocation2 + $0x78] sm:$0x3] %vm181_vm1, %v590_v0  ;;  %v223_v13 = vmul.f32 %v656_v1, %v210_v12  ;;  %v692_v24 = vld [vmem:[%s818_s1 + $0x5] ss:$0 sm:$0xff] }
  0x15   : > { %198 = vst.msk [vmem:[#allocation2 + $0x88] sm:$0x3] %vm181_vm1, %v590_v0  ;;  %200 = vst.msk [vmem:[#allocation2 + $0x98] sm:$0x3] %vm181_vm1, %v590_v0  ;;  %v698_v28 = vld [vmem:[%s818_s1 + $0x6] ss:$0 sm:$0xff] }
  0x16   : > { %202 = vst.msk [vmem:[#allocation2 + $0x11] sm:$0xff] %vm179_vm0, %v171_v4  ;;  %203 = vst.msk [vmem:[#allocation2 + $0x21] sm:$0xff] %vm179_vm0, %v172_v5  ;;  %v704_v31 = vld [vmem:[%s818_s1 + $0x7] ss:$0 sm:$0xff]  ;;  %v711_v36 = vld [vmem:[%s818_s1 + $0x8] ss:$0 sm:$0xff] }
  0x17   : > { %204 = vst.msk [vmem:[#allocation2 + $0x31] sm:$0xff] %vm179_vm0, %v173_v6  ;;  %205 = vst.msk [vmem:[#allocation2 + $0x41] sm:$0xff] %vm179_vm0, %v174_v7 }
  0x18   : > { %206 = vst.msk [vmem:[#allocation2 + $0x51] sm:$0xff] %vm179_vm0, %v175_v8  ;;  %207 = vst.msk [vmem:[#allocation2 + $0x61] sm:$0xff] %vm179_vm0, %v176_v9  ;;  %v239_v14 = vld [vmem:[#allocation2 + $0x1] sm:$0xff] }
  0x19   : > { %208 = vst.msk [vmem:[#allocation2 + $0x71] sm:$0xff] %vm179_vm0, %v177_v10  ;;  %209 = vst.msk [vmem:[#allocation2 + $0x81] sm:$0xff] %vm179_vm0, %v178_v11  ;;  %v268_v15 = vld [vmem:[#allocation2 + $0x2] sm:$0xff]  ;;  %v252_v16 = vmul.f32 %v661_v2, %v239_v14  ;;  %v736_v14 = vld [vmem:[%s819_s2] ss:$0 sm:$0xff] }
  0x1a   : > { %v281_v17 = vmul.f32 %v666_v3, %v268_v15 }
  0x1b   : > { %v260_v18 = vadd.f32 %v252_v16, %v223_v13 }
  0x1d   : > { %v289_v21 = vadd.f32 %v281_v17, %v260_v18  ;;  %v297_v22 = vld [vmem:[#allocation2 + $0x10] sm:$0xff]  ;;  %v385_v27 = vld [vmem:[#allocation2 + $0x20] sm:$0xff] }
  0x1e   : > { %v326_v23 = vld [vmem:[#allocation2 + $0x11] sm:$0xff]  ;;  %v310_v25 = vmul.f32 %v682_v19, %v297_v22  ;;  %v224_v29 = vmul.f32 %v656_v1, %v297_v22  ;;  %v414_v30 = vld [vmem:[#allocation2 + $0x21] sm:$0xff]  ;;  %v398_v38 = vmul.f32 %v698_v28, %v385_v27  ;;  %v225_v45 = vmul.f32 %v656_v1, %v385_v27 }
  0x1f   : > { %v355_v26 = vld [vmem:[#allocation2 + $0x12] sm:$0xff]  ;;  %v253_v32 = vmul.f32 %v661_v2, %v326_v23  ;;  %v339_v34 = vmul.f32 %v687_v20, %v326_v23  ;;  %v443_v35 = vld [vmem:[#allocation2 + $0x22] sm:$0xff]  ;;  %v427_v42 = vmul.f32 %v704_v31, %v414_v30  ;;  %v254_v46 = vmul.f32 %v661_v2, %v414_v30 }
  0x20   : > { %v318_v33 = vadd.f32 %v310_v25, %v289_v21  ;;  %v368_v37 = vmul.f32 %v692_v24, %v355_v26  ;;  %v282_v40 = vmul.f32 %v666_v3, %v355_v26  ;;  %v386_v43 = vld [vmem:[#allocation2 + $0x30] sm:$0xff]  ;;  %v456_v47 = vmul.f32 %v711_v36, %v443_v35  ;;  %v387_v63 = vld [vmem:[#allocation2 + $0x40] sm:$0xff] }
  0x21   : > { %v261_v39 = vadd.f32 %v253_v32, %v224_v29  ;;  %v415_v44 = vld [vmem:[#allocation2 + $0x31] sm:$0xff]  ;;  %v311_v49 = vmul.f32 %v682_v19, %v385_v27  ;;  %v340_v50 = vmul.f32 %v687_v20, %v414_v30  ;;  %v369_v52 = vmul.f32 %v692_v24, %v443_v35  ;;  %v416_v8 = vld [vmem:[#allocation2 + $0x41] sm:$0xff] }
  0x22   : > { %v347_v41 = vadd.f32 %v339_v34, %v318_v33  ;;  %v444_v53 = vld [vmem:[#allocation2 + $0x32] sm:$0xff]  ;;  %v262_v54 = vadd.f32 %v254_v46, %v225_v45  ;;  %v283_v55 = vmul.f32 %v666_v3, %v443_v35  ;;  %v399_v57 = vmul.f32 %v698_v28, %v386_v43  ;;  %v445_v11 = vld [vmem:[#allocation2 + $0x42] sm:$0xff] }
  0x23   : > { %v290_v48 = vadd.f32 %v282_v40, %v261_v39  ;;  %v428_v58 = vmul.f32 %v704_v31, %v415_v44  ;;  %v226_v59 = vmul.f32 %v656_v1, %v386_v43  ;;  %v312_v62 = vmul.f32 %v682_v19, %v386_v43  ;;  %v388_v25 = vld [vmem:[#allocation2 + $0x50] sm:$0xff] }
  0x24   : > { %v376_v51 = vadd.f32 %v368_v37, %v347_v41  ;;  %v291_v61 = vadd.f32 %v283_v55, %v262_v54  ;;  %v255_v0 = vmul.f32 %v661_v2, %v415_v44  ;;  %v457_v5 = vmul.f32 %v711_v36, %v444_v53  ;;  %v417_v37 = vld [vmem:[#allocation2 + $0x51] sm:$0xff] }
  0x25   : > { %v319_v56 = vadd.f32 %v311_v49, %v290_v48  ;;  %v341_v6 = vmul.f32 %v687_v20, %v415_v44  ;;  %v370_v7 = vmul.f32 %v692_v24, %v444_v53  ;;  %v284_v13 = vmul.f32 %v666_v3, %v444_v53  ;;  %v446_v45 = vld [vmem:[#allocation2 + $0x52] sm:$0xff] }
  0x26   : > { %v406_v60 = vadd.f32 %v398_v38, %v376_v51  ;;  %v320_v10 = vadd.f32 %v312_v62, %v291_v61  ;;  %v263_v12 = vadd.f32 %v255_v0, %v226_v59  ;;  %v400_v16 = vmul.f32 %v698_v28, %v387_v63  ;;  %v418_v59 = vld [vmem:[#allocation2 + $0x61] sm:$0xff] }
  0x27   : > { %v348_v4 = vadd.f32 %v340_v50, %v319_v56  ;;  %v313_v17 = vmul.f32 %v682_v19, %v387_v63  ;;  %v227_v18 = vmul.f32 %v656_v1, %v387_v63  ;;  %v256_v26 = vmul.f32 %v661_v2, %v416_v8  ;;  %v389_v56 = vld [vmem:[#allocation2 + $0x60] sm:$0xff] }
  0x28   : > { %v435_v9 = vadd.f32 %v427_v42, %v406_v60  ;;  %v349_v22 = vadd.f32 %v341_v6, %v320_v10  ;;  %v292_v23 = vadd.f32 %v284_v13, %v263_v12  ;;  %v429_v29 = vmul.f32 %v704_v31, %v416_v8  ;;  %v447_v6 = vld [vmem:[#allocation2 + $0x62] sm:$0xff]  ;;  %v390_v13 = vld [vmem:[#allocation2 + $0x70] sm:$0xff] }
  0x29   : > { %v377_v15 = vadd.f32 %v369_v52, %v348_v4  ;;  %v342_v30 = vmul.f32 %v687_v20, %v416_v8  ;;  %v285_v32 = vmul.f32 %v666_v3, %v445_v11  ;;  %v264_v38 = vadd.f32 %v256_v26, %v227_v18 }
  0x2a   : > { %v464_v21 = vadd.f32 %v456_v47, %v435_v9  ;;  %v378_v34 = vadd.f32 %v370_v7, %v349_v22  ;;  %v321_v35 = vadd.f32 %v313_v17, %v292_v23  ;;  %v458_v40 = vmul.f32 %v711_v36, %v445_v11  ;;  %v419_v23 = vld [vmem:[#allocation2 + $0x71] sm:$0xff] }
  0x2b   : > { %v407_v27 = vadd.f32 %v399_v57, %v377_v15  ;;  %v371_v41 = vmul.f32 %v692_v24, %v445_v11  ;;  %v401_v42 = vmul.f32 %v698_v28, %v388_v25  ;;  %v293_v46 = vadd.f32 %v285_v32, %v264_v38  ;;  %v391_v38 = vld [vmem:[#allocation2 + $0x80] sm:$0xff] }
  0x2c   : > { %v479_v33 = vadd.f32 %v736_v14, %v464_v21  ;;  %v408_v43 = vadd.f32 %v400_v16, %v378_v34  ;;  %v350_v44 = vadd.f32 %v342_v30, %v321_v35  ;;  %v314_v47 = vmul.f32 %v682_v19, %v388_v25  ;;  %v448_v35 = vld [vmem:[#allocation2 + $0x72] sm:$0xff] }
  0x2d   : > { %v436_v39 = vadd.f32 %v428_v58, %v407_v27  ;;  %v430_v49 = vmul.f32 %v704_v31, %v417_v37  ;;  %v228_v50 = vmul.f32 %v656_v1, %v388_v25  ;;  %v257_v51 = vmul.f32 %v661_v2, %v417_v37 }
  0x2e   : > { %487 = vst.msk [vmem:[%s747_s17] sm:$0xff] %vm179_vm0, %v479_v33  ;;  %v437_v52 = vadd.f32 %v429_v29, %v408_v43  ;;  %v379_v53 = vadd.f32 %v371_v41, %v350_v44  ;;  %v322_v54 = vadd.f32 %v314_v47, %v293_v46  ;;  %v343_v55 = vmul.f32 %v687_v20, %v417_v37 }
  0x2f   : > { %v465_v48 = vadd.f32 %v457_v5, %v436_v39  ;;  %v459_v58 = vmul.f32 %v711_v36, %v446_v45  ;;  %v265_v60 = vadd.f32 %v257_v51, %v228_v50  ;;  %v286_v61 = vmul.f32 %v666_v3, %v446_v45 }
  0x30   : > { %v466_v62 = vadd.f32 %v458_v40, %v437_v52  ;;  %v409_v63 = vadd.f32 %v401_v42, %v379_v53  ;;  %v351_v0 = vadd.f32 %v343_v55, %v322_v54  ;;  %v372_v4 = vmul.f32 %v692_v24, %v446_v45  ;;  %v420_v52 = vld [vmem:[#allocation2 + $0x81] sm:$0xff] }
  0x31   : > { %v480_v57 = vadd.f32 %v736_v14, %v465_v48  ;;  %v402_v5 = vmul.f32 %v698_v28, %v389_v56  ;;  %v294_v7 = vadd.f32 %v286_v61, %v265_v60  ;;  %v315_v8 = vmul.f32 %v682_v19, %v389_v56 }
  0x32   : > { %v229_v9 = vmul.f32 %v656_v1, %v389_v56  ;;  %v481_v10 = vadd.f32 %v736_v14, %v466_v62  ;;  %v438_v11 = vadd.f32 %v430_v49, %v409_v63  ;;  %v380_v12 = vadd.f32 %v372_v4, %v351_v0 }
  0x33   : > { %488 = vst.msk [vmem:[%s747_s17 + $0x8] sm:$0xff] %vm179_vm0, %v480_v57  ;;  %v258_v15 = vmul.f32 %v661_v2, %v418_v59  ;;  %v431_v16 = vmul.f32 %v704_v31, %v418_v59  ;;  %v323_v17 = vadd.f32 %v315_v8, %v294_v7  ;;  %v344_v18 = vmul.f32 %v687_v20, %v418_v59  ;;  %v421_v8 = vld [vmem:[#allocation2 + $0x91] sm:$0xff] }
  0x34   : > { %489 = vst.msk [vmem:[%s747_s17 + $0x10] sm:$0xff] %vm179_vm0, %v481_v10  ;;  %v467_v21 = vadd.f32 %v459_v58, %v438_v11  ;;  %v410_v22 = vadd.f32 %v402_v5, %v380_v12  ;;  %v287_v26 = vmul.f32 %v666_v3, %v447_v6  ;;  %v460_v27 = vmul.f32 %v711_v36, %v447_v6  ;;  %v449_v58 = vld [vmem:[#allocation2 + $0x82] sm:$0xff]  ;;  %v450_v10 = vld [vmem:[#allocation2 + $0x92] sm:$0xff] }
  0x35   : > { %v266_v25 = vadd.f32 %v258_v15, %v229_v9  ;;  %v352_v29 = vadd.f32 %v344_v18, %v323_v17  ;;  %v373_v30 = vmul.f32 %v692_v24, %v447_v6  ;;  %v316_v32 = vmul.f32 %v682_v19, %v390_v13 }
  0x36   : > { %v482_v33 = vadd.f32 %v736_v14, %v467_v21  ;;  %v439_v34 = vadd.f32 %v431_v16, %v410_v22  ;;  %v230_v39 = vmul.f32 %v656_v1, %v390_v13  ;;  %v403_v41 = vmul.f32 %v698_v28, %v390_v13 }
  0x37   : > { %v295_v37 = vadd.f32 %v287_v26, %v266_v25  ;;  %v381_v40 = vadd.f32 %v373_v30, %v352_v29  ;;  %v259_v42 = vmul.f32 %v661_v2, %v419_v23  ;;  %v432_v44 = vmul.f32 %v704_v31, %v419_v23 }
  0x38   : > { %490 = vst.msk [vmem:[%s747_s17 + $0x18] sm:$0xff] %vm179_vm0, %v482_v33  ;;  %v468_v43 = vadd.f32 %v460_v27, %v439_v34  ;;  %v345_v46 = vmul.f32 %v687_v20, %v419_v23  ;;  %v288_v49 = vmul.f32 %v666_v3, %v448_v35  ;;  %v317_v1 = vmul.f32 %v682_v19, %v391_v38  ;;  %v392_v3 = vld [vmem:[#allocation2 + $0x90] sm:$0xff] }
  0x39   : > { %v324_v45 = vadd.f32 %v316_v32, %v295_v37  ;;  %v411_v47 = vadd.f32 %v403_v41, %v381_v40  ;;  %v267_v48 = vadd.f32 %v259_v42, %v230_v39  ;;  %v374_v2 = vmul.f32 %v692_v24, %v448_v35 }
  0x3a   : > { %v483_v50 = vadd.f32 %v736_v14, %v468_v43  ;;  %v461_v54 = vmul.f32 %v711_v36, %v448_v35  ;;  %v404_v57 = vmul.f32 %v698_v28, %v391_v38  ;;  %v346_v60 = vmul.f32 %v687_v20, %v420_v52 }
  0x3b   : > { %v353_v51 = vadd.f32 %v345_v46, %v324_v45  ;;  %v440_v53 = vadd.f32 %v432_v44, %v411_v47  ;;  %v296_v55 = vadd.f32 %v288_v49, %v267_v48  ;;  %v433_v62 = vmul.f32 %v704_v31, %v420_v52 }
  0x3c   : > { %491 = vst.msk [vmem:[%s747_s17 + $0x20] sm:$0xff] %vm179_vm0, %v483_v50  ;;  %v375_v4 = vmul.f32 %v692_v24, %v449_v58  ;;  %v405_v5 = vmul.f32 %v698_v28, %v392_v3  ;;  %v462_v7 = vmul.f32 %v711_v36, %v449_v58  ;;  %v434_v12 = vmul.f32 %v704_v31, %v421_v8 }
  0x3d   : > { %v382_v56 = vadd.f32 %v374_v2, %v353_v51  ;;  %v469_v59 = vadd.f32 %v461_v54, %v440_v53  ;;  %v325_v19 = vadd.f32 %v317_v1, %v296_v55  ;;  %v463_v24 = vmul.f32 %v711_v36, %v450_v10 }
  0x3f   : > { %v412_v61 = vadd.f32 %v404_v57, %v382_v56  ;;  %v484_v63 = vadd.f32 %v736_v14, %v469_v59  ;;  %v354_v0 = vadd.f32 %v346_v60, %v325_v19 }
  0x41   : > { %v441_v6 = vadd.f32 %v433_v62, %v412_v61  ;;  %492 = vst.msk [vmem:[%s747_s17 + $0x28] sm:$0xff] %vm179_vm0, %v484_v63  ;;  %v383_v9 = vadd.f32 %v375_v4, %v354_v0 }
  0x43   : > { %v470_v20 = vadd.f32 %v462_v7, %v441_v6  ;;  %v413_v11 = vadd.f32 %v405_v5, %v383_v9 }
  0x45   : > { %v485_v13 = vadd.f32 %v736_v14, %v470_v20  ;;  %v442_v15 = vadd.f32 %v434_v12, %v413_v11 }
  0x47   : > { %493 = vst.msk [vmem:[%s747_s17 + $0x30] sm:$0xff] %vm179_vm0, %v485_v13  ;;  %v471_v28 = vadd.f32 %v463_v24, %v442_v15 }
  0x49   : > { %v486_v16 = vadd.f32 %v736_v14, %v471_v28 }
  0x4b   : > { %494 = vst.msk [vmem:[%s747_s17 + $0x38] sm:$0xff] %vm179_vm0, %v486_v16 }
  0x4c PF: > { %s13_s12 = sadd.s32 1, %s588_s12  }
  0x4d   : > { %p10_p4 = scmp.ge.s32.totalorder %s13_s12, 4  }
  0x4f   :  { %12 = sbr.rel (!%p10_p4) target bundleno = 1 (0x1), region = 64 }

// kernel: mlla_forward_pallas.21
= control target key start
LH: loop header
LB: loop body
LE: loop exit
PB: predicated region body
PF: predicated region fallthrough
CT: control target
= control target key end

     0   :  { %s676_s18 = smov 0   ;;  %s758_s0 = inlined_call_operand.vmem [shape: f32[128,64], index: 0, kind: input, shape index: {}]   ;;  %s759_s1 = inlined_call_operand.vmem [shape: f32[128,16], index: 1, kind: input, shape index: {}]   ;;  %s760_s2 = inlined_call_operand.vmem [shape: f32[128,16], index: 2, kind: input, shape index: {}]   ;;  %s761_s3 = inlined_call_operand.vmem [shape: f32[64,16], index: 3, kind: input, shape index: {}]   ;;  %s762_s4 = inlined_call_operand.vmem [shape: f32[1,16], index: 4, kind: input, shape index: {}]   ;;  %s763_s5 = inlined_call_operand.vmem [shape: f32[128,16], index: 5, kind: output, shape index: {}]  }
   0x1 LB: > { %s546_s19 = sadd.s32 4294967295, %s644_s18   ;;  %p550_p0 = scmp.ge.s32.totalorder %s644_s18, 1  ;;  %s644_s18 = sphi %s676_s18, %s15_s18  }
   0x2   : > { %p210_p1 = scmp.lt.s32.totalorder %s644_s18, 3 }
   0x4   : > { %p211_p2 = pnand %p550_p0, %p210_p1 }
   0x5   : > { %s551_s24 = sshll.u32 (!%p211_p2), %s546_s19, 3 }
   0x6   : > { %214 = sbr.rel (%p211_p2) target bundleno = 233 (0xe9), region = 40  ;;  %p249_p3 = scmp.lt.s32.totalorder (!%p211_p2), %s551_s24, 15 }
   0xb   : > { %v287_v0 = vld [vmem:[%s761_s3 + $0x38] sm:$0xff]  ;;  %v286_v1 = vld [vmem:[%s761_s3 + $0x30] sm:$0xff]  ;;  %v285_v2 = vld [vmem:[%s761_s3 + $0x28] sm:$0xff]  ;;  %s765_s24 = smov (!%p249_p3, %s551_s24), 15  ;;  %vm295_vm0 = vcmask 523264   ;;  %vm457_vm1 = vcmask 130048  }
   0xc   : > { %586 = vmatprep.subr.mxu0 %v287_v0  ;;  %614 = vmatprep.subr.mxu1 %v287_v0  ;;  %v284_v3 = vld [vmem:[%s761_s3 + $0x20] sm:$0xff]  ;;  %v283_v4 = vld [vmem:[%s761_s3 + $0x18] sm:$0xff]  ;;  %v282_v5 = vld [vmem:[%s761_s3 + $0x10] sm:$0xff]  ;;  %s702_s8 = sshll.u32 %s765_s24, 3 }
   0xd   : > { %587 = vmatpush3.msra.mxu0 %v287_v0  ;;  %622 = vmatpush3.msra.mxu1 %v287_v0  ;;  %v281_v6 = vld [vmem:[%s761_s3 + $0x8] sm:$0xff]  ;;  %s252_s13 = scalar_lea.vmem %s758_s0, %s702_s8  ;;  %v280_v7 = vld [vmem:[%s761_s3] sm:$0xff]  ;;  %s258_s19 = scalar_lea.vmem %s759_s1, %s702_s8 }
   0xe   : > { %588 = vmatprep.subr.mxu0 %v286_v1  ;;  %615 = vmatprep.subr.mxu1 %v286_v1  ;;  %v272_v8 = vld [vmem:[%s252_s13] sm:$0xff]  ;;  %v273_v10 = vld [vmem:[%s252_s13 + $0x8] sm:$0xff]  ;;  %v274_v12 = vld [vmem:[%s252_s13 + $0x10] sm:$0xff]  ;;  %s264_s22 = scalar_lea.vmem %s760_s2, %s702_s8  ;;  %s737_s27 = scalar_lea.vmem %s763_s5, %s702_s8 }
   0xf   : > { %589 = vmatpush3.msra.mxu0 %v286_v1  ;;  %623 = vmatpush3.msra.mxu1 %v286_v1  ;;  %v276_v9 = vld [vmem:[%s252_s13 + $0x20] sm:$0xff]  ;;  %v277_v11 = vld [vmem:[%s252_s13 + $0x28] sm:$0xff]  ;;  %v278_v13 = vld [vmem:[%s252_s13 + $0x30] sm:$0xff] }
  0x10   : > { %590 = vmatprep.subr.mxu0 %v285_v2  ;;  %616 = vmatprep.subr.mxu1 %v285_v2  ;;  %v275_v14 = vld [vmem:[%s252_s13 + $0x18] sm:$0xff]  ;;  %v426_v16 = vld [vmem:[%s258_s19 + $0x8] sm:$0xff]  ;;  %v559_v20 = vld [vmem:[%s762_s4] ss:$0 sm:$0xff] }
  0x11   : > { %591 = vmatpush3.msra.mxu0 %v285_v2  ;;  %624 = vmatpush3.msra.mxu1 %v285_v2  ;;  %v279_v15 = vld [vmem:[%s252_s13 + $0x38] sm:$0xff]  ;;  %v434_v17 = vld [vmem:[%s264_s22 + $0x8] sm:$0xff]  ;;  %v425_v21 = vld [vmem:[%s258_s19] sm:$0xff] }
  0x12   : > { %592 = vmatprep.subr.mxu0 %v284_v3  ;;  %617 = vmatprep.subr.mxu1 %v284_v3  ;;  %v430_v18 = vld [vmem:[%s258_s19 + $0x28] sm:$0xff]  ;;  %v433_v22 = vld [vmem:[%s264_s22] sm:$0xff]  ;;  %v428_v25 = vld [vmem:[%s258_s19 + $0x18] sm:$0xff]  ;;  %v442_v26 = vadd.f32 %v434_v17, %v426_v16 }
  0x13   : > { %593 = vmatpush3.msra.mxu0 %v284_v3  ;;  %625 = vmatpush3.msra.mxu1 %v284_v3  ;;  %v438_v19 = vld [vmem:[%s264_s22 + $0x28] sm:$0xff]  ;;  %v429_v23 = vld [vmem:[%s258_s19 + $0x20] sm:$0xff]  ;;  %v436_v28 = vld [vmem:[%s264_s22 + $0x18] sm:$0xff]  ;;  %v441_v36 = vadd.f32 %v433_v22, %v425_v21 }
  0x14   : > { %594 = vmatprep.subr.mxu0 %v283_v4  ;;  %618 = vmatprep.subr.mxu1 %v283_v4  ;;  %v437_v24 = vld [vmem:[%s264_s22 + $0x20] sm:$0xff]  ;;  %v446_v27 = vadd.f32 %v438_v19, %v430_v18  ;;  %v432_v29 = vld [vmem:[%s258_s19 + $0x38] sm:$0xff]  ;;  %v427_v33 = vld [vmem:[%s258_s19 + $0x10] sm:$0xff]  ;;  %v444_v43 = vadd.f32 %v436_v28, %v428_v25 }
  0x15   : > { %595 = vmatpush3.msra.mxu0 %v283_v4  ;;  %626 = vmatpush3.msra.mxu1 %v283_v4  ;;  %v440_v30 = vld [vmem:[%s264_s22 + $0x38] sm:$0xff]  ;;  %v445_v37 = vadd.f32 %v437_v24, %v429_v23  ;;  %v435_v38 = vld [vmem:[%s264_s22 + $0x10] sm:$0xff] }
  0x16   : > { %596 = vmatprep.subr.mxu0 %v282_v5  ;;  %619 = vmatprep.subr.mxu1 %v282_v5  ;;  %v431_v39 = vld [vmem:[%s258_s19 + $0x30] sm:$0xff]  ;;  %v448_v44 = vadd.f32 %v440_v30, %v432_v29  ;;  %v443_v51 = vadd.f32 %v435_v38, %v427_v33 }
  0x17   : > { %597 = vmatpush3.msra.mxu0 %v282_v5  ;;  %627 = vmatpush3.msra.mxu1 %v282_v5  ;;  %v439_v40 = vld [vmem:[%s264_s22 + $0x30] sm:$0xff] }
  0x18   : > { %598 = vmatprep.subr.mxu0 %v281_v6  ;;  %620 = vmatprep.subr.mxu1 %v281_v6  ;;  %v447_v52 = vadd.f32 %v439_v40, %v431_v39 }
  0x19   : > { %599 = vmatpush3.msra.mxu0 %v281_v6  ;;  %628 = vmatpush3.msra.mxu1 %v281_v6 }
  0x1a   : > { %600 = vmatprep.subr.mxu0 %v280_v7  ;;  %621 = vmatprep.subr.mxu1 %v280_v7 }
  0x1b   : > { %601 = vmatpush3.msra.mxu0 %v280_v7  ;;  %629 = vmatpush3.msra.mxu1 %v280_v7 }
  0x1c   : > { %602 = vmatprep.mubr.msk.f32.mxu0 %vm295_vm0, %v272_v8  ;;  %608 = vmatprep.mubr.msk.f32.mxu1 %vm295_vm0, %v276_v9 }
  0x1d   : > { %603 = vmatmul.mubr.msk.f32.vlgmr.msra.gmra.mxu0 %vm295_vm0, %v273_v10  ;;  %609 = vmatmul.mubr.msk.f32.vlgmr.msra.gmra.mxu1 %vm295_vm0, %v277_v11 }
  0x1e   : > { %605 = vmatprep.mubr.msk.f32.mxu0 %vm295_vm0, %v274_v12  ;;  %611 = vmatprep.mubr.msk.f32.mxu1 %vm295_vm0, %v278_v13 }
  0x21   : > { %606 = vmatmul.mubr.msk.f32.gmra.mxu0 %vm295_vm0, %v275_v14  ;;  %612 = vmatmul.mubr.msk.f32.gmra.mxu1 %vm295_vm0, %v279_v15 }
  0xdd   : > { %v604_v31 = vpop.f32.mrf.mxu0  ;;  %v610_v32 = vpop.f32.mrf.mxu1 }
  0xde   : > { %v392_v34 = vadd.f32 %v604_v31, %v559_v20  ;;  %v412_v35 = vadd.f32 %v610_v32, %v559_v20 }
  0xdf   : > { %v386_v41 = vpop.f32.mrf.mxu0  ;;  %v406_v42 = vpop.f32.mrf.mxu1 }
  0xe0   : > { %v450_v45 = vadd.f32 %v442_v26, %v392_v34  ;;  %v454_v46 = vadd.f32 %v446_v27, %v412_v35  ;;  %v387_v47 = vadd.f32 %v559_v20, %v386_v41  ;;  %v407_v48 = vadd.f32 %v559_v20, %v406_v42 }
  0xe1   : > { %v607_v49 = vpop.f32.mrf.mxu0  ;;  %v613_v50 = vpop.f32.mrf.mxu1 }
  0xe2   : > { %459 = vst.msk [vmem:[%s737_s27 + $0x8] sm:$0xff] %vm457_vm1, %v450_v45  ;;  %463 = vst.msk [vmem:[%s737_s27 + $0x28] sm:$0xff] %vm457_vm1, %v454_v46  ;;  %v449_v53 = vadd.f32 %v441_v36, %v387_v47  ;;  %v453_v54 = vadd.f32 %v445_v37, %v407_v48  ;;  %v402_v55 = vadd.f32 %v607_v49, %v559_v20 }
  0xe3   : > { %v422_v56 = vadd.f32 %v613_v50, %v559_v20  ;;  %v396_v57 = vpop.f32.mrf.mxu0  ;;  %v416_v58 = vpop.f32.mrf.mxu1 }
  0xe4   : > { %458 = vst.msk [vmem:[%s737_s27] sm:$0xff] %vm457_vm1, %v449_v53  ;;  %462 = vst.msk [vmem:[%s737_s27 + $0x20] sm:$0xff] %vm457_vm1, %v453_v54  ;;  %v452_v59 = vadd.f32 %v444_v43, %v402_v55  ;;  %v397_v61 = vadd.f32 %v559_v20, %v396_v57  ;;  %v417_v62 = vadd.f32 %v559_v20, %v416_v58 }
  0xe5   : > { %v456_v60 = vadd.f32 %v448_v44, %v422_v56 }
  0xe6   : > { %461 = vst.msk [vmem:[%s737_s27 + $0x18] sm:$0xff] %vm457_vm1, %v452_v59  ;;  %v451_v63 = vadd.f32 %v443_v51, %v397_v61  ;;  %v455_v0 = vadd.f32 %v447_v52, %v417_v62 }
  0xe7   : > { %465 = vst.msk [vmem:[%s737_s27 + $0x38] sm:$0xff] %vm457_vm1, %v456_v60 }
  0xe8   : > { %460 = vst.msk [vmem:[%s737_s27 + $0x10] sm:$0xff] %vm457_vm1, %v451_v63  ;;  %464 = vst.msk [vmem:[%s737_s27 + $0x30] sm:$0xff] %vm457_vm1, %v455_v0 }
  0xe9 PF: > { %s15_s18 = sadd.s32 1, %s644_s18  }
  0xea   : > { %p12_p4 = scmp.ge.s32.totalorder %s15_s18, 4  }
  0xec   :  { %14 = sbr.rel (!%p12_p4) target bundleno = 1 (0x1), region = 76 }

// kernel: mlla_forward_pallas.20
= control target key start
LH: loop header
LB: loop body
LE: loop exit
PB: predicated region body
PF: predicated region fallthrough
CT: control target
= control target key end

     0   :  { %s667_s12 = smov 0   ;;  %s889_s0 = inlined_call_operand.vmem [shape: f32[2,8,8,64], index: 0, kind: input, shape index: {}]   ;;  %s890_s1 = inlined_call_operand.vmem [shape: f32[9,64], index: 1, kind: input, shape index: {}]   ;;  %s891_s2 = inlined_call_operand.vmem [shape: f32[1,64], index: 2, kind: input, shape index: {}]   ;;  %s892_s3 = inlined_call_operand.vmem [shape: f32[2,8,8,64], index: 3, kind: output, shape index: {}]  }
   0x1 LB: > { %s590_s13 = sadd.s32 4294967295, %s644_s12   ;;  %p594_p0 = scmp.ge.s32.totalorder %s644_s12, 1  ;;  %s644_s12 = sphi %s667_s12, %s13_s12  }
   0x2   : > { %p137_p1 = scmp.lt.s32.totalorder %s644_s12, 3 }
   0x4   : > { %p138_p2 = pnand %p594_p0, %p137_p1 }
   0x5   : > { %p675_p3 = scmp.lt.s32.totalorder (!%p138_p2), %s590_s13, 1 }
   0x6   : > { %141 = sbr.rel (%p138_p2) target bundleno = 99 (0x63), region = 32 }
   0xb   : > { %vm179_vm0 = vcmask 523264   ;;  %vm181_vm1 = vcmask 517120   ;;  %v646_v0 = vmov 0.0   ;;  %s895_s13 = smov (!%p675_p3, %s590_s13), 1  ;;  %v712_v1 = vld [vmem:[%s890_s1] ss:$0 sm:$0xff] }
   0xc   : > { %180 = vst.msk [vmem:[#allocation2] sm:$0xff] %vm179_vm0, %v646_v0  ;;  %183 = vst.msk [vmem:[#allocation2 + $0x10] sm:$0xff] %vm179_vm0, %v646_v0  ;;  %s611_s15 = sshll.u32 %s895_s13, 6  ;;  %v717_v2 = vld [vmem:[%s890_s1 + $0x1] ss:$0 sm:$0xff] }
   0xd   : > { %185 = vst.msk [vmem:[#allocation2 + $0x20] sm:$0xff] %vm179_vm0, %v646_v0  ;;  %187 = vst.msk [vmem:[#allocation2 + $0x30] sm:$0xff] %vm179_vm0, %v646_v0  ;;  %s165_s18 = scalar_lea.vmem %s889_s0, %s611_s15  ;;  %v722_v3 = vld [vmem:[%s890_s1 + $0x2] ss:$0 sm:$0xff]  ;;  %v738_v19 = vld [vmem:[%s890_s1 + $0x3] ss:$0 sm:$0xff]  ;;  %s851_s17 = scalar_lea.vmem %s892_s3, %s611_s15 }
   0xe   : > { %189 = vst.msk [vmem:[#allocation2 + $0x40] sm:$0xff] %vm179_vm0, %v646_v0  ;;  %191 = vst.msk [vmem:[#allocation2 + $0x50] sm:$0xff] %vm179_vm0, %v646_v0  ;;  %v171_v4 = vld [vmem:[%s165_s18] sm:$0xff]  ;;  %v172_v5 = vld [vmem:[%s165_s18 + $0x8] sm:$0xff] }
   0xf   : > { %193 = vst.msk [vmem:[#allocation2 + $0x60] sm:$0xff] %vm179_vm0, %v646_v0  ;;  %195 = vst.msk [vmem:[#allocation2 + $0x70] sm:$0xff] %vm179_vm0, %v646_v0  ;;  %v173_v6 = vld [vmem:[%s165_s18 + $0x10] sm:$0xff]  ;;  %v174_v7 = vld [vmem:[%s165_s18 + $0x18] sm:$0xff] }
  0x10   : > { %197 = vst.msk [vmem:[#allocation2 + $0x80] sm:$0xff] %vm179_vm0, %v646_v0  ;;  %199 = vst.msk [vmem:[#allocation2 + $0x90] sm:$0xff] %vm179_vm0, %v646_v0  ;;  %v175_v8 = vld [vmem:[%s165_s18 + $0x20] sm:$0xff]  ;;  %v176_v9 = vld [vmem:[%s165_s18 + $0x28] sm:$0xff] }
  0x11   : > { %182 = vst.msk [vmem:[#allocation2 + $0x8] sm:$0x3] %vm181_vm1, %v646_v0  ;;  %184 = vst.msk [vmem:[#allocation2 + $0x18] sm:$0x3] %vm181_vm1, %v646_v0  ;;  %v177_v10 = vld [vmem:[%s165_s18 + $0x30] sm:$0xff]  ;;  %v178_v11 = vld [vmem:[%s165_s18 + $0x38] sm:$0xff] }
  0x12   : > { %186 = vst.msk [vmem:[#allocation2 + $0x28] sm:$0x3] %vm181_vm1, %v646_v0  ;;  %188 = vst.msk [vmem:[#allocation2 + $0x38] sm:$0x3] %vm181_vm1, %v646_v0  ;;  %v743_v23 = vld [vmem:[%s890_s1 + $0x4] ss:$0 sm:$0xff] }
  0x13   : > { %190 = vst.msk [vmem:[#allocation2 + $0x48] sm:$0x3] %vm181_vm1, %v646_v0  ;;  %192 = vst.msk [vmem:[#allocation2 + $0x58] sm:$0x3] %vm181_vm1, %v646_v0  ;;  %v210_v12 = vld [vmem:[#allocation2] sm:$0xff] }
  0x14   : > { %194 = vst.msk [vmem:[#allocation2 + $0x68] sm:$0x3] %vm181_vm1, %v646_v0  ;;  %196 = vst.msk [vmem:[#allocation2 + $0x78] sm:$0x3] %vm181_vm1, %v646_v0  ;;  %v223_v13 = vmul.f32 %v712_v1, %v210_v12  ;;  %v749_v26 = vld [vmem:[%s890_s1 + $0x5] ss:$0 sm:$0xff] }
  0x15   : > { %198 = vst.msk [vmem:[#allocation2 + $0x88] sm:$0x3] %vm181_vm1, %v646_v0  ;;  %200 = vst.msk [vmem:[#allocation2 + $0x98] sm:$0x3] %vm181_vm1, %v646_v0  ;;  %v755_v29 = vld [vmem:[%s890_s1 + $0x6] ss:$0 sm:$0xff] }
  0x16   : > { %202 = vst.msk [vmem:[#allocation2 + $0x11] sm:$0xff] %vm179_vm0, %v171_v4  ;;  %203 = vst.msk [vmem:[#allocation2 + $0x21] sm:$0xff] %vm179_vm0, %v172_v5  ;;  %v762_v34 = vld [vmem:[%s890_s1 + $0x7] ss:$0 sm:$0xff]  ;;  %v767_v36 = vld [vmem:[%s890_s1 + $0x8] ss:$0 sm:$0xff] }
  0x17   : > { %204 = vst.msk [vmem:[#allocation2 + $0x31] sm:$0xff] %vm179_vm0, %v173_v6  ;;  %205 = vst.msk [vmem:[#allocation2 + $0x41] sm:$0xff] %vm179_vm0, %v174_v7  ;;  %v791_v12 = vld [vmem:[%s891_s2] ss:$0 sm:$0xff] }
  0x18   : > { %206 = vst.msk [vmem:[#allocation2 + $0x51] sm:$0xff] %vm179_vm0, %v175_v8  ;;  %207 = vst.msk [vmem:[#allocation2 + $0x61] sm:$0xff] %vm179_vm0, %v176_v9  ;;  %v239_v14 = vld [vmem:[#allocation2 + $0x1] sm:$0xff] }
  0x19   : > { %208 = vst.msk [vmem:[#allocation2 + $0x71] sm:$0xff] %vm179_vm0, %v177_v10  ;;  %209 = vst.msk [vmem:[#allocation2 + $0x81] sm:$0xff] %vm179_vm0, %v178_v11  ;;  %v268_v15 = vld [vmem:[#allocation2 + $0x2] sm:$0xff]  ;;  %v252_v16 = vmul.f32 %v717_v2, %v239_v14 }
  0x1a   : > { %v281_v17 = vmul.f32 %v722_v3, %v268_v15 }
  0x1b   : > { %v260_v18 = vadd.f32 %v252_v16, %v223_v13 }
  0x1d   : > { %v289_v20 = vadd.f32 %v281_v17, %v260_v18  ;;  %v297_v21 = vld [vmem:[#allocation2 + $0x10] sm:$0xff]  ;;  %v385_v28 = vld [vmem:[#allocation2 + $0x20] sm:$0xff] }
  0x1e   : > { %v326_v22 = vld [vmem:[#allocation2 + $0x11] sm:$0xff]  ;;  %v310_v24 = vmul.f32 %v738_v19, %v297_v21  ;;  %v224_v27 = vmul.f32 %v712_v1, %v297_v21  ;;  %v414_v30 = vld [vmem:[#allocation2 + $0x21] sm:$0xff]  ;;  %v398_v41 = vmul.f32 %v755_v29, %v385_v28  ;;  %v225_v43 = vmul.f32 %v712_v1, %v385_v28 }
  0x1f   : > { %v355_v25 = vld [vmem:[#allocation2 + $0x12] sm:$0xff]  ;;  %v253_v31 = vmul.f32 %v717_v2, %v326_v22  ;;  %v339_v33 = vmul.f32 %v743_v23, %v326_v22  ;;  %v443_v35 = vld [vmem:[#allocation2 + $0x22] sm:$0xff]  ;;  %v254_v44 = vmul.f32 %v717_v2, %v414_v30  ;;  %v427_v45 = vmul.f32 %v762_v34, %v414_v30 }
  0x20   : > { %v318_v32 = vadd.f32 %v310_v24, %v289_v20  ;;  %v368_v37 = vmul.f32 %v749_v26, %v355_v25  ;;  %v282_v39 = vmul.f32 %v722_v3, %v355_v25  ;;  %v386_v42 = vld [vmem:[#allocation2 + $0x30] sm:$0xff]  ;;  %v456_v46 = vmul.f32 %v767_v36, %v443_v35  ;;  %v387_v62 = vld [vmem:[#allocation2 + $0x40] sm:$0xff] }
  0x21   : > { %v261_v38 = vadd.f32 %v253_v31, %v224_v27  ;;  %v311_v48 = vmul.f32 %v738_v19, %v385_v28  ;;  %v415_v49 = vld [vmem:[#allocation2 + $0x31] sm:$0xff]  ;;  %v340_v51 = vmul.f32 %v743_v23, %v414_v30  ;;  %v262_v53 = vadd.f32 %v254_v44, %v225_v43  ;;  %v416_v7 = vld [vmem:[#allocation2 + $0x41] sm:$0xff] }
  0x22   : > { %v347_v40 = vadd.f32 %v339_v33, %v318_v32  ;;  %v444_v52 = vld [vmem:[#allocation2 + $0x32] sm:$0xff]  ;;  %v283_v54 = vmul.f32 %v722_v3, %v443_v35  ;;  %v369_v56 = vmul.f32 %v749_v26, %v443_v35  ;;  %v399_v57 = vmul.f32 %v755_v29, %v386_v42  ;;  %v445_v20 = vld [vmem:[#allocation2 + $0x42] sm:$0xff] }
  0x23   : > { %v290_v47 = vadd.f32 %v282_v39, %v261_v38  ;;  %v226_v58 = vmul.f32 %v712_v1, %v386_v42  ;;  %v312_v61 = vmul.f32 %v738_v19, %v386_v42  ;;  %v255_v63 = vmul.f32 %v717_v2, %v415_v49  ;;  %v388_v30 = vld [vmem:[#allocation2 + $0x50] sm:$0xff] }
  0x24   : > { %v376_v50 = vadd.f32 %v368_v37, %v347_v40  ;;  %v291_v60 = vadd.f32 %v283_v54, %v262_v53  ;;  %v428_v4 = vmul.f32 %v762_v34, %v415_v49  ;;  %v457_v5 = vmul.f32 %v767_v36, %v444_v52  ;;  %v417_v40 = vld [vmem:[#allocation2 + $0x51] sm:$0xff] }
  0x25   : > { %v319_v55 = vadd.f32 %v311_v48, %v290_v47  ;;  %v341_v6 = vmul.f32 %v743_v23, %v415_v49  ;;  %v263_v10 = vadd.f32 %v255_v63, %v226_v58  ;;  %v284_v11 = vmul.f32 %v722_v3, %v444_v52  ;;  %v446_v47 = vld [vmem:[#allocation2 + $0x52] sm:$0xff]  ;;  %v389_v58 = vld [vmem:[#allocation2 + $0x60] sm:$0xff] }
  0x26   : > { %v406_v59 = vadd.f32 %v398_v41, %v376_v50  ;;  %v320_v9 = vadd.f32 %v312_v61, %v291_v60  ;;  %v370_v14 = vmul.f32 %v749_v26, %v444_v52  ;;  %v313_v15 = vmul.f32 %v738_v19, %v387_v62  ;;  %v418_v61 = vld [vmem:[#allocation2 + $0x61] sm:$0xff] }
  0x27   : > { %v348_v0 = vadd.f32 %v340_v51, %v319_v55  ;;  %v227_v16 = vmul.f32 %v712_v1, %v387_v62  ;;  %v292_v21 = vadd.f32 %v284_v11, %v263_v10  ;;  %v256_v22 = vmul.f32 %v717_v2, %v416_v7 }
  0x28   : > { %v435_v8 = vadd.f32 %v427_v45, %v406_v59  ;;  %v349_v18 = vadd.f32 %v341_v6, %v320_v9  ;;  %v400_v25 = vmul.f32 %v755_v29, %v387_v62  ;;  %v429_v27 = vmul.f32 %v762_v34, %v416_v7 }
  0x29   : > { %v377_v13 = vadd.f32 %v369_v56, %v348_v0  ;;  %v342_v28 = vmul.f32 %v743_v23, %v416_v7  ;;  %v321_v33 = vadd.f32 %v313_v15, %v292_v21  ;;  %v264_v35 = vadd.f32 %v256_v22, %v227_v16  ;;  %v447_v15 = vld [vmem:[#allocation2 + $0x62] sm:$0xff] }
  0x2a   : > { %v464_v17 = vadd.f32 %v456_v46, %v435_v8  ;;  %v378_v32 = vadd.f32 %v370_v14, %v349_v18  ;;  %v458_v38 = vmul.f32 %v767_v36, %v445_v20  ;;  %v371_v39 = vmul.f32 %v749_v26, %v445_v20 }
  0x2b   : > { %v407_v24 = vadd.f32 %v399_v57, %v377_v13  ;;  %v285_v41 = vmul.f32 %v722_v3, %v445_v20  ;;  %v350_v44 = vadd.f32 %v342_v28, %v321_v33  ;;  %v401_v45 = vmul.f32 %v755_v29, %v388_v30 }
  0x2c   : > { %v479_v31 = vadd.f32 %v791_v12, %v464_v17  ;;  %v408_v43 = vadd.f32 %v400_v25, %v378_v32  ;;  %v314_v49 = vmul.f32 %v738_v19, %v388_v30  ;;  %v228_v50 = vmul.f32 %v712_v1, %v388_v30  ;;  %v419_v25 = vld [vmem:[#allocation2 + $0x71] sm:$0xff] }
  0x2d   : > { %v436_v37 = vadd.f32 %v428_v4, %v407_v24  ;;  %v293_v48 = vadd.f32 %v285_v41, %v264_v35  ;;  %v379_v52 = vadd.f32 %v371_v39, %v350_v44  ;;  %v257_v53 = vmul.f32 %v717_v2, %v417_v40  ;;  %v390_v24 = vld [vmem:[#allocation2 + $0x70] sm:$0xff] }
  0x2e   : > { %v495_v42 = vmul.f32 0.70710677, %v479_v31  ;;  %v437_v51 = vadd.f32 %v429_v27, %v408_v43  ;;  %v430_v55 = vmul.f32 %v762_v34, %v417_v40  ;;  %v343_v57 = vmul.f32 %v743_v23, %v417_v40  ;;  %v448_v35 = vld [vmem:[#allocation2 + $0x72] sm:$0xff] }
  0x2f   : > { %v465_v46 = vadd.f32 %v457_v5, %v436_v37  ;;  %v322_v56 = vadd.f32 %v314_v49, %v293_v48  ;;  %v409_v60 = vadd.f32 %v401_v45, %v379_v52  ;;  %v265_v62 = vadd.f32 %v257_v53, %v228_v50  ;;  %v391_v48 = vld [vmem:[#allocation2 + $0x80] sm:$0xff] }
  0x30   : > { %622 = verf.f32 %v495_v42  ;;  %v466_v59 = vadd.f32 %v458_v38, %v437_v51  ;;  %v286_v63 = vmul.f32 %v722_v3, %v446_v47  ;;  %v459_v4 = vmul.f32 %v767_v36, %v446_v47 }
  0x31   : > { %v809_v54 = vadd.f32 %v791_v12, %v465_v46  ;;  %v351_v5 = vadd.f32 %v343_v57, %v322_v56  ;;  %v372_v6 = vmul.f32 %v749_v26, %v446_v47  ;;  %v438_v8 = vadd.f32 %v430_v55, %v409_v60 }
  0x32   : > { %v818_v7 = vadd.f32 %v791_v12, %v466_v59  ;;  %v294_v9 = vadd.f32 %v286_v63, %v265_v62  ;;  %v315_v10 = vmul.f32 %v738_v19, %v389_v58  ;;  %v402_v13 = vmul.f32 %v755_v29, %v389_v58  ;;  %v420_v63 = vld [vmem:[#allocation2 + $0x81] sm:$0xff] }
  0x33   : > { %v496_v0 = vmul.f32 0.70710677, %v809_v54  ;;  %v380_v11 = vadd.f32 %v372_v6, %v351_v5  ;;  %v431_v14 = vmul.f32 %v762_v34, %v418_v61  ;;  %v467_v17 = vadd.f32 %v459_v4, %v438_v8  ;;  %v449_v6 = vld [vmem:[#allocation2 + $0x82] sm:$0xff]  ;;  %v392_v8 = vld [vmem:[#allocation2 + $0x90] sm:$0xff] }
  0x34   : > { %v497_v16 = vmul.f32 0.70710677, %v818_v7  ;;  %v323_v18 = vadd.f32 %v315_v10, %v294_v9  ;;  %v344_v20 = vmul.f32 %v743_v23, %v418_v61  ;;  %v487_v21 = vmul.f32 0.5, %v479_v31 }
  0x35   : > { %624 = verf.f32 %v496_v0  ;;  %v410_v22 = vadd.f32 %v402_v13, %v380_v11  ;;  %v229_v27 = vmul.f32 %v712_v1, %v389_v58  ;;  %v258_v28 = vmul.f32 %v717_v2, %v418_v61 }
  0x36   : > { %626 = verf.f32 %v497_v16  ;;  %v828_v30 = vadd.f32 %v791_v12, %v467_v17  ;;  %v352_v32 = vadd.f32 %v344_v20, %v323_v18  ;;  %v373_v33 = vmul.f32 %v749_v26, %v447_v15 }
  0x37   : > { %v439_v37 = vadd.f32 %v431_v14, %v410_v22  ;;  %v460_v38 = vmul.f32 %v767_v36, %v447_v15  ;;  %v266_v39 = vadd.f32 %v258_v28, %v229_v27  ;;  %v287_v31 = vmul.f32 %v722_v3, %v447_v15 }
  0x38   : > { %v498_v40 = vmul.f32 0.70710677, %v828_v30  ;;  %v381_v41 = vadd.f32 %v373_v33, %v352_v32  ;;  %v403_v42 = vmul.f32 %v755_v29, %v390_v24  ;;  %v432_v43 = vmul.f32 %v762_v34, %v419_v25 }
  0x39   : > { %v468_v44 = vadd.f32 %v460_v38, %v439_v37  ;;  %v461_v45 = vmul.f32 %v767_v36, %v448_v35  ;;  %v295_v46 = vadd.f32 %v287_v31, %v266_v39  ;;  %v316_v47 = vmul.f32 %v738_v19, %v390_v24  ;;  %v450_v37 = vld [vmem:[#allocation2 + $0x92] sm:$0xff] }
  0x3a   : > { %628 = verf.f32 %v498_v40  ;;  %v411_v49 = vadd.f32 %v403_v42, %v381_v41  ;;  %v230_v50 = vmul.f32 %v712_v1, %v390_v24  ;;  %v259_v51 = vmul.f32 %v717_v2, %v419_v25 }
  0x3b   : > { %v841_v53 = vadd.f32 %v791_v12, %v468_v44  ;;  %v324_v55 = vadd.f32 %v316_v47, %v295_v46  ;;  %v345_v56 = vmul.f32 %v743_v23, %v419_v25  ;;  %v288_v57 = vmul.f32 %v722_v3, %v448_v35 }
  0x3c   : > { %v440_v59 = vadd.f32 %v432_v43, %v411_v49  ;;  %v267_v60 = vadd.f32 %v259_v51, %v230_v50  ;;  %v317_v61 = vmul.f32 %v738_v19, %v391_v48  ;;  %v374_v62 = vmul.f32 %v749_v26, %v448_v35 }
  0x3d   : > { %v623_v52 = vpop.eup %622  ;;  %v499_v1 = vmul.f32 0.70710677, %v841_v53  ;;  %v353_v2 = vadd.f32 %v345_v56, %v324_v55  ;;  %v404_v19 = vmul.f32 %v755_v29, %v391_v48  ;;  %v346_v13 = vmul.f32 %v743_v23, %v420_v63  ;;  %v421_v23 = vld [vmem:[#allocation2 + $0x91] sm:$0xff] }
  0x3e   : > { %v511_v58 = vadd.f32 1.0, %v623_v52  ;;  %v469_v3 = vadd.f32 %v461_v45, %v440_v59  ;;  %v296_v4 = vadd.f32 %v288_v57, %v267_v60  ;;  %v488_v14 = vmul.f32 0.5, %v809_v54 }
  0x3f   : > { %630 = verf.f32 %v499_v1  ;;  %v382_v5 = vadd.f32 %v374_v62, %v353_v2  ;;  %v433_v17 = vmul.f32 %v762_v34, %v420_v63  ;;  %v405_v22 = vmul.f32 %v755_v29, %v392_v8 }
  0x40   : > { %v519_v0 = vmul.f32 %v511_v58, %v487_v21  ;;  %v484_v10 = vadd.f32 %v791_v12, %v469_v3  ;;  %v325_v11 = vadd.f32 %v317_v61, %v296_v4  ;;  %v375_v21 = vmul.f32 %v749_v26, %v449_v6 }
  0x41   : > { %v412_v16 = vadd.f32 %v404_v19, %v382_v5  ;;  %v462_v28 = vmul.f32 %v767_v36, %v449_v6  ;;  %v489_v54 = vmul.f32 0.5, %v818_v7  ;;  %v434_v29 = vmul.f32 %v762_v34, %v421_v23 }
  0x42   : > { %v625_v9 = vpop.eup %624  ;;  %527 = vst.msk [vmem:[%s851_s17] sm:$0xff] %vm179_vm0, %v519_v0  ;;  %v500_v18 = vmul.f32 0.70710677, %v484_v10  ;;  %v354_v20 = vadd.f32 %v346_v13, %v325_v11  ;;  %v490_v40 = vmul.f32 0.5, %v828_v30  ;;  %v463_v42 = vmul.f32 %v767_v36, %v450_v37 }
  0x43   : > { %v512_v15 = vadd.f32 1.0, %v625_v9  ;;  %v627_v24 = vpop.eup %626  ;;  %v441_v27 = vadd.f32 %v433_v17, %v412_v16  ;;  %v491_v47 = vmul.f32 0.5, %v841_v53  ;;  %v492_v36 = vmul.f32 0.5, %v484_v10 }
  0x44   : > { %v513_v32 = vadd.f32 1.0, %v627_v24  ;;  %632 = verf.f32 %v500_v18  ;;  %v383_v33 = vadd.f32 %v375_v21, %v354_v20 }
  0x45   : > { %v520_v25 = vmul.f32 %v512_v15, %v488_v14  ;;  %v470_v35 = vadd.f32 %v462_v28, %v441_v27 }
  0x46   : > { %v521_v26 = vmul.f32 %v513_v32, %v489_v54  ;;  %v413_v38 = vadd.f32 %v405_v22, %v383_v33 }
  0x47   : > { %528 = vst.msk [vmem:[%s851_s17 + $0x8] sm:$0xff] %vm179_vm0, %v520_v25  ;;  %v629_v39 = vpop.eup %628  ;;  %v485_v31 = vadd.f32 %v791_v12, %v470_v35 }
  0x48   : > { %529 = vst.msk [vmem:[%s851_s17 + $0x10] sm:$0xff] %vm179_vm0, %v521_v26  ;;  %v514_v7 = vadd.f32 1.0, %v629_v39  ;;  %v442_v41 = vadd.f32 %v434_v29, %v413_v38 }
  0x49   : > { %v501_v43 = vmul.f32 0.70710677, %v485_v31  ;;  %v493_v56 = vmul.f32 0.5, %v485_v31 }
  0x4a   : > { %v522_v44 = vmul.f32 %v514_v7, %v490_v40  ;;  %v471_v45 = vadd.f32 %v463_v42, %v442_v41 }
  0x4b   : > { %634 = verf.f32 %v501_v43 }
  0x4c   : > { %v631_v46 = vpop.eup %630  ;;  %530 = vst.msk [vmem:[%s851_s17 + $0x18] sm:$0xff] %vm179_vm0, %v522_v44  ;;  %v486_v34 = vadd.f32 %v791_v12, %v471_v45 }
  0x4d   : > { %v515_v48 = vadd.f32 1.0, %v631_v46 }
  0x4e   : > { %v502_v30 = vmul.f32 0.70710677, %v486_v34  ;;  %v494_v53 = vmul.f32 0.5, %v486_v34 }
  0x4f   : > { %v523_v49 = vmul.f32 %v515_v48, %v491_v47 }
  0x50   : > { %636 = verf.f32 %v502_v30 }
  0x51   : > { %v633_v50 = vpop.eup %632  ;;  %531 = vst.msk [vmem:[%s851_s17 + $0x20] sm:$0xff] %vm179_vm0, %v523_v49 }
  0x52   : > { %v516_v51 = vadd.f32 1.0, %v633_v50 }
  0x54   : > { %v524_v52 = vmul.f32 %v516_v51, %v492_v36 }
  0x56   : > { %532 = vst.msk [vmem:[%s851_s17 + $0x28] sm:$0xff] %vm179_vm0, %v524_v52 }
  0x58   : > { %v635_v55 = vpop.eup %634 }
  0x59   : > { %v517_v57 = vadd.f32 1.0, %v635_v55 }
  0x5b   : > { %v525_v12 = vmul.f32 %v517_v57, %v493_v56 }
  0x5d   : > { %v637_v58 = vpop.eup %636  ;;  %533 = vst.msk [vmem:[%s851_s17 + $0x30] sm:$0xff] %vm179_vm0, %v525_v12 }
  0x5e   : > { %v518_v59 = vadd.f32 1.0, %v637_v58 }
  0x60   : > { %v526_v60 = vmul.f32 %v518_v59, %v494_v53 }
  0x62   : > { %534 = vst.msk [vmem:[%s851_s17 + $0x38] sm:$0xff] %vm179_vm0, %v526_v60 }
  0x63 PF: > { %s13_s12 = sadd.s32 1, %s644_s12  }
  0x64   : > { %p10_p4 = scmp.ge.s32.totalorder %s13_s12, 4  }
  0x66   :  { %12 = sbr.rel (!%p10_p4) target bundleno = 1 (0x1), region = 64 }

</bundles_post_ra>
